<compile_context>
chip_gen: v7x
topology: tpu7x:2x2x1
jax: 0.10.0
libtpu: 0.0.40
codegen_flags: <defaults>
</compile_context>

<pallas_src>
import jax
import jax.numpy as jnp
from jax import lax
from jax.experimental import pallas as pl
from jax.experimental.pallas import tpu as pltpu

BN_EPS = 1e-5


def _round_up(x, m):
    return ((x + m - 1) // m) * m


def _silu(x):
    return x * (1.0 / (1.0 + jnp.exp(-x)))


def bottleneck_kernel(x_ref, w1_ref, b1_ref, w2_ref, b2_ref, o_ref,
                      pad_ref, col_ref):
    # x_ref : (TH+2, W, Cp)     bf16 input slab (1-row halo top & bottom)
    # w1_ref: (Cp, Cm)          bf16 1x1 conv weight, BN scale folded in
    # b1_ref: (1, Cm)           f32 folded BN bias
    # w2_ref: (9*Cm, Cp)        bf16 3x3 conv weight (tap-major), BN scale folded
    # b2_ref: (1, Cp)           f32 folded BN bias
    # o_ref : (TH, W, Cp)       f32 output tile
    # pad_ref: (TH+2, W+2, Cm)  bf16 scratch: zero-padded intermediate
    # col_ref: (TH*W, 9*Cm)     bf16 scratch: im2col matrix
    THp2, W, Cp = x_ref.shape
    TH = THp2 - 2
    Cm = w1_ref.shape[1]
    t = pl.program_id(1)

    # ---- conv1: 1x1 conv == one lane-dense matmul, + bias + SiLU (f32) ----
    x2d = x_ref[...].reshape(THp2 * W, Cp)
    h = jnp.dot(x2d, w1_ref[...], preferred_element_type=jnp.float32)
    h = _silu(h + b1_ref[...])

    # ---- write padded intermediate; zero ONLY the 1-element borders ----
    pad_ref[:, 0:1, :] = jnp.zeros((THp2, 1, Cm), pad_ref.dtype)
    pad_ref[:, W + 1:W + 2, :] = jnp.zeros((THp2, 1, Cm), pad_ref.dtype)
    pad_ref[:, 1:W + 1, :] = h.reshape(THp2, W, Cm).astype(pad_ref.dtype)

    @pl.when(t == 0)                                 # top image boundary
    def _():
        pad_ref[0:1, :, :] = jnp.zeros((1, W + 2, Cm), pad_ref.dtype)

    @pl.when(t == pl.num_programs(1) - 1)            # bottom image boundary
    def _():
        pad_ref[TH + 1:TH + 2, :, :] = jnp.zeros((1, W + 2, Cm), pad_ref.dtype)

    # ---- conv2: 3x3 conv == ONE im2col matmul with K = 9*Cm ----
    # TODO(synk): kx=1,2 shifted reads are sublane-unaligned; pltpu.roll-based
    # shifts (XLU) would avoid the hidden relayout copy on those taps.
    for tap in range(9):
        ky, kx = tap // 3, tap % 3
        col_ref[:, tap * Cm:(tap + 1) * Cm] = (
            pad_ref[ky:ky + TH, kx:kx + W, :].reshape(TH * W, Cm))
    y = jnp.dot(col_ref[...], w2_ref[...], preferred_element_type=jnp.float32)
    y = _silu(y + b2_ref[...])

    # ---- residual (shortcut=True and in_channels == out_channels) ----
    x_in = x_ref[1:TH + 1, :, :].astype(jnp.float32).reshape(TH * W, Cp)
    o_ref[...] = (y + x_in).reshape(TH, W, Cp).astype(o_ref.dtype)


def bottleneck_pallas(x_nchw, params, *, tile_h=8):
    """x_nchw: (N, C, H, W) float32. Returns (N, C, H, W) float32."""
    w1, s1, b1, w2, s2, b2 = params
    N, C, H, W = x_nchw.shape
    Cmid = w1.shape[1]
    assert H % tile_h == 0, "H must be divisible by tile_h"
    T = H // tile_h
    Cp = _round_up(C, 128)       # lane-dense channel padding
    Cm = _round_up(Cmid, 128)

    # NCHW -> NHWC, bf16 activations, pad channels to lane width.
    x = jnp.transpose(x_nchw, (0, 2, 3, 1)).astype(jnp.bfloat16)
    x = jnp.pad(x, ((0, 0), (0, 0), (0, 0), (0, Cp - C)))
    # 1-row zero halo in H, then overlapping (tile_h+2)-row slabs per H-tile.
    # TODO(synk): halo duplication in HBM could be replaced by an overlapping
    # Element-indexed BlockSpec or a manual halo DMA.
    xp = jnp.pad(x, ((0, 0), (1, 1), (0, 0), (0, 0)))
    xs = jnp.stack(
        [xp[:, t * tile_h:t * tile_h + tile_h + 2] for t in range(T)], axis=1)

    # Fold BN scale into conv weights; biases stay f32 and are added in-kernel.
    w1f = jnp.pad(w1 * s1.reshape(1, Cmid),
                  ((0, Cp - C), (0, Cm - Cmid))).astype(jnp.bfloat16)
    w2f = jnp.pad(w2 * s2.reshape(1, 1, 1, C),
                  ((0, 0), (0, 0), (0, Cm - Cmid), (0, Cp - C)))
    w2f = w2f.reshape(9 * Cm, Cp).astype(jnp.bfloat16)
    b1p = jnp.pad(b1, ((0, 0), (0, Cm - Cmid))).astype(jnp.float32)
    b2p = jnp.pad(b2, ((0, 0), (0, Cp - C))).astype(jnp.float32)

    # Explicit VMEM budget: double-buffered in/out blocks + weights + scratch.
    vmem_est = (2 * (tile_h + 2) * W * Cp * 2          # input slabs (bf16)
                + 2 * tile_h * W * Cp * 4              # output tiles (f32)
                + (Cp * Cm + 9 * Cm * Cp) * 2          # weights (bf16)
                + (Cm + Cp) * 4                        # biases
                + (tile_h + 2) * (W + 8) * Cm * 2      # pad scratch
                + tile_h * W * 9 * Cm * 2)             # im2col scratch
    vmem_limit = max(32 * 1024 * 1024, int(1.5 * vmem_est))

    out = pl.pallas_call(
        bottleneck_kernel,
        out_shape=jax.ShapeDtypeStruct((N, H, W, Cp), jnp.float32),
        grid_spec=pltpu.PrefetchScalarGridSpec(
            num_scalar_prefetch=0,
            grid=(N, T),
            in_specs=[
                pl.BlockSpec((None, None, tile_h + 2, W, Cp),
                             lambda n, t: (n, t, 0, 0, 0)),
                pl.BlockSpec((Cp, Cm), lambda n, t: (0, 0)),
                pl.BlockSpec((1, Cm), lambda n, t: (0, 0)),
                pl.BlockSpec((9 * Cm, Cp), lambda n, t: (0, 0)),
                pl.BlockSpec((1, Cp), lambda n, t: (0, 0)),
            ],
            out_specs=pl.BlockSpec((None, tile_h, W, Cp),
                                   lambda n, t: (n, t, 0, 0)),
            scratch_shapes=[
                pltpu.VMEM((tile_h + 2, W + 2, Cm), jnp.bfloat16),
                pltpu.VMEM((tile_h * W, 9 * Cm), jnp.bfloat16),
            ],
        ),
        compiler_params=pltpu.CompilerParams(
            dimension_semantics=("parallel", "parallel"),
            vmem_limit_bytes=vmem_limit),
    )(xs, w1f, b1p, w2f, b2p)

    out = out[..., :C]
    return jnp.transpose(out, (0, 3, 1, 2))


def make_params(key, in_channels):
    """Deterministic synthetic conv weights + folded eval-mode BN params."""
    mid = in_channels // 2                      # expansion = 0.5
    k1, k2, k3, k4 = jax.random.split(key, 4)
    w1 = jax.random.normal(k1, (in_channels, mid), jnp.float32) * 0.1
    w2 = jax.random.normal(k2, (3, 3, mid, in_channels), jnp.float32) * 0.1

    def fold_bn(kk, c):
        g_key, b_key, m_key, v_key = jax.random.split(kk, 4)
        gamma = 1.0 + 0.1 * jax.random.normal(g_key, (c,), jnp.float32)
        beta = 0.1 * jax.random.normal(b_key, (c,), jnp.float32)
        mean = 0.1 * jax.random.normal(m_key, (c,), jnp.float32)
        var = jnp.abs(jax.random.normal(v_key, (c,), jnp.float32)) + 0.5
        scale = gamma / jnp.sqrt(var + BN_EPS)
        bias = beta - mean * scale
        return scale.reshape(1, c), bias.reshape(1, c)

    s1, b1 = fold_bn(k3, mid)
    s2, b2 = fold_bn(k4, in_channels)
    return w1, s1, b1, w2, s2, b2


def bottleneck_reference(x_nchw, params):
    """Plain-JAX f32 reference (faithful PyTorch forward semantics)."""
    w1, s1, b1, w2, s2, b2 = params
    x = jnp.transpose(x_nchw, (0, 2, 3, 1))
    dn = ('NHWC', 'HWIO', 'NHWC')
    h = lax.conv_general_dilated(x, w1.reshape(1, 1, *w1.shape), (1, 1),
                                 'SAME', dimension_numbers=dn)
    h = h * s1.reshape(1, 1, 1, -1) + b1.reshape(1, 1, 1, -1)
    h = _silu(h)
    y = lax.conv_general_dilated(h, w2, (1, 1), 'SAME', dimension_numbers=dn)
    y = y * s2.reshape(1, 1, 1, -1) + b2.reshape(1, 1, 1, -1)
    y = _silu(y)
    return jnp.transpose(x + y, (0, 3, 1, 2))


if __name__ == "__main__":
    N, C, H, W = 2, 4, 16, 16     # in_channels = out_channels = 4 -> hidden = 2
    key = jax.random.PRNGKey(0)
    kx, kp = jax.random.split(key)
    x = jax.random.normal(kx, (N, C, H, W), jnp.float32)
    params = make_params(kp, C)

    out = bottleneck_pallas(x, params, tile_h=8)
    out = jax.block_until_ready(out)

    ref = bottleneck_reference(x, params)
    assert out.shape == (N, C, H, W)
    err = jnp.max(jnp.abs(out - ref))
    # bf16 activations/weights with f32 accumulation vs the pure-f32 reference.
    assert jnp.allclose(out, ref, rtol=2e-2, atol=2e-2), f"max abs err {err}"
    print("KERNEL_OK")
</pallas_src>

<mosaic_0001>
module attributes {stable_mosaic.version = 11 : i64} {
  func.func @bottleneck_kernel(%arg0: i32, %arg1: i32, %arg2: memref<1x1x10x16x128xbf16, #tpu.memory_space<vmem>>, %arg3: memref<128x128xbf16, #tpu.memory_space<vmem>>, %arg4: memref<1x128xf32, #tpu.memory_space<vmem>>, %arg5: memref<1152x128xbf16, #tpu.memory_space<vmem>>, %arg6: memref<1x128xf32, #tpu.memory_space<vmem>>, %arg7: memref<1x8x16x128xf32, #tpu.memory_space<vmem>>, %arg8: memref<10x18x128xbf16, #tpu.memory_space<vmem>>, %arg9: memref<128x1152xbf16, #tpu.memory_space<vmem>>) attributes {dimension_semantics = [#tpu.dimension_semantics<parallel>, #tpu.dimension_semantics<parallel>], iteration_bounds = array<i64: 2, 2>, scalar_prefetch = 0 : i64, scratch_operands = 2 : i64, tpu.core_type = #tpu.core_type<tc>, window_params = [{transform_indices = @transform_0, window_bounds = array<i64: 1, 1, 10, 16, 128>}, {pipeline_mode = #tpu.pipeline_mode<synchronous>, transform_indices = @transform_1, window_bounds = array<i64: 128, 128>}, {pipeline_mode = #tpu.pipeline_mode<synchronous>, transform_indices = @transform_2, window_bounds = array<i64: 1, 128>}, {pipeline_mode = #tpu.pipeline_mode<synchronous>, transform_indices = @transform_3, window_bounds = array<i64: 1152, 128>}, {pipeline_mode = #tpu.pipeline_mode<synchronous>, transform_indices = @transform_4, window_bounds = array<i64: 1, 128>}, {transform_indices = @transform_5, window_bounds = array<i64: 1, 8, 16, 128>}]} {
    %c0 = arith.constant 0 : index
    %c0_0 = arith.constant 0 : index
    %c0_1 = arith.constant 0 : index
    %c0_2 = arith.constant 0 : index
    %c0_3 = arith.constant 0 : index
    %0 = vector.load %arg2[%c0, %c0_0, %c0_1, %c0_2, %c0_3] : memref<1x1x10x16x128xbf16, #tpu.memory_space<vmem>>, vector<1x1x10x16x128xbf16>
    %1 = vector.shape_cast %0 : vector<1x1x10x16x128xbf16> to vector<10x16x128xbf16>
    %2 = vector.shape_cast %1 : vector<10x16x128xbf16> to vector<160x128xbf16>
    %c0_4 = arith.constant 0 : index
    %c0_5 = arith.constant 0 : index
    %3 = vector.load %arg3[%c0_4, %c0_5] : memref<128x128xbf16, #tpu.memory_space<vmem>>, vector<128x128xbf16>
    %cst = arith.constant dense<0.000000e+00> : vector<160x128xf32>
    %4 = tpu.matmul %2, %3, %cst {dimension_numbers = #tpu.dot_dimension_numbers<[1], [0], [0], [1], [0, 0, 1, 1], [], []>} : vector<160x128xbf16>, vector<128x128xbf16>, vector<160x128xf32> -> vector<160x128xf32>
    %c0_6 = arith.constant 0 : index
    %c0_7 = arith.constant 0 : index
    %5 = vector.load %arg4[%c0_6, %c0_7] : memref<1x128xf32, #tpu.memory_space<vmem>>, vector<1x128xf32>
    %6 = vector.broadcast %5 : vector<1x128xf32> to vector<160x128xf32>
    %7 = arith.addf %4, %6 : vector<160x128xf32>
    %cst_8 = arith.constant 0.000000e+00 : f32
    %8 = vector.broadcast %cst_8 : f32 to vector<160x128xf32>
    %9 = arith.subf %8, %7 : vector<160x128xf32>
    %10 = math.exp %9 : vector<160x128xf32>
    %cst_9 = arith.constant 1.000000e+00 : f32
    %11 = vector.broadcast %cst_9 : f32 to vector<160x128xf32>
    %12 = arith.addf %11, %10 : vector<160x128xf32>
    %cst_10 = arith.constant 1.000000e+00 : f32
    %13 = vector.broadcast %cst_10 : f32 to vector<160x128xf32>
    %14 = arith.divf %13, %12 : vector<160x128xf32>
    %15 = arith.mulf %7, %14 : vector<160x128xf32>
    %cst_11 = arith.constant 0.000000e+00 : bf16
    %16 = vector.broadcast %cst_11 : bf16 to vector<10x1x128xbf16>
    %c0_12 = arith.constant 0 : index
    %c0_13 = arith.constant 0 : index
    %c0_14 = arith.constant 0 : index
    %17 = vector.load %arg8[%c0_12, %c0_13, %c0_14] : memref<10x18x128xbf16, #tpu.memory_space<vmem>>, vector<10x1x128xbf16>
    tpu.vector_store %arg8[%c0_12, %c0_13, %c0_14], %16 {strides = array<i32>} : memref<10x18x128xbf16, #tpu.memory_space<vmem>>, vector<10x1x128xbf16>,
    %cst_15 = arith.constant 0.000000e+00 : bf16
    %18 = vector.broadcast %cst_15 : bf16 to vector<10x1x128xbf16>
    %c0_16 = arith.constant 0 : index
    %c17 = arith.constant 17 : index
    %c0_17 = arith.constant 0 : index
    %19 = vector.load %arg8[%c0_16, %c17, %c0_17] : memref<10x18x128xbf16, #tpu.memory_space<vmem>>, vector<10x1x128xbf16>
    tpu.vector_store %arg8[%c0_16, %c17, %c0_17], %18 {strides = array<i32>} : memref<10x18x128xbf16, #tpu.memory_space<vmem>>, vector<10x1x128xbf16>,
    %20 = vector.shape_cast %15 : vector<160x128xf32> to vector<10x16x128xf32>
    %21 = arith.truncf %20 : vector<10x16x128xf32> to vector<10x16x128xbf16>
    %c0_18 = arith.constant 0 : index
    %c1 = arith.constant 1 : index
    %c0_19 = arith.constant 0 : index
    %22 = vector.load %arg8[%c0_18, %c1, %c0_19] : memref<10x18x128xbf16, #tpu.memory_space<vmem>>, vector<10x16x128xbf16>
    tpu.vector_store %arg8[%c0_18, %c1, %c0_19], %21 {strides = array<i32>} : memref<10x18x128xbf16, #tpu.memory_space<vmem>>, vector<10x16x128xbf16>,
    %c0_i32 = arith.constant 0 : i32
    %23 = arith.cmpi eq, %arg1, %c0_i32 : i32
    %24 = arith.extui %23 : i1 to i32
    %c0_i32_20 = arith.constant 0 : i32
    %25 = arith.cmpi ne, %24, %c0_i32_20 : i32
    scf.if %25 {
      %cst_77 = arith.constant 0.000000e+00 : bf16
      %79 = vector.broadcast %cst_77 : bf16 to vector<1x18x128xbf16>
      %c0_78 = arith.constant 0 : index
      %c0_79 = arith.constant 0 : index
      %c0_80 = arith.constant 0 : index
      %80 = vector.load %arg8[%c0_78, %c0_79, %c0_80] : memref<10x18x128xbf16, #tpu.memory_space<vmem>>, vector<1x18x128xbf16>
      tpu.vector_store %arg8[%c0_78, %c0_79, %c0_80], %79 {strides = array<i32>} : memref<10x18x128xbf16, #tpu.memory_space<vmem>>, vector<1x18x128xbf16>,
    } else {
    }
    %c1_i32 = arith.constant 1 : i32
    %26 = arith.cmpi eq, %arg1, %c1_i32 : i32
    %27 = arith.extui %26 : i1 to i32
    %c0_i32_21 = arith.constant 0 : i32
    %28 = arith.cmpi ne, %27, %c0_i32_21 : i32
    scf.if %28 {
      %cst_77 = arith.constant 0.000000e+00 : bf16
      %79 = vector.broadcast %cst_77 : bf16 to vector<1x18x128xbf16>
      %c9 = arith.constant 9 : index
      %c0_78 = arith.constant 0 : index
      %c0_79 = arith.constant 0 : index
      %80 = vector.load %arg8[%c9, %c0_78, %c0_79] : memref<10x18x128xbf16, #tpu.memory_space<vmem>>, vector<1x18x128xbf16>
      tpu.vector_store %arg8[%c9, %c0_78, %c0_79], %79 {strides = array<i32>} : memref<10x18x128xbf16, #tpu.memory_space<vmem>>, vector<1x18x128xbf16>,
    } else {
    }
    %c0_22 = arith.constant 0 : index
    %c0_23 = arith.constant 0 : index
    %c0_24 = arith.constant 0 : index
    %29 = vector.load %arg8[%c0_22, %c0_23, %c0_24] : memref<10x18x128xbf16, #tpu.memory_space<vmem>>, vector<8x16x128xbf16>
    %30 = vector.shape_cast %29 : vector<8x16x128xbf16> to vector<128x128xbf16>
    %c0_25 = arith.constant 0 : index
    %c0_26 = arith.constant 0 : index
    %31 = vector.load %arg9[%c0_25, %c0_26] : memref<128x1152xbf16, #tpu.memory_space<vmem>>, vector<128x128xbf16>
    tpu.vector_store %arg9[%c0_25, %c0_26], %30 {strides = array<i32>} : memref<128x1152xbf16, #tpu.memory_space<vmem>>, vector<128x128xbf16>,
    %c0_27 = arith.constant 0 : index
    %c1_28 = arith.constant 1 : index
    %c0_29 = arith.constant 0 : index
    %32 = vector.load %arg8[%c0_27, %c1_28, %c0_29] : memref<10x18x128xbf16, #tpu.memory_space<vmem>>, vector<8x16x128xbf16>
    %33 = vector.shape_cast %32 : vector<8x16x128xbf16> to vector<128x128xbf16>
    %c0_30 = arith.constant 0 : index
    %c128 = arith.constant 128 : index
    %34 = vector.load %arg9[%c0_30, %c128] : memref<128x1152xbf16, #tpu.memory_space<vmem>>, vector<128x128xbf16>
    tpu.vector_store %arg9[%c0_30, %c128], %33 {strides = array<i32>} : memref<128x1152xbf16, #tpu.memory_space<vmem>>, vector<128x128xbf16>,
    %c0_31 = arith.constant 0 : index
    %c2 = arith.constant 2 : index
    %c0_32 = arith.constant 0 : index
    %35 = vector.load %arg8[%c0_31, %c2, %c0_32] : memref<10x18x128xbf16, #tpu.memory_space<vmem>>, vector<8x16x128xbf16>
    %36 = vector.shape_cast %35 : vector<8x16x128xbf16> to vector<128x128xbf16>
    %c0_33 = arith.constant 0 : index
    %c256 = arith.constant 256 : index
    %37 = vector.load %arg9[%c0_33, %c256] : memref<128x1152xbf16, #tpu.memory_space<vmem>>, vector<128x128xbf16>
    tpu.vector_store %arg9[%c0_33, %c256], %36 {strides = array<i32>} : memref<128x1152xbf16, #tpu.memory_space<vmem>>, vector<128x128xbf16>,
    %c1_34 = arith.constant 1 : index
    %c0_35 = arith.constant 0 : index
    %c0_36 = arith.constant 0 : index
    %38 = vector.load %arg8[%c1_34, %c0_35, %c0_36] : memref<10x18x128xbf16, #tpu.memory_space<vmem>>, vector<8x16x128xbf16>
    %39 = vector.shape_cast %38 : vector<8x16x128xbf16> to vector<128x128xbf16>
    %c0_37 = arith.constant 0 : index
    %c384 = arith.constant 384 : index
    %40 = vector.load %arg9[%c0_37, %c384] : memref<128x1152xbf16, #tpu.memory_space<vmem>>, vector<128x128xbf16>
    tpu.vector_store %arg9[%c0_37, %c384], %39 {strides = array<i32>} : memref<128x1152xbf16, #tpu.memory_space<vmem>>, vector<128x128xbf16>,
    %c1_38 = arith.constant 1 : index
    %c1_39 = arith.constant 1 : index
    %c0_40 = arith.constant 0 : index
    %41 = vector.load %arg8[%c1_38, %c1_39, %c0_40] : memref<10x18x128xbf16, #tpu.memory_space<vmem>>, vector<8x16x128xbf16>
    %42 = vector.shape_cast %41 : vector<8x16x128xbf16> to vector<128x128xbf16>
    %c0_41 = arith.constant 0 : index
    %c512 = arith.constant 512 : index
    %43 = vector.load %arg9[%c0_41, %c512] : memref<128x1152xbf16, #tpu.memory_space<vmem>>, vector<128x128xbf16>
    tpu.vector_store %arg9[%c0_41, %c512], %42 {strides = array<i32>} : memref<128x1152xbf16, #tpu.memory_space<vmem>>, vector<128x128xbf16>,
    %c1_42 = arith.constant 1 : index
    %c2_43 = arith.constant 2 : index
    %c0_44 = arith.constant 0 : index
    %44 = vector.load %arg8[%c1_42, %c2_43, %c0_44] : memref<10x18x128xbf16, #tpu.memory_space<vmem>>, vector<8x16x128xbf16>
    %45 = vector.shape_cast %44 : vector<8x16x128xbf16> to vector<128x128xbf16>
    %c0_45 = arith.constant 0 : index
    %c640 = arith.constant 640 : index
    %46 = vector.load %arg9[%c0_45, %c640] : memref<128x1152xbf16, #tpu.memory_space<vmem>>, vector<128x128xbf16>
    tpu.vector_store %arg9[%c0_45, %c640], %45 {strides = array<i32>} : memref<128x1152xbf16, #tpu.memory_space<vmem>>, vector<128x128xbf16>,
    %c2_46 = arith.constant 2 : index
    %c0_47 = arith.constant 0 : index
    %c0_48 = arith.constant 0 : index
    %47 = vector.load %arg8[%c2_46, %c0_47, %c0_48] : memref<10x18x128xbf16, #tpu.memory_space<vmem>>, vector<8x16x128xbf16>
    %48 = vector.shape_cast %47 : vector<8x16x128xbf16> to vector<128x128xbf16>
    %c0_49 = arith.constant 0 : index
    %c768 = arith.constant 768 : index
    %49 = vector.load %arg9[%c0_49, %c768] : memref<128x1152xbf16, #tpu.memory_space<vmem>>, vector<128x128xbf16>
    tpu.vector_store %arg9[%c0_49, %c768], %48 {strides = array<i32>} : memref<128x1152xbf16, #tpu.memory_space<vmem>>, vector<128x128xbf16>,
    %c2_50 = arith.constant 2 : index
    %c1_51 = arith.constant 1 : index
    %c0_52 = arith.constant 0 : index
    %50 = vector.load %arg8[%c2_50, %c1_51, %c0_52] : memref<10x18x128xbf16, #tpu.memory_space<vmem>>, vector<8x16x128xbf16>
    %51 = vector.shape_cast %50 : vector<8x16x128xbf16> to vector<128x128xbf16>
    %c0_53 = arith.constant 0 : index
    %c896 = arith.constant 896 : index
    %52 = vector.load %arg9[%c0_53, %c896] : memref<128x1152xbf16, #tpu.memory_space<vmem>>, vector<128x128xbf16>
    tpu.vector_store %arg9[%c0_53, %c896], %51 {strides = array<i32>} : memref<128x1152xbf16, #tpu.memory_space<vmem>>, vector<128x128xbf16>,
    %c2_54 = arith.constant 2 : index
    %c2_55 = arith.constant 2 : index
    %c0_56 = arith.constant 0 : index
    %53 = vector.load %arg8[%c2_54, %c2_55, %c0_56] : memref<10x18x128xbf16, #tpu.memory_space<vmem>>, vector<8x16x128xbf16>
    %54 = vector.shape_cast %53 : vector<8x16x128xbf16> to vector<128x128xbf16>
    %c0_57 = arith.constant 0 : index
    %c1024 = arith.constant 1024 : index
    %55 = vector.load %arg9[%c0_57, %c1024] : memref<128x1152xbf16, #tpu.memory_space<vmem>>, vector<128x128xbf16>
    tpu.vector_store %arg9[%c0_57, %c1024], %54 {strides = array<i32>} : memref<128x1152xbf16, #tpu.memory_space<vmem>>, vector<128x128xbf16>,
    %c0_58 = arith.constant 0 : index
    %c0_59 = arith.constant 0 : index
    %56 = vector.load %arg9[%c0_58, %c0_59] : memref<128x1152xbf16, #tpu.memory_space<vmem>>, vector<128x1152xbf16>
    %c0_60 = arith.constant 0 : index
    %c0_61 = arith.constant 0 : index
    %57 = vector.load %arg5[%c0_60, %c0_61] : memref<1152x128xbf16, #tpu.memory_space<vmem>>, vector<1152x128xbf16>
    %cst_62 = arith.constant dense<0.000000e+00> : vector<128x128xf32>
    %58 = tpu.matmul %56, %57, %cst_62 {dimension_numbers = #tpu.dot_dimension_numbers<[1], [0], [0], [1], [0, 0, 1, 1], [], []>} : vector<128x1152xbf16>, vector<1152x128xbf16>, vector<128x128xf32> -> vector<128x128xf32>
    %c0_63 = arith.constant 0 : index
    %c0_64 = arith.constant 0 : index
    %59 = vector.load %arg6[%c0_63, %c0_64] : memref<1x128xf32, #tpu.memory_space<vmem>>, vector<1x128xf32>
    %60 = vector.broadcast %59 : vector<1x128xf32> to vector<128x128xf32>
    %61 = arith.addf %58, %60 : vector<128x128xf32>
    %cst_65 = arith.constant 0.000000e+00 : f32
    %62 = vector.broadcast %cst_65 : f32 to vector<128x128xf32>
    %63 = arith.subf %62, %61 : vector<128x128xf32>
    %64 = math.exp %63 : vector<128x128xf32>
    %cst_66 = arith.constant 1.000000e+00 : f32
    %65 = vector.broadcast %cst_66 : f32 to vector<128x128xf32>
    %66 = arith.addf %65, %64 : vector<128x128xf32>
    %cst_67 = arith.constant 1.000000e+00 : f32
    %67 = vector.broadcast %cst_67 : f32 to vector<128x128xf32>
    %68 = arith.divf %67, %66 : vector<128x128xf32>
    %69 = arith.mulf %61, %68 : vector<128x128xf32>
    %c0_68 = arith.constant 0 : index
    %c0_69 = arith.constant 0 : index
    %c1_70 = arith.constant 1 : index
    %c0_71 = arith.constant 0 : index
    %c0_72 = arith.constant 0 : index
    %70 = vector.load %arg2[%c0_68, %c0_69, %c1_70, %c0_71, %c0_72] : memref<1x1x10x16x128xbf16, #tpu.memory_space<vmem>>, vector<1x1x8x16x128xbf16>
    %71 = vector.shape_cast %70 : vector<1x1x8x16x128xbf16> to vector<8x16x128xbf16>
    %72 = arith.extf %71 : vector<8x16x128xbf16> to vector<8x16x128xf32>
    %73 = vector.shape_cast %72 : vector<8x16x128xf32> to vector<128x128xf32>
    %74 = arith.addf %69, %73 : vector<128x128xf32>
    %75 = vector.shape_cast %74 : vector<128x128xf32> to vector<8x16x128xf32>
    %c0_73 = arith.constant 0 : index
    %c0_74 = arith.constant 0 : index
    %c0_75 = arith.constant 0 : index
    %c0_76 = arith.constant 0 : index
    %76 = vector.load %arg7[%c0_73, %c0_74, %c0_75, %c0_76] : memref<1x8x16x128xf32, #tpu.memory_space<vmem>>, vector<1x8x16x128xf32>
    %77 = vector.shape_cast %76 : vector<1x8x16x128xf32> to vector<8x16x128xf32>
    %78 = vector.shape_cast %75 : vector<8x16x128xf32> to vector<1x8x16x128xf32>
    tpu.vector_store %arg7[%c0_73, %c0_74, %c0_75, %c0_76], %78 {strides = array<i32>} : memref<1x8x16x128xf32, #tpu.memory_space<vmem>>, vector<1x8x16x128xf32>,
    return
  }
  func.func @transform_0(%arg0: i32, %arg1: i32) -> (i32, i32, i32, i32, i32) {
    %c0_i32 = arith.constant 0 : i32
    %c0_i32_0 = arith.constant 0 : i32
    %c0_i32_1 = arith.constant 0 : i32
    %c0_i32_2 = arith.constant 0 : i32
    return %arg0, %arg1, %c0_i32, %c0_i32_0, %c0_i32_1 : i32, i32, i32, i32, i32
  }
  func.func @transform_1(%arg0: i32, %arg1: i32) -> (i32, i32) {
    %c0_i32 = arith.constant 0 : i32
    %c0_i32_0 = arith.constant 0 : i32
    %c0_i32_1 = arith.constant 0 : i32
    return %c0_i32, %c0_i32_0 : i32, i32
  }
  func.func @transform_2(%arg0: i32, %arg1: i32) -> (i32, i32) {
    %c0_i32 = arith.constant 0 : i32
    %c0_i32_0 = arith.constant 0 : i32
    %c0_i32_1 = arith.constant 0 : i32
    return %c0_i32, %c0_i32_0 : i32, i32
  }
  func.func @transform_3(%arg0: i32, %arg1: i32) -> (i32, i32) {
    %c0_i32 = arith.constant 0 : i32
    %c0_i32_0 = arith.constant 0 : i32
    %c0_i32_1 = arith.constant 0 : i32
    return %c0_i32, %c0_i32_0 : i32, i32
  }
  func.func @transform_4(%arg0: i32, %arg1: i32) -> (i32, i32) {
    %c0_i32 = arith.constant 0 : i32
    %c0_i32_0 = arith.constant 0 : i32
    %c0_i32_1 = arith.constant 0 : i32
    return %c0_i32, %c0_i32_0 : i32, i32
  }
  func.func @transform_5(%arg0: i32, %arg1: i32) -> (i32, i32, i32, i32) {
    %c0_i32 = arith.constant 0 : i32
    %c0_i32_0 = arith.constant 0 : i32
    %c0_i32_1 = arith.constant 0 : i32
    return %arg0, %arg1, %c0_i32, %c0_i32_0 : i32, i32, i32, i32
  }
}

</mosaic_0001>

<bundles_post_ra>
// kernel: tpu_custom_call.1
= control target key start
LH: loop header
LB: loop body
LE: loop exit
PB: predicated region body
PF: predicated region fallthrough
CT: control target
= control target key end

     0   :  { %s6189_s0 = inlined_call_operand.hbm [shape: bf16[2,2,10,16,128], index: 0, kind: input, shape index: {}]   ;;  %s6190_s1 = inlined_call_operand.hbm [shape: bf16[128,128], index: 1, kind: input, shape index: {}]   ;;  %s6191_s2 = inlined_call_operand.vmem [shape: f32[1,128], index: 2, kind: input, shape index: {}]   ;;  %s6192_s3 = inlined_call_operand.hbm [shape: bf16[1152,128], index: 3, kind: input, shape index: {}]   ;;  %s6193_s4 = inlined_call_operand.vmem [shape: f32[1,128], index: 4, kind: input, shape index: {}]   ;;  %s6194_s5 = inlined_call_operand.hbm [shape: f32[2,16,16,128], index: 5, kind: output, shape index: {}]  }
   0x1   :  { %6206 = sst [smem:[#allocation19_spill]] %s6190_s1 }
   0x2   :  { %6207 = sst [smem:[#allocation20_spill]] %s6192_s3 }
   0x3   :  { %10 = vsyncpa [#allocation5], 0 }
   0x4   :  { %12 = vsyncpa [#allocation5 + $0x1], 0 }
   0x5   :  { %13 = vsyncpa [#allocation8], 0 }
   0x6   :  { %14 = vsyncpa [#allocation6], 0 }
   0x7   :  { %16 = vsyncpa [#allocation6 + $0x1], 0  ;;  %s5237_s18 = smov 0   ;;  %s5239_s19 = smov 0  }
   0x8   :  { %s5241_s20 = smov 0   ;;  %s5243_s21 = smov 0  }
   0x9   :  { %s5245_s22 = smov 0   ;;  %s5247_s23 = smov 0  }
   0xa   :  { %s5249_s24 = smov 0   ;;  %s5251_s25 = smov 0  }
   0xb LB: > { %6208 = sst [smem:[#allocation14_spill]] %s5167_s18  ;;  %s3977_s26 = sadd.s32 4294967295, %s5195_s25   ;;  %s5195_s25 = sphi %s5251_s25, %s22_s25   ;;  %s5191_s24 = sphi %s5249_s24, %s6252_s24   ;;  %s5187_s23 = sphi %s5247_s23, %s6246_s23   ;;  %s5183_s22 = sphi %s5245_s22, %s6251_s22   ;;  %s5179_s21 = sphi %s5243_s21, %s6245_s21   ;;  %s5175_s20 = sphi %s5241_s20, %s6250_s20   ;;  %s5171_s19 = sphi %s5239_s19, %s6249_s19   ;;  %s5167_s18 = sphi %s5237_s18, %s6248_s18  }
   0xc   : > { %6209 = sst [smem:[#allocation15_spill]] %s5187_s23  ;;  %s3978_s27 = sadd.s32 4294967294, %s5195_s25  }
   0xd   : > { %p56_p0 = scmp.ne.s32.totalorder %s5171_s19, %s5167_s18  ;;  %p5281_p1 = scmp.eq.s32.totalorder %s3977_s26, 0 }
   0xe   : > { %p5285_p2 = scmp.eq.s32.totalorder %s3977_s26, 3  ;;  %p172_p3 = scmp.eq.s32.totalorder %s3978_s27, 3 }
   0xf   : > { %s6210_s28 = scalar_select %p5281_p1, 1, 0 }
  0x10   : > { %s6211_s29 = scalar_select %p5285_p2, 1, 0 }
  0x11   : > { %p5291_p4 = por %p5281_p1, %p56_p0  ;;  %p3979_p5 = scmp.ge.s32.totalorder %s5195_s25, 1 }
  0x12   : > { %p5296_p6 = por %p172_p3, %p56_p0  ;;  %p179_p7 = scmp.lt.s32.totalorder %s5195_s25, 5 }
  0x13   : > { %s6212_s30 = scalar_select %p5291_p4, 1, 0 }
  0x14   : > { %s6213_s6 = scalar_select %p5296_p6, 1, 0 }
  0x15   : > { %p5301_p8 = pnand %p3979_p5, %p179_p7  ;;  %s5197_s8 = smov [#allocation7]  }
  0x16   : > { %6214 = sst [smem:[#allocation16_spill]] %s6213_s6  ;;  %s191_s9 = sshll.u32 %s5197_s8, 4  ;;  %s192_s9 = int_to_ptr.vmem [resolvable:$true] %s191_s9 }
  0x17   : > { %s6215_s7 = scalar_select %p5301_p8, 1, 0 }
  0x18   : > { %p4656_p9 = pneg %p5301_p8  ;;  %s5198_s11 = smov [#allocation9]  }
  0x19   : > { %s207_s12 = sshll.u32 %s5198_s11, 4  ;;  %s6217_s1 = sld [smem:[#allocation19_spill]]  ;;  %s5313_s12 = int_to_ptr.vmem [resolvable:$true] %s207_s12 }
  0x1a   : > { %p5309_p10 = pnand %p4656_p9, %p5281_p1 }
  0x1c   : > { %p5009_p12 = pneg %p5309_p10 }
  0x1f   : > { %s5007_s15 = scalar_lea.hbm %s6217_s1, 1024 }
  0x20   : > { %p5008_p11 = scmp.ne.s32.totalorder %s6217_s1, %s5007_s15  ;;  %p5014_p3 = scmp.lt.u32.totalorder %s5007_s15, %s6217_s1 }
  0x22   : > { %p5010_p13 = pnand %p5009_p12, %p5008_p11 }
  0x24   : > { %p5011_p0 = pneg %p5010_p13 }
  0x26   : > { %p5016_p5 = pnand %p5014_p3, %p5011_p0 }
  0x28   : > { %5019 = shalt.err (!%p5016_p5)
}
  0x29   : > { %s5020_s8 = scalar_lea.vmem %s192_s9, 1024  ;;  %p5028_p1 = scmp.lt.s32.totalorder %s192_s9, %s192_s9 }
  0x2a   : > { %p5021_p7 = scmp.ne.s32.totalorder %s192_s9, %s5020_s8  ;;  %p5029_p4 = scmp.lt.s32.totalorder %s5020_s8, %s5020_s8 }
  0x2c   : > { %p5023_p9 = pnand %p5021_p7, %p5009_p12  ;;  %p5030_p8 = por %p5029_p4, %p5028_p1 }
  0x2e   : > { %p5024_p6 = pneg %p5023_p9 }
  0x30   : > { %p5031_p2 = pnand %p5030_p8, %p5024_p6 }
  0x32   : > { %5034 = shalt.err (!%p5031_p2)
}
  0x33   : > { %s6201_s11 = smov 64   ;;  %s6202_s13 = smov 4  }
  0x34   : > { %4659 = dma.hbm_to_vmem [thread:$0]  (!%p5309_p10), %s6217_s1, 1024, %s192_s9, [#allocation8], %s6201_s11, %s6201_s11, %s6202_s13  }
  0x35   : > { %s6218_s3 = sld [smem:[#allocation20_spill]] }
  0x3b   : > { %s5035_s26 = scalar_lea.hbm %s6218_s3, 9216 }
  0x3c   : > { %p5036_p1 = scmp.ne.s32.totalorder %s6218_s3, %s5035_s26  ;;  %p5042_p6 = scmp.lt.u32.totalorder %s5035_s26, %s6218_s3 }
  0x3e   : > { %p5038_p2 = pnand %p5036_p1, %p5009_p12 }
  0x40   : > { %p5039_p4 = pneg %p5038_p2 }
  0x42   : > { %p5044_p8 = pnand %p5042_p6, %p5039_p4 }
  0x44   : > { %5047 = shalt.err (!%p5044_p8)
}
  0x45   : > { %s5048_s9 = scalar_lea.vmem %s5313_s12, 9216  ;;  %p5056_p3 = scmp.lt.s32.totalorder %s5313_s12, %s5313_s12 }
  0x46   : > { %p5049_p11 = scmp.ne.s32.totalorder %s5313_s12, %s5048_s9  ;;  %p5057_p5 = scmp.lt.s32.totalorder %s5048_s9, %s5048_s9 }
  0x48   : > { %p5051_p13 = pnand %p5049_p11, %p5009_p12  ;;  %p5058_p7 = por %p5057_p5, %p5056_p3 }
  0x4a   : > { %p5052_p0 = pneg %p5051_p13 }
  0x4c   : > { %p5059_p9 = pnand %p5058_p7, %p5052_p0 }
  0x4e   : > { %5062 = shalt.err (!%p5059_p9)
}
  0x4f   : > { %4662 = dma.hbm_to_vmem [thread:$0]  (!%p5309_p10), %s6218_s3, 9216, %s5313_s12, [#allocation8], %s6201_s11, %s6201_s11, %s6202_s13  }
  0x50   : > { %s31_s10 = sadd.s32 1, %s5187_s23  ;;  %s34_s14 = sadd.s32 1, %s5191_s24 }
  0x51   : > { %p32_p12 = scmp.ge.s32.totalorder %s31_s10, 2  ;;  %s43_s15 = sadd.s32 1, %s5175_s20 }
  0x52   : > { %p50_p1 = scmp.ne.s32.totalorder %s5175_s20, %s5171_s19  ;;  %p51_p2 = scmp.eq.s32.totalorder %s5195_s25, 0 }
  0x53   : > { %s6254_s10 = smov (%p32_p12, %s31_s10), 0  ;;  %s6256_s14 = smov (!%p32_p12, %s34_s14), %s5191_s24 }
  0x54   : > { %6219 = sst [smem:[#allocation17_spill]] %s6254_s10  ;;  %s39_s16 = ssub.s32 %s5187_s23, %s6254_s10 }
  0x55   : > { %p5379_p4 = por %p51_p2, %p50_p1  ;;  %p36_p10 = scmp.ge.s32.totalorder %s6256_s14, 2 }
  0x56   : > { %p6221_p6 = scmp.ne.s32.totalorder %s6211_s29, 0  ;;  %p4673_p11 = scmp.lt.s32.totalorder %s5195_s25, 4 }
  0x57   : > { %s224_s26 = sand.u32 1, %s5175_s20   ;;  %s6258_s14 = smov (%p36_p10, %s6256_s14), 0 }
  0x58   : > { %p5385_p8 = por %p6221_p6, %p50_p1  ;;  %6223 = sst [smem:[#allocation18_spill]] %s6258_s14 }
  0x59   : > { %s4640_s27 = smul.u32 80, %s224_s26  ;;  %s38_s8 = ssub.s32 %s5191_s24, %s6258_s14 }
  0x5a   : > { %s4641_s9 = smul.u32 20, %s5187_s23  ;;  %s40_s18 = sor.u32 %s39_s16, %s38_s8 }
  0x5b   : > { %p41_p13 = scmp.eq.s32.totalorder %s40_s18, 0  ;;  %s4642_s6 = smul.u32 40, %s5191_s24 }
  0x5c   : > { %s228_s11 = scalar_lea.vmem [#allocation4], %s4640_s27  ;;  %p5399_p0 = pnand %p4673_p11, %p5379_p4 }
  0x5d   : > { %s237_s13 = sshll.u32 %s228_s11, 4  ;;  %s234_s3 = sadd.s32 %s4642_s6, %s4641_s9  ;;  %s5406_s13 = int_to_ptr.vmem [resolvable:$true] %s237_s13 }
  0x5e   : > { %s5404_s1 = scalar_select %p41_p13, %s5175_s20, %s43_s15  }
  0x5f   : > { %s3983_s10 = sshll.u32 %s234_s3, 6  ;;  %s5413_s11 = scalar_lea.sflag [#allocation5], %s224_s26 }
  0x60   : > { %s5411_s16 = scalar_lea.hbm %s6189_s0, %s3983_s10  ;;  %p5065_p5 = pneg %p5399_p0 }
  0x61   : > { %s5063_s17 = scalar_lea.hbm %s5411_s16, 1280  ;;  %s5068_s23 = scalar_lea.hbm %s6189_s0, 5120 }
  0x62   : > { %p5064_p3 = scmp.ne.s32.totalorder %s5411_s16, %s5063_s17  ;;  %p5069_p12 = scmp.lt.u32.totalorder %s5411_s16, %s6189_s0 }
  0x63   : > { %p5070_p1 = scmp.lt.u32.totalorder %s5068_s23, %s5063_s17  ;;  %p5072_p4 = scmp.lt.u32.totalorder %s5063_s17, %s5411_s16 }
  0x64   : > { %p5066_p7 = pnand %p5065_p5, %p5064_p3 }
  0x65   : > { %p5071_p2 = por %p5070_p1, %p5069_p12 }
  0x66   : > { %p5067_p9 = pneg %p5066_p7 }
  0x67   : > { %p5073_p10 = por %p5072_p4, %p5071_p2 }
  0x69   : > { %p5074_p6 = pnand %p5073_p10, %p5067_p9 }
  0x6b   : > { %5077 = shalt.err (!%p5074_p6)
}
  0x6c   : > { %s5078_s26 = scalar_lea.vmem %s5406_s13, 1280  ;;  %s5201_s27 = smov [#allocation4]  }
  0x6d   : > { %p5079_p11 = scmp.ne.s32.totalorder %s5406_s13, %s5078_s26  ;;  %s5083_s8 = sshll.u32 %s5201_s27, 4  ;;  %s5084_s8 = int_to_ptr.vmem [resolvable:$false] %s5083_s8 }
  0x6e   : > { %s5085_s9 = scalar_lea.vmem %s5084_s8, 2560  ;;  %p5086_p7 = scmp.lt.s32.totalorder %s5406_s13, %s5084_s8 }
  0x6f   : > { %p5081_p13 = pnand %p5079_p11, %p5065_p5  ;;  %p5087_p12 = scmp.lt.s32.totalorder %s5085_s9, %s5078_s26 }
  0x71   : > { %p5082_p3 = pneg %p5081_p13  ;;  %p5088_p1 = por %p5087_p12, %p5086_p7 }
  0x73   : > { %p5089_p2 = pnand %p5088_p1, %p5082_p3 }
  0x75   : > { %5092 = shalt.err (!%p5089_p2)
}
  0x76   : > { %s6225_s18 = smov 4   ;;  %s6226_s6 = smov 64  }
  0x77   : > { %4666 = dma.hbm_to_vmem [thread:$0]  (!%p5399_p0), %s5411_s16, 1280, %s5406_s13, %s5413_s11, %s6226_s6, %s6226_s6, %s6225_s18  }
  0x78   : > { %p6227_p5 = scmp.ne.s32.totalorder %s6215_s7, 0 }
  0x79   : > { %s5447_s17 = sand.u32 (!%p6227_p5), 1, %s5171_s19   ;;  %p6228_p9 = scmp.ne.s32.totalorder (!%p6227_p5), %s6212_s30, 0 }
  0x7a   : > { %249 = sbr.rel (%p6227_p5) target bundleno = 941 (0x3ad), region = 40  ;;  %s252_s15 = scalar_lea.sflag (!%p6227_p5), [#allocation5], %s5447_s17 }
  0x7b   : > { %s4643_s3 = smul.u32 (!%p6227_p5), 80, %s5447_s17 }
  0x7d   : > { %s5451_s23 = scalar_lea.vmem (!%p6227_p5), [#allocation4], %s4643_s3 }
  0x81   : > { %5154 = dma.done.wait (%p6228_p9), %s252_s15, 1280  }
  0x82   : > { %5156 = vsyncadd (%p6228_p9), %s252_s15, 4294966016  ;;  %p6229_p0 = scmp.ne.s32.totalorder %s6210_s28, 0 }
  0x84   : > { %5158 = dma.done.wait (%p6229_p0), [#allocation8], 10240  }
  0x85   : > { %5160 = vsyncadd (%p6229_p0), [#allocation8], 4294957056  ;;  %s3987_s7 = sshll.u32 %s5447_s17, 7  ;;  %v4749_v0 = vld [vmem:[#allocation7] sm:$0xff]   ;;  %v4750_v1 = vld [vmem:[#allocation7 + $0x8] sm:$0xff]   ;;  %vm696_vm0 = vcmask 1040384  }
  0x86   : > { %4572 = vmatprep.subr.bf16.mxu0 %v4749_v0  ;;  %v4751_v2 = vld [vmem:[#allocation7 + $0x10] sm:$0xff]   ;;  %v4752_v3 = vld [vmem:[#allocation7 + $0x18] sm:$0xff]   ;;  %v4753_v5 = vld [vmem:[#allocation7 + $0x20] sm:$0xff]   ;;  %vm697_vm1 = vsmask.f32 256  ;;  %vm1023_vm5 = vcmask 1043456  }
  0x87   : > { %4573 = vmatpush3.bf16.msra.mxu0 %v4749_v0  ;;  %v4757_v4 = vld [vmem:[%s5451_s23] sm:$0xff]   ;;  %v4754_v6 = vld [vmem:[#allocation7 + $0x28] sm:$0xff]   ;;  %v4756_v8 = vld [vmem:[#allocation7 + $0x38] sm:$0xff]   ;;  %vm729_vm3 = vsmask.f32 7938  ;;  %s5718_s13 = scalar_lea.vmem [#allocation10], %s3987_s7 }
  0x88   : > { %4574 = vmatprep.subr.bf16.mxu0 %v4750_v1  ;;  %4588 = vmatprep.mubr.bf16.mxu0 %v4757_v4  ;;  %v4755_v7 = vld [vmem:[#allocation7 + $0x30] sm:$0xff]   ;;  %v4758_v9 = vld [vmem:[%s5451_s23 + $0x8] sm:$0xff]   ;;  %v4760_v11 = vld [vmem:[%s5451_s23 + $0x18] sm:$0xff]   ;;  %vm821_vm6 = vsmask.f32 4368  ;;  %p4027_p4 = scmp.ne.s32.totalorder %s5179_s21, 0 }
  0x89   : > { %v4759_v10 = vld [vmem:[%s5451_s23 + $0x10] sm:$0xff]   ;;  %v4761_v12 = vld [vmem:[%s5451_s23 + $0x20] sm:$0xff]   ;;  %v4762_v13 = vld [vmem:[%s5451_s23 + $0x28] sm:$0xff]  }
  0x8a   : > { %v4763_v14 = vld [vmem:[%s5451_s23 + $0x30] sm:$0xff]   ;;  %v4764_v15 = vld [vmem:[%s5451_s23 + $0x38] sm:$0xff]   ;;  %v4765_v16 = vld [vmem:[%s5451_s23 + $0x40] sm:$0xff]  }
  0x8b   : > { %4575 = vmatpush3.bf16.msra.mxu0 %v4750_v1  ;;  %v4766_v17 = vld [vmem:[%s5451_s23 + $0x48] sm:$0xff]   ;;  %vm5473_vm2 = vmand %vm696_vm0, %vm697_vm1  ;;  %v702_v19 = vld [vmem:[#allocation2 + $0xc] sm:$0x1] }
  0x8c   : > { %4576 = vmatprep.subr.bf16.mxu0 %v4751_v2  ;;  %v703_v20 = vsel %vm5473_vm2, 0, %v702_v19  ;;  %vm5480_vm4 = vmand %vm696_vm0, %vm729_vm3  ;;  %v699_v22 = vld [vmem:[#allocation2] sm:$0x1]  ;;  %v734_v24 = vld [vmem:[#allocation2 + $0x14] sm:$0x1] }
  0x8d   : > { %704 = vst [vmem:[#allocation2 + $0xc] sm:$0x1] %v703_v20  ;;  %v700_v23 = vsel %vm5473_vm2, 0, %v699_v22  ;;  %v735_v25 = vsel %vm5480_vm4, 0, %v734_v24  ;;  %v731_v26 = vld [vmem:[#allocation2 + $0x8] sm:$0x1]  ;;  %vm5606_vm7 = vmand %vm1023_vm5, %vm729_vm3 }
  0x8e   : > { %701 = vst [vmem:[#allocation2] sm:$0x1] %v700_v23  ;;  %736 = vst [vmem:[#allocation2 + $0x14] sm:$0x1] %v735_v25  ;;  %v732_v27 = vsel %vm5480_vm4, 0, %v731_v26 }
  0x8f   : > { %4577 = vmatpush3.bf16.msra.mxu0 %v4751_v2  ;;  %733 = vst [vmem:[#allocation2 + $0x8] sm:$0x1] %v732_v27  ;;  %v708_v28 = vld [vmem:[#allocation2 + $0x24] sm:$0x1]  ;;  %v705_v30 = vld [vmem:[#allocation2 + $0x18] sm:$0x1]  ;;  %vm5613_vm8 = vmor %vm697_vm1, %vm821_vm6 }
  0x90   : > { %4578 = vmatprep.subr.bf16.mxu0 %v4752_v3  ;;  %v709_v29 = vsel %vm5473_vm2, 0, %v708_v28  ;;  %v706_v31 = vsel %vm5473_vm2, 0, %v705_v30  ;;  %v740_v32 = vld [vmem:[#allocation2 + $0x2c] sm:$0x1]  ;;  %v737_v34 = vld [vmem:[#allocation2 + $0x20] sm:$0x1] }
  0x91   : > { %710 = vst [vmem:[#allocation2 + $0x24] sm:$0x1] %v709_v29  ;;  %707 = vst [vmem:[#allocation2 + $0x18] sm:$0x1] %v706_v31  ;;  %v741_v33 = vsel %vm5480_vm4, 0, %v740_v32  ;;  %v738_v35 = vsel %vm5480_vm4, 0, %v737_v34 }
  0x92   : > { %742 = vst [vmem:[#allocation2 + $0x2c] sm:$0x1] %v741_v33  ;;  %739 = vst [vmem:[#allocation2 + $0x20] sm:$0x1] %v738_v35  ;;  %v714_v36 = vld [vmem:[#allocation2 + $0x3c] sm:$0x1] }
  0x93   : > { %4579 = vmatpush3.bf16.msra.mxu0 %v4752_v3  ;;  %v715_v37 = vsel %vm5473_vm2, 0, %v714_v36  ;;  %v711_v38 = vld [vmem:[#allocation2 + $0x30] sm:$0x1]  ;;  %v746_v40 = vld [vmem:[#allocation2 + $0x44] sm:$0x1] }
  0x94   : > { %4580 = vmatprep.subr.bf16.mxu0 %v4753_v5  ;;  %716 = vst [vmem:[#allocation2 + $0x3c] sm:$0x1] %v715_v37  ;;  %v712_v39 = vsel %vm5473_vm2, 0, %v711_v38  ;;  %v747_v41 = vsel %vm5480_vm4, 0, %v746_v40  ;;  %v743_v42 = vld [vmem:[#allocation2 + $0x38] sm:$0x1] }
  0x95   : > { %713 = vst [vmem:[#allocation2 + $0x30] sm:$0x1] %v712_v39  ;;  %748 = vst [vmem:[#allocation2 + $0x44] sm:$0x1] %v747_v41  ;;  %v744_v43 = vsel %vm5480_vm4, 0, %v743_v42 }
  0x96   : > { %745 = vst [vmem:[#allocation2 + $0x38] sm:$0x1] %v744_v43  ;;  %v720_v44 = vld [vmem:[#allocation2 + $0x54] sm:$0x1]  ;;  %v717_v46 = vld [vmem:[#allocation2 + $0x48] sm:$0x1] }
  0x97   : > { %4581 = vmatpush3.bf16.msra.mxu0 %v4753_v5  ;;  %v721_v45 = vsel %vm5473_vm2, 0, %v720_v44  ;;  %v718_v47 = vsel %vm5473_vm2, 0, %v717_v46  ;;  %v752_v48 = vld [vmem:[#allocation2 + $0x5c] sm:$0x1]  ;;  %v749_v50 = vld [vmem:[#allocation2 + $0x50] sm:$0x1] }
  0x98   : > { %4582 = vmatprep.subr.bf16.mxu0 %v4754_v6  ;;  %722 = vst [vmem:[#allocation2 + $0x54] sm:$0x1] %v721_v45  ;;  %719 = vst [vmem:[#allocation2 + $0x48] sm:$0x1] %v718_v47  ;;  %v753_v49 = vsel %vm5480_vm4, 0, %v752_v48  ;;  %v750_v51 = vsel %vm5480_vm4, 0, %v749_v50 }
  0x99   : > { %754 = vst [vmem:[#allocation2 + $0x5c] sm:$0x1] %v753_v49  ;;  %751 = vst [vmem:[#allocation2 + $0x50] sm:$0x1] %v750_v51  ;;  %v726_v52 = vld [vmem:[#allocation2 + $0x6c] sm:$0x1] }
  0x9a   : > { %v727_v53 = vsel %vm5473_vm2, 0, %v726_v52  ;;  %v723_v54 = vld [vmem:[#allocation2 + $0x60] sm:$0x1]  ;;  %v758_v56 = vld [vmem:[#allocation2 + $0x74] sm:$0x1] }
  0x9b   : > { %4583 = vmatpush3.bf16.msra.mxu0 %v4754_v6  ;;  %728 = vst [vmem:[#allocation2 + $0x6c] sm:$0x1] %v727_v53  ;;  %v724_v55 = vsel %vm5473_vm2, 0, %v723_v54  ;;  %v759_v57 = vsel %vm5480_vm4, 0, %v758_v56  ;;  %v755_v58 = vld [vmem:[#allocation2 + $0x68] sm:$0x1] }
  0x9c   : > { %4584 = vmatprep.subr.bf16.mxu0 %v4755_v7  ;;  %725 = vst [vmem:[#allocation2 + $0x60] sm:$0x1] %v724_v55  ;;  %760 = vst [vmem:[#allocation2 + $0x74] sm:$0x1] %v759_v57  ;;  %v756_v59 = vsel %vm5480_vm4, 0, %v755_v58 }
  0x9d   : > { %757 = vst [vmem:[#allocation2 + $0x68] sm:$0x1] %v756_v59  ;;  %v5525_v60 = vld [vmem:[%s6191_s2] ss:$0 sm:$0xff] }
  0x9f   : > { %4585 = vmatpush3.bf16.msra.mxu0 %v4755_v7 }
  0xa0   : > { %4586 = vmatprep.subr.bf16.mxu0 %v4756_v8 }
  0xa3   : > { %4587 = vmatpush3.bf16.msra.mxu0 %v4756_v8 }
  0xa6   : > { %4589 = vmatmul.mubr.bf16.vlgmr.msra.gmra.mrb[0].mxu0 %v4758_v9 }
  0xa7   : > { %4592 = vmatprep.mubr.bf16.mxu0 %v4759_v10 }
  0xae   : > { %4593 = vmatmul.mubr.bf16.gmra.mrb[4].mxu0 %v4760_v11 }
  0xaf   : > { %4596 = vmatprep.mubr.bf16.mxu0 %v4761_v12 }
  0xb6   : > { %4597 = vmatmul.mubr.bf16.gmra.mrb[8].mxu0 %v4762_v13 }
  0xb7   : > { %4600 = vmatprep.mubr.bf16.mxu0 %v4763_v14 }
  0xbe   : > { %4601 = vmatmul.mubr.bf16.gmra.mrb[12].mxu0 %v4764_v15 }
  0xbf   : > { %4604 = vmatprep.mubr.bf16.mxu0 %v4765_v16 }
  0xc6   : > { %4605 = vmatmul.mubr.bf16.gmra.mrb[16].mxu0 %v4766_v17 }
 0x179   : > { %v4590_v61 = vpop.f32.mrb[0].mxu0 }
 0x17a   : > { %v5528_v62 = vadd.f32 %v4590_v61, %v5525_v60  ;;  %v477_v63 = vpop.f32.mrb[1].mxu0 }
 0x17b   : > { %v5531_v0 = vadd.f32 %v5525_v60, %v477_v63  ;;  %v4591_v1 = vpop.f32.mrb[2].mxu0 }
 0x17c   : > { %v558_v2 = vsub.f32 0.0, %v5528_v62  ;;  %v5535_v3 = vadd.f32 %v4591_v1, %v5525_v60  ;;  %v480_v4 = vpop.f32.mrb[3].mxu0 }
 0x17d   : > { %v556_v5 = vsub.f32 0.0, %v5531_v0  ;;  %v5539_v6 = vadd.f32 %v5525_v60, %v480_v4 }
 0x17e   : > { %v580_v7 = vmul.f32 1.442695, %v558_v2  ;;  %v559_v8 = vsub.f32 0.0, %v5535_v3 }
 0x17f   : > { %v576_v9 = vmul.f32 1.442695, %v556_v5  ;;  %v557_v10 = vsub.f32 0.0, %v5539_v6 }
 0x180   : > { %4767 = vpow2.f32 %v580_v7  ;;  %v582_v11 = vmul.f32 1.442695, %v559_v8 }
 0x181   : > { %4769 = vpow2.f32 %v576_v9  ;;  %v578_v12 = vmul.f32 1.442695, %v557_v10  ;;  %v4594_v13 = vpop.f32.mrb[4].mxu0 }
 0x182   : > { %4771 = vpow2.f32 %v582_v11  ;;  %v5544_v14 = vadd.f32 %v4594_v13, %v5525_v60  ;;  %v493_v15 = vpop.f32.mrb[5].mxu0 }
 0x183   : > { %4773 = vpow2.f32 %v578_v12  ;;  %v5547_v16 = vadd.f32 %v5525_v60, %v493_v15  ;;  %v4595_v17 = vpop.f32.mrb[6].mxu0 }
 0x184   : > { %v562_v19 = vsub.f32 0.0, %v5544_v14  ;;  %v5551_v20 = vadd.f32 %v4595_v17, %v5525_v60  ;;  %v496_v21 = vpop.f32.mrb[7].mxu0 }
 0x185   : > { %v560_v22 = vsub.f32 0.0, %v5547_v16  ;;  %v5555_v23 = vadd.f32 %v5525_v60, %v496_v21 }
 0x186   : > { %v588_v24 = vmul.f32 1.442695, %v562_v19  ;;  %v563_v25 = vsub.f32 0.0, %v5551_v20 }
 0x187   : > { %v584_v26 = vmul.f32 1.442695, %v560_v22  ;;  %v561_v27 = vsub.f32 0.0, %v5555_v23 }
 0x188   : > { %4775 = vpow2.f32 %v588_v24  ;;  %v590_v28 = vmul.f32 1.442695, %v563_v25 }
 0x189   : > { %4777 = vpow2.f32 %v584_v26  ;;  %v586_v29 = vmul.f32 1.442695, %v561_v27  ;;  %v4598_v30 = vpop.f32.mrb[8].mxu0 }
 0x18a   : > { %v4768_v31 = vpop.eup %4767  ;;  %4779 = vpow2.f32 %v590_v28  ;;  %v5560_v32 = vadd.f32 %v4598_v30, %v5525_v60  ;;  %v509_v33 = vpop.f32.mrb[9].mxu0 }
 0x18b   : > { %v4770_v34 = vpop.eup %4769  ;;  %v618_v35 = vadd.f32 1.0, %v4768_v31  ;;  %4781 = vpow2.f32 %v586_v29  ;;  %v5563_v36 = vadd.f32 %v5525_v60, %v509_v33  ;;  %v4599_v37 = vpop.f32.mrb[10].mxu0 }
 0x18c   : > { %v4772_v38 = vpop.eup %4771  ;;  %v616_v39 = vadd.f32 1.0, %v4770_v34  ;;  %v566_v40 = vsub.f32 0.0, %v5560_v32  ;;  %v5567_v41 = vadd.f32 %v4599_v37, %v5525_v60  ;;  %v512_v42 = vpop.f32.mrb[11].mxu0 }
 0x18d   : > { %v4774_v43 = vpop.eup %4773  ;;  %4783 = vrcp.f32 %v618_v35  ;;  %v619_v44 = vadd.f32 1.0, %v4772_v38  ;;  %v564_v45 = vsub.f32 0.0, %v5563_v36  ;;  %v5571_v46 = vadd.f32 %v5525_v60, %v512_v42 }
 0x18e   : > { %4785 = vrcp.f32 %v616_v39  ;;  %v617_v47 = vadd.f32 1.0, %v4774_v43  ;;  %v596_v48 = vmul.f32 1.442695, %v566_v40  ;;  %v567_v49 = vsub.f32 0.0, %v5567_v41 }
 0x18f   : > { %4787 = vrcp.f32 %v619_v44  ;;  %v592_v50 = vmul.f32 1.442695, %v564_v45  ;;  %v565_v51 = vsub.f32 0.0, %v5571_v46 }
 0x190   : > { %4789 = vrcp.f32 %v617_v47  ;;  %v598_v52 = vmul.f32 1.442695, %v567_v49 }
 0x191   : > { %4791 = vpow2.f32 %v596_v48  ;;  %v594_v53 = vmul.f32 1.442695, %v565_v51  ;;  %v4602_v54 = vpop.f32.mrb[12].mxu0 }
 0x192   : > { %v4776_v55 = vpop.eup %4775  ;;  %4793 = vpow2.f32 %v592_v50  ;;  %v5576_v56 = vadd.f32 %v4602_v54, %v5525_v60  ;;  %v525_v57 = vpop.f32.mrb[13].mxu0 }
 0x193   : > { %v4778_v58 = vpop.eup %4777  ;;  %v622_v59 = vadd.f32 1.0, %v4776_v55  ;;  %4795 = vpow2.f32 %v598_v52  ;;  %v5579_v61 = vadd.f32 %v5525_v60, %v525_v57  ;;  %v4603_v63 = vpop.f32.mrb[14].mxu0  ;;  %v1032_v57 = vld [vmem:[#allocation2 + $0xc] sm:$0xf]  ;;  %v5202_v55 = vmov (!%p4027_p4), 0  }
 0x194   : > { %v4780_v1 = vpop.eup %4779  ;;  %v620_v2 = vadd.f32 1.0, %v4778_v58  ;;  %4797 = vpow2.f32 %v594_v53  ;;  %v570_v4 = vsub.f32 0.0, %v5576_v56  ;;  %v5583_v5 = vadd.f32 %v4603_v63, %v5525_v60  ;;  %v528_v7 = vpop.f32.mrb[15].mxu0 }
 0x195   : > { %v4782_v8 = vpop.eup %4781  ;;  %4799 = vrcp.f32 %v622_v59  ;;  %v623_v9 = vadd.f32 1.0, %v4780_v1  ;;  %v568_v10 = vsub.f32 0.0, %v5579_v61  ;;  %v5587_v11 = vadd.f32 %v5525_v60, %v528_v7  ;;  %v1025_v7 = vld [vmem:[#allocation2] sm:$0xf] }
 0x196   : > { %4801 = vrcp.f32 %v620_v2  ;;  %v621_v12 = vadd.f32 1.0, %v4782_v8  ;;  %v604_v13 = vmul.f32 1.442695, %v570_v4  ;;  %v571_v15 = vsub.f32 0.0, %v5583_v5 }
 0x197   : > { %v4784_v17 = vpop.eup %4783  ;;  %4803 = vrcp.f32 %v623_v9  ;;  %v600_v19 = vmul.f32 1.442695, %v568_v10  ;;  %v569_v21 = vsub.f32 0.0, %v5587_v11 }
 0x198   : > { %v4786_v22 = vpop.eup %4785  ;;  %v678_v24 = vmul.f32 %v4784_v17, %v5528_v62  ;;  %4805 = vrcp.f32 %v621_v12  ;;  %v606_v25 = vmul.f32 1.442695, %v571_v15  ;;  %v1036_v17 = vld [vmem:[#allocation2 + $0x14] sm:$0x1] }
 0x199   : > { %v4788_v26 = vpop.eup %4787  ;;  %v676_v27 = vmul.f32 %v4786_v22, %v5531_v0  ;;  %4807 = vpow2.f32 %v604_v13  ;;  %v4606_v28 = vpop.f32.mrb[16].mxu0  ;;  %v5594_v33 = vmul.f32 1.442695, %v569_v21 }
 0x19a   : > { %v4790_v29 = vpop.eup %4789  ;;  %v4223_v30 = vpack.c.bf16 %v678_v24, %v678_v24  ;;  %v679_v31 = vmul.f32 %v4788_v26, %v5535_v3  ;;  %4809 = vpow2.f32 %v600_v19  ;;  %v541_v34 = vpop.f32.mrb[17].mxu0  ;;  %v5598_v38 = vadd.f32 %v4606_v28, %v5525_v60 }
 0x19b   : > { %v4792_v35 = vpop.eup %4791  ;;  %v4221_v37 = vpack.c.bf16 %v676_v27, %v676_v27  ;;  %v677_v62 = vmul.f32 %v4790_v29, %v5539_v6  ;;  %4811 = vpow2.f32 %v606_v25  ;;  %v5600_v0 = vpop.f32.mrb[18].mxu0 }
 0x19c   : > { %v4794_v39 = vpop.eup %4793  ;;  %v841_v40 = vshrl.u32 %v4223_v30, 16  ;;  %v844_v42 = vshll.u32 %v4223_v30, 16  ;;  %v4224_v43 = vpack.c.bf16 %v679_v31, %v679_v31  ;;  %v626_v44 = vadd.f32 1.0, %v4792_v35  ;;  %v5602_v3 = vpop.f32.mrb[19].mxu0 }
 0x19d   : > { %v4796_v45 = vpop.eup %4795  ;;  %v824_v47 = vshrl.u32 %v4221_v37, 16  ;;  %v827_v48 = vshll.u32 %v4221_v37, 16  ;;  %v4222_v49 = vpack.c.bf16 %v677_v62, %v677_v62  ;;  %v624_v50 = vadd.f32 1.0, %v4794_v39 }
 0x19e   : > { %v4798_v51 = vpop.eup %4797  ;;  %v843_v6 = vrot.slane %v841_v40, 7  ;;  %v849_v52 = vshrl.u32 %v4224_v43, 16  ;;  %v852_v53 = vshll.u32 %v4224_v43, 16  ;;  %4813 = vrcp.f32 %v626_v44 }
 0x19f   : > { %v4800_v54 = vpop.eup %4799  ;;  %v826_v58 = vrot.slane %v824_v47, 7  ;;  %v832_v59 = vshrl.u32 %v4222_v49, 16  ;;  %v835_v63 = vshll.u32 %v4222_v49, 16  ;;  %4815 = vrcp.f32 %v624_v50 }
 0x1a0   : > { %v4802_v1 = vpop.eup %4801  ;;  %v846_v2 = vor.u32 %v844_v42, %v843_v6  ;;  %v847_v4 = vrot.slane %v843_v6, 4  ;;  %v851_v8 = vrot.slane %v849_v52, 7  ;;  %v682_v9 = vmul.f32 %v4800_v54, %v5544_v14  ;;  %v1029_v14 = vld [vmem:[#allocation2 + $0x8] sm:$0x1]  ;;  %v1046_v52 = vld [vmem:[#allocation2 + $0x24] sm:$0xf] }
 0x1a1   : > { %v4804_v10 = vpop.eup %4803  ;;  %v829_v12 = vor.u32 %v827_v48, %v826_v58  ;;  %v830_v13 = vrot.slane %v826_v58, 4  ;;  %v834_v19 = vrot.slane %v832_v59, 7  ;;  %v680_v21 = vmul.f32 %v4802_v1, %v5547_v16  ;;  %v1039_v1 = vld [vmem:[#allocation2 + $0x18] sm:$0xf] }
 0x1a2   : > { %v4806_v22 = vpop.eup %4805  ;;  %v1033_v24 = vsel %vm5606_vm7, %v846_v2, %v1032_v57  ;;  %v854_v25 = vor.u32 %v852_v53, %v851_v8  ;;  %v856_v26 = vrot.slane %v851_v8, 4  ;;  %v4227_v27 = vpack.c.bf16 %v682_v9, %v682_v9 }
 0x1a3   : > { %v4808_v28 = vpop.eup %4807  ;;  %1034 = vst [vmem:[#allocation2 + $0xc] sm:$0xf] %v1033_v24  ;;  %v1026_v29 = vsel %vm5606_vm7, %v829_v12, %v1025_v7  ;;  %v837_v30 = vor.u32 %v835_v63, %v834_v19  ;;  %v839_v31 = vrot.slane %v834_v19, 4  ;;  %v4225_v35 = vpack.c.bf16 %v680_v21, %v680_v21 }
 0x1a4   : > { %v4810_v37 = vpop.eup %4809  ;;  %1027 = vst [vmem:[#allocation2] sm:$0xf] %v1026_v29  ;;  %v855_v16 = vsel %vm5613_vm8, %v847_v4, %v854_v25  ;;  %v1037_v62 = vsel %vm5473_vm2, %v856_v26, %v1036_v17  ;;  %v875_v39 = vshrl.u32 %v4227_v27, 16  ;;  %v5627_v40 = vadd.f32 %v5525_v60, %v541_v34  ;;  %v1043_v26 = vld [vmem:[#allocation2 + $0x20] sm:$0x1] }
 0x1a5   : > { %v4812_v42 = vpop.eup %4811  ;;  %1035 = vst [vmem:[#allocation2 + $0x10] sm:$0xf] %v855_v16  ;;  %1038 = vst [vmem:[#allocation2 + $0x14] sm:$0x1] %v1037_v62  ;;  %v838_v43 = vsel %vm5613_vm8, %v830_v13, %v837_v30  ;;  %v1030_v44 = vsel %vm5473_vm2, %v839_v31, %v1029_v14  ;;  %v878_v47 = vshll.u32 %v4227_v27, 16  ;;  %v858_v48 = vshrl.u32 %v4225_v35, 16 }
 0x1a6   : > { %1028 = vst [vmem:[#allocation2 + $0x4] sm:$0xf] %v838_v43  ;;  %1031 = vst [vmem:[#allocation2 + $0x8] sm:$0x1] %v1030_v44  ;;  %v877_v49 = vrot.slane %v875_v39, 7  ;;  %v683_v50 = vmul.f32 %v4804_v10, %v5551_v20  ;;  %v681_v6 = vmul.f32 %v4806_v22, %v5555_v23  ;;  %v627_v34 = vadd.f32 1.0, %v4796_v45 }
 0x1a7   : > { %v860_v53 = vrot.slane %v858_v48, 7  ;;  %v861_v54 = vshll.u32 %v4225_v35, 16  ;;  %v625_v57 = vadd.f32 1.0, %v4798_v51  ;;  %v630_v58 = vadd.f32 1.0, %v4808_v28  ;;  %v1060_v44 = vld [vmem:[#allocation2 + $0x3c] sm:$0xf] }
 0x1a8   : > { %v4814_v59 = vpop.eup %4813  ;;  %v880_v63 = vor.u32 %v878_v47, %v877_v49  ;;  %v4228_v2 = vpack.c.bf16 %v683_v50, %v683_v50  ;;  %v4226_v4 = vpack.c.bf16 %v681_v6, %v681_v6  ;;  %v628_v7 = vadd.f32 1.0, %v4810_v37  ;;  %v1053_v50 = vld [vmem:[#allocation2 + $0x30] sm:$0xf]  ;;  %1099 = vst [vmem:[#allocation2] sm:$0xf] (!%p4027_p4), %v5202_v55 }
 0x1a9   : > { %v4816_v8 = vpop.eup %4815  ;;  %v881_v9 = vrot.slane %v877_v49, 4  ;;  %v863_v12 = vor.u32 %v861_v54, %v860_v53  ;;  %v686_v13 = vmul.f32 %v4814_v59, %v5560_v32  ;;  %4817 = vrcp.f32 %v627_v34  ;;  %v1050_v32 = vld [vmem:[#allocation2 + $0x2c] sm:$0x1]  ;;  %1100 = vst [vmem:[#allocation2 + $0x4] sm:$0xf] (!%p4027_p4), %v5202_v55 }
 0x1aa   : > { %v1047_v20 = vsel %vm5606_vm7, %v880_v63, %v1046_v52  ;;  %v864_v23 = vrot.slane %v860_v53, 4  ;;  %v883_v45 = vshrl.u32 %v4228_v2, 16  ;;  %v866_v10 = vshrl.u32 %v4226_v4, 16  ;;  %1101 = vst [vmem:[#allocation2 + $0x8] sm:$0x1] (!%p4027_p4), %v5202_v55 }
 0x1ab   : > { %1048 = vst [vmem:[#allocation2 + $0x24] sm:$0xf] %v1047_v20  ;;  %v1040_v51 = vsel %vm5606_vm7, %v863_v12, %v1039_v1  ;;  %v886_v17 = vshll.u32 %v4228_v2, 16  ;;  %v4231_v19 = vpack.c.bf16 %v686_v13, %v686_v13  ;;  %v684_v21 = vmul.f32 %v4816_v8, %v5563_v36 }
 0x1ac   : > { %1041 = vst [vmem:[#allocation2 + $0x18] sm:$0xf] %v1040_v51  ;;  %v885_v22 = vrot.slane %v883_v45, 7  ;;  %v868_v24 = vrot.slane %v866_v10, 7  ;;  %v869_v25 = vshll.u32 %v4226_v4, 16  ;;  %4819 = vrcp.f32 %v625_v57 }
 0x1ad   : > { %v909_v14 = vshrl.u32 %v4231_v19, 16  ;;  %v4229_v27 = vpack.c.bf16 %v684_v21, %v684_v21  ;;  %4821 = vrcp.f32 %v630_v58  ;;  %v631_v28 = vadd.f32 1.0, %v4812_v42  ;;  %v1064_v21 = vld [vmem:[#allocation2 + $0x44] sm:$0x1] }
 0x1ae   : > { %v888_v29 = vor.u32 %v886_v17, %v885_v22  ;;  %v890_v30 = vrot.slane %v885_v22, 4  ;;  %v871_v31 = vor.u32 %v869_v25, %v868_v24  ;;  %v873_v35 = vrot.slane %v868_v24, 4 }
 0x1af   : > { %v5641_v37 = vrot.slane %v909_v14, 7  ;;  %v912_v16 = vshll.u32 %v4231_v19, 16  ;;  %v892_v62 = vshrl.u32 %v4229_v27, 16  ;;  %4823 = vrcp.f32 %v628_v7 }
 0x1b0   : > { %v889_v36 = vsel %vm5613_vm8, %v881_v9, %v888_v29  ;;  %v1051_v39 = vsel %vm5473_vm2, %v890_v30, %v1050_v32  ;;  %v872_v43 = vsel %vm5613_vm8, %v864_v23, %v871_v31  ;;  %v1044_v42 = vsel %vm5473_vm2, %v873_v35, %v1043_v26  ;;  %v1057_v30 = vld [vmem:[#allocation2 + $0x38] sm:$0x1] }
 0x1b1   : > { %1049 = vst [vmem:[#allocation2 + $0x28] sm:$0xf] %v889_v36  ;;  %1052 = vst [vmem:[#allocation2 + $0x2c] sm:$0x1] %v1051_v39  ;;  %v914_v47 = vor.u32 %v912_v16, %v5641_v37  ;;  %v5652_v48 = vrot.slane %v892_v62, 7  ;;  %v895_v49 = vshll.u32 %v4229_v27, 16  ;;  %4825 = vrcp.f32 %v631_v28 }
 0x1b2   : > { %1042 = vst [vmem:[#allocation2 + $0x1c] sm:$0xf] %v872_v43  ;;  %1045 = vst [vmem:[#allocation2 + $0x20] sm:$0x1] %v1044_v42  ;;  %4827 = vpow2.f32 %v5594_v33  ;;  %v574_v6 = vsub.f32 0.0, %v5598_v38  ;;  %v572_v34 = vsub.f32 0.0, %v5627_v40  ;;  %v5659_v52 = vadd.f32 %v5600_v0, %v5525_v60 }
 0x1b3   : > { %v4818_v53 = vpop.eup %4817  ;;  %v1061_v54 = vsel %vm5606_vm7, %v914_v47, %v1060_v44  ;;  %v897_v57 = vor.u32 %v895_v49, %v5652_v48  ;;  %v5666_v58 = vadd.f32 %v5525_v60, %v5602_v3  ;;  %v915_v19 = vrot.slane %v5641_v37, 4  ;;  %v1074_v36 = vld [vmem:[#allocation2 + $0x54] sm:$0xf] }
 0x1b4   : > { %1062 = vst [vmem:[#allocation2 + $0x3c] sm:$0xf] %v1061_v54  ;;  %v687_v33 = vmul.f32 %v4818_v53, %v5567_v41  ;;  %v612_v59 = vmul.f32 1.442695, %v574_v6  ;;  %v608_v63 = vmul.f32 1.442695, %v572_v34 }
 0x1b5   : > { %v575_v1 = vsub.f32 0.0, %v5659_v52  ;;  %v1054_v0 = vsel %vm5606_vm7, %v897_v57, %v1053_v50  ;;  %v573_v2 = vsub.f32 0.0, %v5666_v58  ;;  %v898_v37 = vrot.slane %v5652_v48, 4  ;;  %v1067_v54 = vld [vmem:[#allocation2 + $0x48] sm:$0xf] }
 0x1b6   : > { %v4820_v4 = vpop.eup %4819  ;;  %1055 = vst [vmem:[#allocation2 + $0x30] sm:$0xf] %v1054_v0  ;;  %v4232_v7 = vpack.c.bf16 %v687_v33, %v687_v33  ;;  %4829 = vpow2.f32 %v612_v59 }
 0x1b7   : > { %v614_v8 = vmul.f32 1.442695, %v575_v1  ;;  %v4822_v9 = vpop.eup %4821  ;;  %v685_v60 = vmul.f32 %v4820_v4, %v5571_v46  ;;  %4831 = vpow2.f32 %v608_v63  ;;  %v610_v3 = vmul.f32 1.442695, %v573_v2 }
 0x1b8   : > { %v917_v41 = vshrl.u32 %v4232_v7, 16  ;;  %v690_v12 = vmul.f32 %v4822_v9, %v5576_v56  ;;  %v920_v45 = vshll.u32 %v4232_v7, 16 }
 0x1b9   : > { %4833 = vpow2.f32 %v614_v8  ;;  %v4824_v13 = vpop.eup %4823  ;;  %v4230_v20 = vpack.c.bf16 %v685_v60, %v685_v60  ;;  %v1078_v8 = vld [vmem:[#allocation2 + $0x5c] sm:$0x1] }
 0x1ba   : > { %4835 = vpow2.f32 %v610_v3  ;;  %v919_v23 = vrot.slane %v917_v41, 7  ;;  %v4235_v10 = vpack.c.bf16 %v690_v12, %v690_v12  ;;  %v688_v51 = vmul.f32 %v4824_v13, %v5579_v61 }
 0x1bb   : > { %v4826_v17 = vpop.eup %4825  ;;  %v900_v22 = vshrl.u32 %v4230_v20, 16  ;;  %v903_v32 = vshll.u32 %v4230_v20, 16 }
 0x1bc   : > { %v4828_v46 = vpop.eup %4827  ;;  %v922_v24 = vor.u32 %v920_v45, %v919_v23  ;;  %v924_v25 = vrot.slane %v919_v23, 4  ;;  %v943_v26 = vshrl.u32 %v4235_v10, 16  ;;  %v4233_v14 = vpack.c.bf16 %v688_v51, %v688_v51 }
 0x1bd   : > { %v902_v56 = vrot.slane %v900_v22, 7  ;;  %v691_v27 = vmul.f32 %v4826_v17, %v5583_v5  ;;  %v629_v28 = vadd.f32 1.0, %v4828_v46  ;;  %v946_v35 = vshll.u32 %v4235_v10, 16 }
 0x1be   : > { %v923_v29 = vsel %vm5613_vm8, %v915_v19, %v922_v24  ;;  %v1065_v61 = vsel %vm5473_vm2, %v924_v25, %v1064_v21  ;;  %v945_v31 = vrot.slane %v943_v26, 7  ;;  %v926_v39 = vshrl.u32 %v4233_v14, 16 }
 0x1bf   : > { %1063 = vst [vmem:[#allocation2 + $0x40] sm:$0xf] %v923_v29  ;;  %1066 = vst [vmem:[#allocation2 + $0x44] sm:$0x1] %v1065_v61  ;;  %v905_v16 = vor.u32 %v903_v32, %v902_v56  ;;  %v907_v62 = vrot.slane %v902_v56, 4  ;;  %v929_v42 = vshll.u32 %v4233_v14, 16  ;;  %v4236_v44 = vpack.c.bf16 %v691_v27, %v691_v27 }
 0x1c0   : > { %v4830_v43 = vpop.eup %4829  ;;  %v948_v5 = vor.u32 %v946_v35, %v945_v31  ;;  %4837 = vrcp.f32 %v629_v28  ;;  %v928_v6 = vrot.slane %v926_v39, 7  ;;  %v949_v9 = vrot.slane %v945_v31, 4  ;;  %v1071_v14 = vld [vmem:[#allocation2 + $0x50] sm:$0x1]  ;;  %v1081_v39 = vld [vmem:[#allocation2 + $0x60] sm:$0xf] }
 0x1c1   : > { %v4832_v47 = vpop.eup %4831  ;;  %v906_v49 = vsel %vm5613_vm8, %v898_v37, %v905_v16  ;;  %v1058_v50 = vsel %vm5473_vm2, %v907_v62, %v1057_v30  ;;  %v634_v48 = vadd.f32 1.0, %v4830_v43  ;;  %v951_v57 = vshrl.u32 %v4236_v44, 16  ;;  %v1088_v16 = vld [vmem:[#allocation2 + $0x6c] sm:$0xf] }
 0x1c2   : > { %1056 = vst [vmem:[#allocation2 + $0x34] sm:$0xf] %v906_v49  ;;  %1059 = vst [vmem:[#allocation2 + $0x38] sm:$0x1] %v1058_v50  ;;  %v1075_v53 = vsel %vm5606_vm7, %v948_v5, %v1074_v36  ;;  %v632_v33 = vadd.f32 1.0, %v4832_v47  ;;  %v931_v63 = vor.u32 %v929_v42, %v928_v6  ;;  %v954_v2 = vshll.u32 %v4236_v44, 16 }
 0x1c3   : > { %v4834_v34 = vpop.eup %4833  ;;  %1076 = vst [vmem:[#allocation2 + $0x54] sm:$0xf] %v1075_v53  ;;  %4839 = vrcp.f32 %v634_v48  ;;  %v953_v0 = vrot.slane %v951_v57, 7  ;;  %v932_v28 = vrot.slane %v928_v6, 4  ;;  %v1092_v49 = vld [vmem:[#allocation2 + $0x74] sm:$0x1] }
 0x1c4   : > { %v4836_v59 = vpop.eup %4835  ;;  %v635_v1 = vadd.f32 1.0, %v4834_v34  ;;  %4841 = vrcp.f32 %v632_v33  ;;  %v1068_v7 = vsel %vm5606_vm7, %v931_v63, %v1067_v54  ;;  %v1085_v33 = vld [vmem:[#allocation2 + $0x68] sm:$0x1] }
 0x1c5   : > { %v633_v4 = vadd.f32 1.0, %v4836_v59  ;;  %1069 = vst [vmem:[#allocation2 + $0x48] sm:$0xf] %v1068_v7  ;;  %v956_v60 = vor.u32 %v954_v2, %v953_v0  ;;  %v958_v3 = vrot.slane %v953_v0, 4 }
 0x1c6   : > { %4843 = vrcp.f32 %v635_v1 }
 0x1c7   : > { %4845 = vrcp.f32 %v633_v4  ;;  %v957_v41 = vsel %vm5613_vm8, %v949_v9, %v956_v60  ;;  %v1079_v12 = vsel %vm5473_vm2, %v958_v3, %v1078_v8 }
 0x1c8   : > { %1077 = vst [vmem:[#allocation2 + $0x58] sm:$0xf] %v957_v41  ;;  %1080 = vst [vmem:[#allocation2 + $0x5c] sm:$0x1] %v1079_v12 }
 0x1ca   : > { %v4838_v13 = vpop.eup %4837 }
 0x1cb   : > { %v689_v20 = vmul.f32 %v4838_v13, %v5587_v11 }
 0x1cd   : > { %v4840_v23 = vpop.eup %4839  ;;  %v4234_v45 = vpack.c.bf16 %v689_v20, %v689_v20 }
 0x1ce   : > { %v4842_v10 = vpop.eup %4841  ;;  %v694_v51 = vmul.f32 %v4840_v23, %v5598_v38 }
 0x1cf   : > { %v934_v19 = vshrl.u32 %v4234_v45, 16  ;;  %v692_v21 = vmul.f32 %v4842_v10, %v5627_v40  ;;  %v937_v32 = vshll.u32 %v4234_v45, 16 }
 0x1d0   : > { %v4844_v17 = vpop.eup %4843  ;;  %v4239_v46 = vpack.c.bf16 %v694_v51, %v694_v51 }
 0x1d1   : > { %v4846_v22 = vpop.eup %4845  ;;  %v695_v24 = vmul.f32 %v4844_v17, %v5659_v52  ;;  %v936_v25 = vrot.slane %v934_v19, 7  ;;  %v4237_v26 = vpack.c.bf16 %v692_v21, %v692_v21 }
 0x1d2   : > { %v693_v56 = vmul.f32 %v4846_v22, %v5666_v58  ;;  %v977_v11 = vshrl.u32 %v4239_v46, 16  ;;  %v980_v31 = vshll.u32 %v4239_v46, 16 }
 0x1d3   : > { %v4240_v27 = vpack.c.bf16 %v695_v24, %v695_v24  ;;  %v939_v29 = vor.u32 %v937_v32, %v936_v25  ;;  %v941_v61 = vrot.slane %v936_v25, 4  ;;  %v960_v38 = vshrl.u32 %v4237_v26, 16 }
 0x1d4   : > { %v979_v30 = vrot.slane %v977_v11, 7  ;;  %v4238_v40 = vpack.c.bf16 %v693_v56, %v693_v56  ;;  %v963_v58 = vshll.u32 %v4237_v26, 16 }
 0x1d5   : > { %v985_v35 = vshrl.u32 %v4240_v27, 16  ;;  %v940_v37 = vsel %vm5613_vm8, %v932_v28, %v939_v29  ;;  %v1072_v52 = vsel %vm5473_vm2, %v941_v61, %v1071_v14  ;;  %v962_v62 = vrot.slane %v960_v38, 7 }
 0x1d6   : > { %1070 = vst [vmem:[#allocation2 + $0x4c] sm:$0xf] %v940_v37  ;;  %1073 = vst [vmem:[#allocation2 + $0x50] sm:$0x1] %v1072_v52  ;;  %v982_v36 = vor.u32 %v980_v31, %v979_v30  ;;  %v988_v5 = vshll.u32 %v4240_v27, 16  ;;  %v968_v42 = vshrl.u32 %v4238_v40, 16 }
 0x1d7   : > { %v987_v43 = vrot.slane %v985_v35, 7  ;;  %v983_v44 = vrot.slane %v979_v30, 4  ;;  %v965_v47 = vor.u32 %v963_v58, %v962_v62  ;;  %v971_v50 = vshll.u32 %v4238_v40, 16  ;;  %1098 = sbr.rel (%p4027_p4) target bundleno = 478 (0x1de), region = 56 }
 0x1d8   : > { %v1089_v6 = vsel %vm5606_vm7, %v982_v36, %v1088_v16  ;;  %v970_v53 = vrot.slane %v968_v42, 7  ;;  %v966_v54 = vrot.slane %v962_v62, 4 }
 0x1d9   : > { %v990_v48 = vor.u32 %v988_v5, %v987_v43  ;;  %v992_v34 = vrot.slane %v987_v43, 4  ;;  %1090 = vst [vmem:[#allocation2 + $0x6c] sm:$0xf] %v1089_v6  ;;  %v1082_v57 = vsel %vm5606_vm7, %v965_v47, %v1081_v39 }
 0x1da   : > { %1083 = vst [vmem:[#allocation2 + $0x60] sm:$0xf] %v1082_v57  ;;  %v973_v1 = vor.u32 %v971_v50, %v970_v53  ;;  %v975_v0 = vrot.slane %v970_v53, 4 }
 0x1db   : > { %v991_v59 = vsel %vm5613_vm8, %v983_v44, %v990_v48  ;;  %v1093_v63 = vsel %vm5473_vm2, %v992_v34, %v1092_v49 }
 0x1dc   : > { %1091 = vst [vmem:[#allocation2 + $0x70] sm:$0xf] %v991_v59  ;;  %1094 = vst [vmem:[#allocation2 + $0x74] sm:$0x1] %v1093_v63  ;;  %v974_v2 = vsel %vm5613_vm8, %v966_v54, %v973_v1  ;;  %v1086_v4 = vsel %vm5473_vm2, %v975_v0, %v1085_v33 }
 0x1dd   : > { %1084 = vst [vmem:[#allocation2 + $0x64] sm:$0xf] %v974_v2  ;;  %1087 = vst [vmem:[#allocation2 + $0x68] sm:$0x1] %v1086_v4 }
 0x1de PF: > { %p4028_p10 = scmp.ne.s32.totalorder %s5179_s21, 1 }
 0x1df   : > { %v5203_v15 = vmov (!%p4028_p10), 0  }
 0x1e0   : > { %1105 = sbr.rel (%p4028_p10) target bundleno = 487 (0x1e7), region = 60  ;;  %1107 = vst [vmem:[#allocation2 + $0x6c] sm:$0xf] (!%p4028_p10), %v5203_v15  ;;  %1108 = vst [vmem:[#allocation2 + $0x70] sm:$0xf] (!%p4028_p10), %v5203_v15 }
 0x1e1   : > { %1109 = vst [vmem:[#allocation2 + $0x74] sm:$0x1] (!%p4028_p10), %v5203_v15 }
 0x1e7 PF: > { %v4847_v18 = vld [vmem:[#allocation9 + $0x40] sm:$0xff]   ;;  %v4851_v60 = vld [vmem:[#allocation9 + $0x48] sm:$0xff]   ;;  %v4855_v13 = vld [vmem:[#allocation9 + $0x50] sm:$0xff]   ;;  %vm1206_vm9 = vsmask.f32 3328  ;;  %vm1489_vm12 = vcmask 1042432  }
 0x1e8   : > { %v4848_v7 = vld [vmem:[#allocation9] sm:$0xff]   ;;  %4300 = vmatprep.subr.bf16.mxu1 %v4847_v18  ;;  %v4852_v3 = vld [vmem:[#allocation9 + $0x8] sm:$0xff]   ;;  %v4856_v20 = vld [vmem:[#allocation9 + $0x10] sm:$0xff]   ;;  %vm1207_vm10 = vsmask.f32 7440  ;;  %vm1490_vm13 = vcmask 1046532  }
 0x1e9   : > { %v4849_v8 = vld [vmem:[#allocation9 + $0xc0] sm:$0xff]   ;;  %4301 = vmatpush3.bf16.msra.mxu1 %v4848_v7  ;;  %v4853_v41 = vld [vmem:[#allocation9 + $0xc8] sm:$0xff]   ;;  %v4857_v23 = vld [vmem:[#allocation9 + $0xd0] sm:$0xff]   ;;  %s4241_s11 = sshll.u32 %s5179_s21, 4  ;;  %s4217_s10 = sshll.u32 %s5183_s22, 5 }
 0x1ea   : > { %v4850_v9 = vld [vmem:[#allocation9 + $0x80] sm:$0xff]   ;;  %4364 = vmatprep.subr.bf16.mxu0 %v4849_v8  ;;  %4302 = vmatprep.subr.bf16.mxu1 %v4851_v60  ;;  %v4854_v12 = vld [vmem:[#allocation9 + $0x88] sm:$0xff]   ;;  %v4858_v45 = vld [vmem:[#allocation9 + $0x90] sm:$0xff]   ;;  %s3865_s14 = sadd.s32 %s4241_s11, %s4217_s10  ;;  %s3868_s22 = sshll.u32 %s5718_s13, 4  ;;  %s6132_s22 = int_to_ptr.vmem [resolvable:$true] %s3868_s22 }
 0x1eb   : > { %4365 = vmatpush3.bf16.msra.mxu0 %v4850_v9  ;;  %v4859_v10 = vld [vmem:[#allocation9 + $0x58] sm:$0xff]   ;;  %v4863_v21 = vld [vmem:[#allocation9 + $0x60] sm:$0xff]   ;;  %v4867_v25 = vld [vmem:[#allocation9 + $0x68] sm:$0xff]   ;;  %s4218_s21 = sshll.u32 %s3865_s14, 7  ;;  %s3852_s9 = scalar_lea.sflag [#allocation6], %s5447_s17 }
 0x1ec   : > { %4366 = vmatprep.subr.bf16.mxu0 %v4853_v41  ;;  %v4860_v51 = vld [vmem:[#allocation9 + $0x18] sm:$0xff]   ;;  %v4864_v22 = vld [vmem:[#allocation9 + $0x20] sm:$0xff]   ;;  %v4868_v32 = vld [vmem:[#allocation9 + $0x28] sm:$0xff]   ;;  %s6130_s8 = scalar_lea.hbm %s6194_s5, %s4218_s21  ;;  %s5093_s18 = scalar_lea.vmem %s6132_s22, 2048 }
 0x1ed   : > { %4303 = vmatpush3.bf16.msra.mxu1 %v4852_v3  ;;  %v4861_v17 = vld [vmem:[#allocation9 + $0xd8] sm:$0xff]   ;;  %v4865_v46 = vld [vmem:[#allocation9 + $0xe0] sm:$0xff]   ;;  %v4869_v26 = vld [vmem:[#allocation9 + $0xe8] sm:$0xff]   ;;  %p5094_p6 = scmp.ne.s32.totalorder %s6132_s22, %s5093_s18  ;;  %s5204_s6 = smov [#allocation10]  }
 0x1ee   : > { %4304 = vmatprep.subr.bf16.mxu1 %v4855_v13  ;;  %v4862_v19 = vld [vmem:[#allocation9 + $0x98] sm:$0xff]   ;;  %v4866_v24 = vld [vmem:[#allocation9 + $0xa0] sm:$0xff]   ;;  %v4870_v56 = vld [vmem:[#allocation9 + $0xa8] sm:$0xff]   ;;  %s5097_s3 = sshll.u32 %s5204_s6, 4  ;;  %s5098_s3 = int_to_ptr.vmem [resolvable:$false] %s5097_s3 }
 0x1ef   : > { %4367 = vmatpush3.bf16.msra.mxu0 %v4854_v12  ;;  %v4871_v14 = vld [vmem:[#allocation9 + $0x70] sm:$0xff]   ;;  %v4875_v29 = vld [vmem:[#allocation9 + $0x78] sm:$0xff]   ;;  %v1182_v30 = vld [vmem:[#allocation2] sm:$0xf]  ;;  %p5095_p11 = pnand %p5094_p6, %p5385_p8  ;;  %s5099_s15 = scalar_lea.vmem %s5098_s3, 4096 }
 0x1f0   : > { %4368 = vmatprep.subr.bf16.mxu0 %v4857_v23  ;;  %v4872_v11 = vld [vmem:[#allocation9 + $0x30] sm:$0xff]   ;;  %v4876_v61 = vld [vmem:[#allocation9 + $0x38] sm:$0xff]   ;;  %v1183_v31 = vld [vmem:[#allocation2 + $0x4] sm:$0xf]  ;;  %v1210_v40 = vshrl.u32 %v1182_v30, 16  ;;  %v1213_v37 = vshll.u32 %v1182_v30, 16  ;;  %p5100_p3 = scmp.lt.s32.totalorder %s6132_s22, %s5098_s3  ;;  %p5101_p7 = scmp.lt.s32.totalorder %s5099_s15, %s5093_s18 }
 0x1f1   : > { %4305 = vmatpush3.bf16.msra.mxu1 %v4856_v20  ;;  %v4873_v27 = vld [vmem:[#allocation9 + $0xf0] sm:$0xff]   ;;  %v4877_v38 = vld [vmem:[#allocation9 + $0xf8] sm:$0xff]   ;;  %v1219_v52 = vshll.u32 %v1183_v31, 16  ;;  %v1223_v16 = vshrl.u32 %v1183_v31, 16  ;;  %vm5722_vm11 = vmor %vm1206_vm9, %vm1207_vm10  ;;  %p5096_p13 = pneg %p5095_p11 }
 0x1f2   : > { %4306 = vmatprep.subr.bf16.mxu1 %v4859_v10  ;;  %v4874_v28 = vld [vmem:[#allocation9 + $0xb0] sm:$0xff]   ;;  %v4878_v58 = vld [vmem:[#allocation9 + $0xb8] sm:$0xff]   ;;  %v1212_v36 = vrot.slane %v1210_v40, 4  ;;  %v1215_v39 = vrot.slane %v1213_v37, 5  ;;  %v4880_v47 = vld [vmem:[#allocation9 + $0x140] sm:$0xff]   ;;  %p5102_p12 = por %p5101_p7, %p5100_p3 }
 0x1f3   : > { %4369 = vmatpush3.bf16.msra.mxu0 %v4858_v45  ;;  %v1184_v35 = vld [vmem:[#allocation2 + $0x8] sm:$0x1]  ;;  %v1221_v5 = vrot.slane %v1219_v52, 5  ;;  %v1225_v42 = vrot.slane %v1223_v16, 4  ;;  %v4881_v6 = vld [vmem:[#allocation2 + $0xc] sm:$0xff]   ;;  %vm5726_vm14 = vmor %vm1489_vm12, %vm1490_vm13 }
 0x1f4   : > { %4370 = vmatprep.subr.bf16.mxu0 %v4861_v17  ;;  %v1229_v62 = vshll.u32 %v1184_v35, 16  ;;  %v1216_v44 = vor.u32 %v1215_v39, %v1212_v36  ;;  %v4879_v54 = vld [vmem:[#allocation2] sm:$0xff]   ;;  %3318 = vmatprep.mubr.bf16.mxu0 %v4881_v6  ;;  %v4882_v63 = vld [vmem:[#allocation9 + $0x100] sm:$0xff]   ;;  %v1443_v1 = vld [vmem:[#allocation2 + $0x8] sm:$0x1]  ;;  %p5103_p1 = pnand %p5102_p12, %p5096_p13 }
 0x1f5   : > { %4307 = vmatpush3.bf16.msra.mxu1 %v4860_v51  ;;  %v1226_v49 = vor.u32 %v1225_v42, %v1221_v5  ;;  %v1441_v57 = vld [vmem:[#allocation2] sm:$0xe]  ;;  %v1442_v33 = vld [vmem:[#allocation2 + $0x4] sm:$0xf]  ;;  %v1185_v4 = vld [vmem:[#allocation2 + $0xc] sm:$0xf] }
 0x1f6   : > { %4308 = vmatprep.subr.bf16.mxu1 %v4863_v21  ;;  %v1231_v50 = vrot.slane %v1229_v62, 5  ;;  %v1217_v48 = vrot.slane %v1216_v44, 4  ;;  %v4045_v0 = vrot.slane %v1441_v57, 9  ;;  %v1494_v2 = vrot.slane %v1442_v33, 5  ;;  %v1186_v18 = vld [vmem:[#allocation2 + $0x10] sm:$0xf] }
 0x1f7   : > { %4371 = vmatpush3.bf16.msra.mxu0 %v4862_v19  ;;  %v1227_v53 = vrot.slane %v1226_v49, 4  ;;  %v1497_v15 = vrot.slane %v1443_v1, 5  ;;  %v1187_v7 = vld [vmem:[#allocation2 + $0x14] sm:$0x1]  ;;  %v1234_v8 = vshrl.u32 %v1185_v4, 16  ;;  %v1237_v41 = vshll.u32 %v1185_v4, 16 }
 0x1f8   : > { %4372 = vmatprep.subr.bf16.mxu0 %v4865_v46  ;;  %v1222_v59 = vsel %vm5722_vm11, %v1217_v48, %v1221_v5  ;;  %v1495_v60 = vsel %vm5726_vm14, %v4045_v0, %v1494_v2  ;;  %v1496_v3 = vrot.slane %v1494_v2, 4  ;;  %v1243_v13 = vshll.u32 %v1186_v18, 16  ;;  %v4884_v51 = vld [vmem:[#allocation9 + $0x148] sm:$0xff]   ;;  %v1189_v30 = vld [vmem:[#allocation2 + $0x1c] sm:$0xf] }
 0x1f9   : > { %4309 = vmatpush3.bf16.msra.mxu1 %v4864_v22  ;;  %v1232_v55 = vsel %vm5722_vm11, %v1227_v53, %v1231_v50  ;;  %v1236_v12 = vrot.slane %v1234_v8, 4  ;;  %v1247_v20 = vshrl.u32 %v1186_v18, 16  ;;  %v1253_v23 = vshll.u32 %v1187_v7, 16  ;;  %v4885_v22 = vld [vmem:[#allocation2 + $0x18] sm:$0xff]   ;;  %v1190_v31 = vld [vmem:[#allocation2 + $0x20] sm:$0x1] }
 0x1fa   : > { %4310 = vmatprep.subr.bf16.mxu1 %v4867_v25  ;;  %v4037_v9 = vcombine.low %v1222_v59, %v1232_v55  ;;  %v1498_v45 = vsel %vm5726_vm14, %v1496_v3, %v1497_v15  ;;  %v1239_v10 = vrot.slane %v1237_v41, 5  ;;  %v1245_v19 = vrot.slane %v1243_v13, 5  ;;  %v4886_v25 = vld [vmem:[#allocation9 + $0x108] sm:$0xff]   ;;  %v4888_v50 = vld [vmem:[#allocation9 + $0x150] sm:$0xff]   ;;  %v1447_v1 = vld [vmem:[#allocation2 + $0x18] sm:$0xe] }
 0x1fb   : > { %4373 = vmatpush3.bf16.msra.mxu0 %v4866_v24  ;;  %v4053_v17 = vcombine.low %v1495_v60, %v1498_v45  ;;  %v1249_v21 = vrot.slane %v1247_v20, 4  ;;  %v1255_v24 = vrot.slane %v1253_v23, 5  ;;  %v1267_v39 = vshll.u32 %v1189_v30, 16  ;;  %v4889_v6 = vld [vmem:[#allocation2 + $0x24] sm:$0xff]   ;;  %v1448_v0 = vld [vmem:[#allocation2 + $0x1c] sm:$0xf] }
 0x1fc   : > { %4374 = vmatprep.subr.bf16.mxu0 %v4869_v26  ;;  %3221 = vmatprep.mubr.bf16.mxu1 %v4037_v9  ;;  %v1240_v46 = vor.u32 %v1239_v10, %v1236_v12  ;;  %v1444_v26 = vld [vmem:[#allocation2 + $0xc] sm:$0xe]  ;;  %v1271_v5 = vshrl.u32 %v1189_v30, 16  ;;  %v1277_v49 = vshll.u32 %v1190_v31, 16  ;;  %v1449_v2 = vld [vmem:[#allocation2 + $0x20] sm:$0x1] }
 0x1fd   : > { %4311 = vmatpush3.bf16.msra.mxu1 %v4868_v32  ;;  %v1250_v32 = vor.u32 %v1249_v21, %v1245_v19  ;;  %v1269_v53 = vrot.slane %v1267_v39, 5  ;;  %v4890_v59 = vld [vmem:[#allocation9 + $0x110] sm:$0xff]   ;;  %v4047_v55 = vrot.slane %v1447_v1, 9  ;;  %v1508_v15 = vrot.slane %v1448_v0, 5  ;;  %v1191_v7 = vld [vmem:[#allocation2 + $0x24] sm:$0xf] }
 0x1fe   : > { %4312 = vmatprep.subr.bf16.mxu1 %v4871_v14  ;;  %v1446_v14 = vld [vmem:[#allocation2 + $0x14] sm:$0x1]  ;;  %v1279_v33 = vrot.slane %v1277_v49, 5  ;;  %v1511_v18 = vrot.slane %v1449_v2, 5  ;;  %v1192_v9 = vld [vmem:[#allocation2 + $0x28] sm:$0xf] }
 0x1ff   : > { %4375 = vmatpush3.bf16.msra.mxu0 %v4870_v56  ;;  %v1445_v56 = vld [vmem:[#allocation2 + $0x10] sm:$0xf]  ;;  %v1193_v60 = vld [vmem:[#allocation2 + $0x2c] sm:$0x1]  ;;  %v1282_v3 = vshrl.u32 %v1191_v7, 16  ;;  %v1509_v12 = vsel %vm5726_vm14, %v4047_v55, %v1508_v15  ;;  %v1510_v13 = vrot.slane %v1508_v15, 4 }
 0x200   : > { %4376 = vmatprep.subr.bf16.mxu0 %v4873_v27  ;;  %v4046_v27 = vrot.slane %v1444_v26, 9  ;;  %v1285_v20 = vshll.u32 %v1191_v7, 16  ;;  %v4887_v45 = vld [vmem:[#allocation2 + $0x18] sm:$0xff]  }
 0x201   : > { %4313 = vmatpush3.bf16.msra.mxu1 %v4872_v11  ;;  %v1241_v11 = vrot.slane %v1240_v46, 4  ;;  %v1284_v10 = vrot.slane %v1282_v3, 4  ;;  %v1512_v21 = vsel %vm5726_vm14, %v1510_v13, %v1511_v18  ;;  %v1301_v46 = vshll.u32 %v1193_v60, 16  ;;  %v4896_v39 = vld [vmem:[#allocation9 + $0x180] sm:$0xff]   ;;  %v1454_v60 = vld [vmem:[#allocation2 + $0x34] sm:$0xf] }
 0x202   : > { %4314 = vmatprep.subr.bf16.mxu1 %v4875_v29  ;;  %v1504_v29 = vrot.slane %v1446_v14, 5  ;;  %v4898_v2 = vld [vmem:[#allocation9 + $0x160] sm:$0xff]   ;;  %v4897_v13 = vld [vmem:[#allocation2 + $0x30] sm:$0xff]  }
 0x203   : > { %4377 = vmatpush3.bf16.msra.mxu0 %v4874_v28  ;;  %v1501_v28 = vrot.slane %v1445_v56, 5  ;;  %v1246_v40 = vsel %vm5722_vm11, %v1241_v11, %v1245_v19  ;;  %v1303_v11 = vrot.slane %v1301_v46, 5  ;;  %v4900_v18 = vld [vmem:[#allocation9 + $0x120] sm:$0xff]   ;;  %v1198_v46 = vld [vmem:[#allocation2 + $0x40] sm:$0xf] }
 0x204   : > { %4378 = vmatprep.subr.bf16.mxu0 %v4877_v38  ;;  %v1251_v38 = vrot.slane %v1250_v32, 4  ;;  %v4055_v32 = vcombine.low %v1509_v12, %v1512_v21  ;;  %v1455_v3 = vld [vmem:[#allocation2 + $0x38] sm:$0x1]  ;;  %v4902_v21 = vld [vmem:[#allocation9 + $0x188] sm:$0xff]  }
 0x205   : > { %4315 = vmatpush3.bf16.msra.mxu1 %v4876_v61  ;;  %v1188_v61 = vld [vmem:[#allocation2 + $0x18] sm:$0xf]  ;;  %v1502_v37 = vsel %vm5726_vm14, %v4046_v27, %v1501_v28  ;;  %v1503_v52 = vrot.slane %v1501_v28, 4  ;;  %v4894_v27 = vld [vmem:[#allocation9 + $0x118] sm:$0xff]  }
 0x206   : > { %4428 = vmatprep.subr.bf16.mxu1 %v4880_v47  ;;  %v1258_v35 = vshrl.u32 %v1188_v61, 16  ;;  %v1261_v16 = vshll.u32 %v1188_v61, 16  ;;  %v1256_v62 = vsel %vm5722_vm11, %v1251_v38, %v1255_v24  ;;  %v4892_v24 = vld [vmem:[#allocation9 + $0x158] sm:$0xff]   ;;  %v1451_v61 = vld [vmem:[#allocation2 + $0x28] sm:$0xf] }
 0x207   : > { %4379 = vmatpush3.bf16.msra.mxu0 %v4878_v58  ;;  %v4883_v58 = vld [vmem:[#allocation2 + $0xc] sm:$0xff]   ;;  %v4038_v42 = vcombine.low %v1246_v40, %v1256_v62  ;;  %v1505_v44 = vsel %vm5726_vm14, %v1503_v52, %v1504_v29  ;;  %v1450_v29 = vld [vmem:[#allocation2 + $0x24] sm:$0xe] }
 0x208   : > { %3222 = vmatmul.mubr.bf16.vlgmr.msra.gmra.mrb[0].mxu1 %v4879_v54  ;;  %v1260_v36 = vrot.slane %v1258_v35, 4  ;;  %v1263_v47 = vrot.slane %v1261_v16, 5  ;;  %v4054_v48 = vcombine.low %v1502_v37, %v1505_v44  ;;  %v1273_v54 = vrot.slane %v1271_v5, 4  ;;  %v1452_v38 = vld [vmem:[#allocation2 + $0x2c] sm:$0x1]  ;;  %v4891_v52 = vld [vmem:[#allocation2 + $0x24] sm:$0xff]  }
 0x209   : > { %4429 = vmatpush3.bf16.msra.mxu1 %v4882_v63  ;;  %3229 = vmatprep.mubr.bf16.mxu1 %v4038_v42  ;;  %v4048_v31 = vrot.slane %v1450_v29, 9  ;;  %v1515_v35 = vrot.slane %v1451_v61, 5  ;;  %v1518_v40 = vrot.slane %v1452_v38, 5  ;;  %v4895_v16 = vld [vmem:[#allocation9 + $0x1c0] sm:$0xff]   ;;  %v1194_v5 = vld [vmem:[#allocation2 + $0x30] sm:$0xf] }
 0x20a   : > { %3319 = vmatmul.mubr.bf16.vlgmr.msra.gmra.mrb[20].mxu0 %v4053_v17  ;;  %4430 = vmatprep.subr.bf16.mxu1 %v4884_v51  ;;  %v1264_v57 = vor.u32 %v1263_v47, %v1260_v36  ;;  %v1274_v63 = vor.u32 %v1273_v54, %v1269_v53  ;;  %v1291_v51 = vshll.u32 %v1192_v9, 16  ;;  %v1295_v17 = vshrl.u32 %v1192_v9, 16  ;;  %v1195_v44 = vld [vmem:[#allocation2 + $0x34] sm:$0xf]  ;;  %v1196_v47 = vld [vmem:[#allocation2 + $0x38] sm:$0x1] }
 0x20b   : > { %3326 = vmatprep.mubr.bf16.mxu0 %v4885_v22  ;;  %v1287_v22 = vrot.slane %v1285_v20, 5  ;;  %v1517_v36 = vrot.slane %v1515_v35, 4  ;;  %4492 = vmatprep.subr.bf16.mxu0 %v4895_v16  ;;  %v1306_v49 = vshrl.u32 %v1194_v5, 16  ;;  %v1319_v54 = vshrl.u32 %v1195_v44, 16  ;;  %v4906_v16 = vld [vmem:[#allocation9 + $0x128] sm:$0xff]  }
 0x20c   : > { %v1265_v4 = vrot.slane %v1264_v57, 4  ;;  %v1275_v8 = vrot.slane %v1274_v63, 4  ;;  %v1293_v26 = vrot.slane %v1291_v51, 5  ;;  %v1297_v56 = vrot.slane %v1295_v17, 4  ;;  %4493 = vmatpush3.bf16.msra.mxu0 %v4896_v39  ;;  %v1458_v39 = vld [vmem:[#allocation2 + $0x44] sm:$0x1] }
 0x20d   : > { %4431 = vmatpush3.bf16.msra.mxu1 %v4886_v25  ;;  %v4893_v25 = vld [vmem:[#allocation2 + $0x30] sm:$0xff]   ;;  %v1288_v14 = vor.u32 %v1287_v22, %v1284_v10  ;;  %v1325_v63 = vshll.u32 %v1196_v47, 16  ;;  %v1321_v0 = vrot.slane %v1319_v54, 4  ;;  %v1522_v20 = vrot.slane %v1454_v60, 5  ;;  %v1197_v22 = vld [vmem:[#allocation2 + $0x3c] sm:$0xf] }
 0x20e   : > { %4432 = vmatprep.subr.bf16.mxu1 %v4888_v50  ;;  %v1270_v41 = vsel %vm5722_vm11, %v1265_v4, %v1269_v53  ;;  %v1280_v23 = vsel %vm5722_vm11, %v1275_v8, %v1279_v33  ;;  %v1298_v28 = vor.u32 %v1297_v56, %v1293_v26  ;;  %v1309_v50 = vshll.u32 %v1194_v5, 16  ;;  %v4899_v4 = vld [vmem:[#allocation2 + $0x3c] sm:$0xff]   ;;  %v1453_v8 = vld [vmem:[#allocation2 + $0x30] sm:$0xe] }
 0x20f   : > { %v4039_v19 = vcombine.low %v1270_v41, %v1280_v23  ;;  %v1289_v30 = vrot.slane %v1288_v14, 4  ;;  %v1315_v53 = vshll.u32 %v1195_v44, 16  ;;  %v1308_v33 = vrot.slane %v1306_v49, 4  ;;  %v4903_v44 = vld [vmem:[#allocation2 + $0x3c] sm:$0xff]  }
 0x210   : > { %3230 = vmatmul.mubr.bf16.gmra.mrb[4].mxu1 %v4883_v58  ;;  %v1299_v37 = vrot.slane %v1298_v28, 4  ;;  %v1516_v58 = vsel %vm5726_vm14, %v4048_v31, %v1515_v35  ;;  %v1327_v15 = vrot.slane %v1325_v63, 5  ;;  %v4049_v41 = vrot.slane %v1453_v8, 9  ;;  %v1200_v63 = vld [vmem:[#allocation2 + $0x48] sm:$0xf] }
 0x211   : > { %4433 = vmatpush3.bf16.msra.mxu1 %v4890_v59  ;;  %3237 = vmatprep.mubr.bf16.mxu1 %v4039_v19  ;;  %v1294_v62 = vsel %vm5722_vm11, %v1289_v30, %v1293_v26  ;;  %v1311_v59 = vrot.slane %v1309_v50, 5  ;;  %v1317_v1 = vrot.slane %v1315_v53, 5  ;;  %v1525_v23 = vrot.slane %v1455_v3, 5  ;;  %v4904_v30 = vld [vmem:[#allocation9 + $0x168] sm:$0xff]   ;;  %v4907_v50 = vld [vmem:[#allocation9 + $0x1d0] sm:$0xff]  }
 0x212   : > { %3327 = vmatmul.mubr.bf16.gmra.mrb[24].mxu0 %v4054_v48  ;;  %4434 = vmatprep.subr.bf16.mxu1 %v4892_v24  ;;  %v1304_v42 = vsel %vm5722_vm11, %v1299_v37, %v1303_v11  ;;  %v1519_v48 = vsel %vm5726_vm14, %v1517_v36, %v1518_v40  ;;  %v1523_v17 = vsel %vm5726_vm14, %v4049_v41, %v1522_v20  ;;  %v1524_v19 = vrot.slane %v1522_v20, 4  ;;  %v4905_v40 = vld [vmem:[#allocation2 + $0x48] sm:$0xff]   ;;  %v1457_v36 = vld [vmem:[#allocation2 + $0x40] sm:$0xf] }
 0x213   : > { %3334 = vmatprep.mubr.bf16.mxu0 %v4889_v6  ;;  %v4040_v6 = vcombine.low %v1294_v62, %v1304_v42  ;;  %v4056_v57 = vcombine.low %v1516_v58, %v1519_v48  ;;  %v1312_v55 = vor.u32 %v1311_v59, %v1308_v33  ;;  %v1322_v7 = vor.u32 %v1321_v0, %v1317_v1  ;;  %v1456_v62 = vld [vmem:[#allocation2 + $0x3c] sm:$0xe]  ;;  %v4909_v59 = vld [vmem:[#allocation9 + $0x1d8] sm:$0xff]   ;;  %v4912_v20 = vld [vmem:[#allocation9 + $0x170] sm:$0xff]  }
 0x214   : > { %v1333_v26 = vshll.u32 %v1197_v22, 16  ;;  %v1339_v56 = vshll.u32 %v1198_v46, 16  ;;  %v1526_v14 = vsel %vm5726_vm14, %v1524_v19, %v1525_v23  ;;  %v1343_v11 = vshrl.u32 %v1198_v46, 16  ;;  %v1459_v19 = vld [vmem:[#allocation2 + $0x48] sm:$0xe] }
 0x215   : > { %4435 = vmatpush3.bf16.msra.mxu1 %v4894_v27  ;;  %v1313_v9 = vrot.slane %v1312_v55, 4  ;;  %v1323_v12 = vrot.slane %v1322_v7, 4  ;;  %v4057_v28 = vcombine.low %v1523_v17, %v1526_v14  ;;  %v4050_v5 = vrot.slane %v1456_v62, 9  ;;  %v4914_v17 = vld [vmem:[#allocation9 + $0x130] sm:$0xff]   ;;  %v4918_v62 = vld [vmem:[#allocation9 + $0x1a8] sm:$0xff]  }
 0x216   : > { %4436 = vmatprep.subr.bf16.mxu1 %v4898_v2  ;;  %v1335_v61 = vrot.slane %v1333_v26, 5  ;;  %v1341_v38 = vrot.slane %v1339_v56, 5  ;;  %v1345_v31 = vrot.slane %v1343_v11, 4  ;;  %v1529_v47 = vrot.slane %v1457_v36, 5  ;;  %v1202_v2 = vld [vmem:[#allocation2 + $0x50] sm:$0x1] }
 0x217   : > { %v1318_v10 = vsel %vm5722_vm11, %v1313_v9, %v1317_v1  ;;  %v1328_v51 = vsel %vm5722_vm11, %v1323_v12, %v1327_v15  ;;  %v1532_v49 = vrot.slane %v1458_v39, 5  ;;  %v1201_v1 = vld [vmem:[#allocation2 + $0x4c] sm:$0xf]  ;;  %v1357_v55 = vshll.u32 %v1200_v63, 16  ;;  %v4915_v11 = vld [vmem:[#allocation9 + $0x1e0] sm:$0xff]  }
 0x218   : > { %3238 = vmatmul.mubr.bf16.gmra.mrb[8].mxu1 %v4887_v45  ;;  %v4901_v45 = vld [vmem:[#allocation9 + $0x1c8] sm:$0xff]   ;;  %v4041_v24 = vcombine.low %v1318_v10, %v1328_v51  ;;  %v1346_v37 = vor.u32 %v1345_v31, %v1341_v38  ;;  %v1530_v53 = vsel %vm5726_vm14, %v4050_v5, %v1529_v47  ;;  %v1531_v54 = vrot.slane %v1529_v47, 4  ;;  %v4913_v10 = vld [vmem:[#allocation2 + $0x54] sm:$0xff]   ;;  %v1460_v46 = vld [vmem:[#allocation2 + $0x4c] sm:$0xf] }
 0x219   : > { %3245 = vmatprep.mubr.bf16.mxu1 %v4040_v6  ;;  %4437 = vmatpush3.bf16.msra.mxu1 %v4900_v18  ;;  %v1363_v15 = vshll.u32 %v1201_v1, 16  ;;  %v4910_v18 = vld [vmem:[#allocation9 + $0x198] sm:$0xff]   ;;  %v1367_v8 = vshrl.u32 %v1201_v1, 16  ;;  %v1373_v9 = vshll.u32 %v1202_v2, 16  ;;  %v1359_v3 = vrot.slane %v1357_v55, 5 }
 0x21a   : > { %3335 = vmatmul.mubr.bf16.gmra.mrb[28].mxu0 %v4055_v32  ;;  %4494 = vmatprep.subr.bf16.mxu0 %v4901_v45  ;;  %v1330_v32 = vshrl.u32 %v1197_v22, 16  ;;  %v1347_v42 = vrot.slane %v1346_v37, 4  ;;  %v1533_v0 = vsel %vm5726_vm14, %v1531_v54, %v1532_v49  ;;  %v4911_v22 = vld [vmem:[#allocation2 + $0x48] sm:$0xff]   ;;  %v1536_v26 = vrot.slane %v1460_v46, 5  ;;  %v1204_v31 = vld [vmem:[#allocation2 + $0x58] sm:$0xf] }
 0x21b   : > { %3342 = vmatprep.mubr.bf16.mxu0 %v4893_v25  ;;  %v1199_v25 = vld [vmem:[#allocation2 + $0x44] sm:$0x1]  ;;  %4495 = vmatpush3.bf16.msra.mxu0 %v4902_v21  ;;  %v4058_v7 = vcombine.low %v1530_v53, %v1533_v0  ;;  %v1365_v41 = vrot.slane %v1363_v15, 5  ;;  %v1369_v12 = vrot.slane %v1367_v8, 4  ;;  %v1375_v45 = vrot.slane %v1373_v9, 5 }
 0x21c   : > { %v1349_v27 = vshll.u32 %v1199_v25, 16  ;;  %v1332_v29 = vrot.slane %v1330_v32, 4  ;;  %4438 = vmatprep.subr.bf16.mxu1 %v4904_v30  ;;  %4496 = vmatprep.subr.bf16.mxu0 %v4907_v50  ;;  %v4051_v25 = vrot.slane %v1459_v19, 9  ;;  %v1203_v30 = vld [vmem:[#allocation2 + $0x54] sm:$0xf]  ;;  %v1391_v36 = vshrl.u32 %v1204_v31, 16 }
 0x21d   : > { %4439 = vmatpush3.bf16.msra.mxu1 %v4906_v16  ;;  %v1370_v23 = vor.u32 %v1369_v12, %v1365_v41  ;;  %v1378_v37 = vshrl.u32 %v1203_v30, 16  ;;  %v1387_v16 = vshll.u32 %v1204_v31, 16  ;;  %v4920_v50 = vld [vmem:[#allocation9 + $0x178] sm:$0xff]   ;;  %v4921_v53 = vld [vmem:[#allocation2 + $0x60] sm:$0xff]   ;;  %v1463_v1 = vld [vmem:[#allocation2 + $0x58] sm:$0xf] }
 0x21e   : > { %v1336_v35 = vor.u32 %v1335_v61, %v1332_v29  ;;  %4440 = vmatprep.subr.bf16.mxu1 %v4912_v20  ;;  %v1538_v29 = vrot.slane %v1536_v26, 4  ;;  %v4916_v61 = vld [vmem:[#allocation9 + $0x1a0] sm:$0xff]   ;;  %v1393_v47 = vrot.slane %v1391_v36, 4  ;;  %v1543_v55 = vrot.slane %v1463_v1, 5  ;;  %v1917_v12 = vld [vmem:[#allocation2 + $0xc] sm:$0xe] }
 0x21f   : > { %v1371_v21 = vrot.slane %v1370_v23, 4  ;;  %v1380_v5 = vrot.slane %v1378_v37, 4  ;;  %v1464_v0 = vld [vmem:[#allocation2 + $0x5c] sm:$0x1]  ;;  %v1919_v23 = vld [vmem:[#allocation2 + $0x14] sm:$0x1] }
 0x220   : > { %3246 = vmatmul.mubr.bf16.gmra.mrb[12].mxu1 %v4891_v52  ;;  %v1351_v52 = vrot.slane %v1349_v27, 5  ;;  %v1337_v58 = vrot.slane %v1336_v35, 4  ;;  %v1546_v15 = vrot.slane %v1464_v0, 5  ;;  %v4926_v19 = vld [vmem:[#allocation9 + $0x1b8] sm:$0xff]   ;;  %v1664_v0 = vld [vmem:[#allocation2 + $0x18] sm:$0xf] }
 0x221   : > { %3253 = vmatprep.mubr.bf16.mxu1 %v4041_v24  ;;  %v1461_v24 = vld [vmem:[#allocation2 + $0x50] sm:$0x1]  ;;  %4441 = vmatpush3.bf16.msra.mxu1 %v4914_v17  ;;  %v1376_v14 = vsel %vm5722_vm11, %v1371_v21, %v1375_v45  ;;  %v4077_v45 = vrot.slane %v1917_v12, 9  ;;  %v1970_v17 = vrot.slane %v1919_v23, 5  ;;  %v1661_v21 = vld [vmem:[#allocation2 + $0xc] sm:$0xf] }
 0x222   : > { %3343 = vmatmul.mubr.bf16.gmra.mrb[32].mxu0 %v4056_v57  ;;  %v1342_v6 = vsel %vm5722_vm11, %v1337_v58, %v1341_v38  ;;  %v1352_v48 = vsel %vm5722_vm11, %v1347_v42, %v1351_v52  ;;  %v4908_v57 = vld [vmem:[#allocation9 + $0x190] sm:$0xff]   ;;  %v1539_v56 = vrot.slane %v1461_v24, 5  ;;  %v4917_v38 = vld [vmem:[#allocation9 + $0x1e8] sm:$0xff]   ;;  %v1381_v52 = vshll.u32 %v1203_v30, 16  ;;  %4442 = vmatprep.subr.bf16.mxu1 %v4920_v50  ;;  %v1662_v24 = vld [vmem:[#allocation2 + $0x10] sm:$0xf] }
 0x223   : > { %3350 = vmatprep.mubr.bf16.mxu0 %v4899_v4  ;;  %v4042_v33 = vcombine.low %v1342_v6, %v1352_v48  ;;  %4497 = vmatpush3.bf16.msra.mxu0 %v4908_v57  ;;  %v1354_v4 = vshrl.u32 %v1200_v63, 16  ;;  %v4922_v57 = vld [vmem:[#allocation9 + $0x138] sm:$0xff]   ;;  %v1920_v50 = vld [vmem:[#allocation2 + $0x18] sm:$0xe]  ;;  %v1713_v23 = vshll.u32 %v1664_v0, 16 }
 0x224   : > { %4498 = vmatprep.subr.bf16.mxu0 %v4909_v59  ;;  %v1540_v35 = vsel %vm5726_vm14, %v1538_v29, %v1539_v56  ;;  %v1383_v42 = vrot.slane %v1381_v52, 5  ;;  %v4919_v63 = vld [vmem:[#allocation2 + $0x54] sm:$0xff]   ;;  %v1695_v56 = vshll.u32 %v1662_v24, 16  ;;  %v2136_v52 = vld [vmem:[#allocation2 + $0x20] sm:$0x1] }
 0x225   : > { %v1356_v60 = vrot.slane %v1354_v4, 4  ;;  %4443 = vmatpush3.bf16.msra.mxu1 %v4922_v57  ;;  %v4927_v29 = vld [vmem:[#allocation9 + $0x200] sm:$0xff]  }
 0x226   : > { %v1384_v49 = vor.u32 %v1383_v42, %v1380_v5  ;;  %v1697_v31 = vrot.slane %v1695_v56, 5  ;;  %4608 = vmatprep.subr.bf16.mxu1 %v4927_v29  ;;  %v2178_v42 = vshll.u32 %v2136_v52, 16  ;;  %v1921_v57 = vld [vmem:[#allocation2 + $0x1c] sm:$0xf] }
 0x227   : > { %4499 = vmatpush3.bf16.msra.mxu0 %v4910_v18  ;;  %v1974_v1 = vrot.slane %v1921_v57, 5 }
 0x228   : > { %3254 = vmatmul.mubr.bf16.gmra.mrb[16].mxu1 %v4897_v13  ;;  %v1360_v13 = vor.u32 %v1359_v3, %v1356_v60  ;;  %4500 = vmatprep.subr.bf16.mxu0 %v4915_v11  ;;  %v1385_v54 = vrot.slane %v1384_v49, 4  ;;  %v1545_v60 = vrot.slane %v1543_v55, 4  ;;  %v4924_v3 = vld [vmem:[#allocation9 + $0x1b0] sm:$0xff]  }
 0x229   : > { %3261 = vmatprep.mubr.bf16.mxu1 %v4042_v33  ;;  %v1462_v33 = vld [vmem:[#allocation2 + $0x54] sm:$0xe] }
 0x22a   : > { %3351 = vmatmul.mubr.bf16.gmra.mrb[36].mxu0 %v4057_v28  ;;  %v1361_v51 = vrot.slane %v1360_v13, 4  ;;  %v1537_v28 = vsel %vm5726_vm14, %v4051_v25, %v1536_v26  ;;  %v4052_v2 = vrot.slane %v1462_v33, 9  ;;  %v1918_v13 = vld [vmem:[#allocation2 + $0x10] sm:$0xf]  ;;  %v1547_v20 = vsel %vm5726_vm14, %v1545_v60, %v1546_v15  ;;  %v1663_v25 = vld [vmem:[#allocation2 + $0x14] sm:$0x1] }
 0x22b   : > { %3358 = vmatprep.mubr.bf16.mxu0 %v4905_v40  ;;  %4501 = vmatpush3.bf16.msra.mxu0 %v4916_v61  ;;  %v1205_v40 = vld [vmem:[#allocation2 + $0x5c] sm:$0x1]  ;;  %v4059_v58 = vcombine.low %v1537_v28, %v1540_v35  ;;  %v1689_v26 = vshll.u32 %v1661_v21, 16  ;;  %v1705_v11 = vshll.u32 %v1663_v25, 16  ;;  %v2134_v61 = vld [vmem:[#allocation2 + $0x18] sm:$0xf] }
 0x22c   : > { %v1366_v32 = vsel %vm5722_vm11, %v1361_v51, %v1365_v41  ;;  %4502 = vmatprep.subr.bf16.mxu0 %v4917_v38  ;;  %v1397_v39 = vshll.u32 %v1205_v40, 16  ;;  %v1544_v9 = vsel %vm5726_vm14, %v4052_v2, %v1543_v55  ;;  %v4925_v41 = vld [vmem:[#allocation9 + $0x1f8] sm:$0xff]   ;;  %v2135_v40 = vld [vmem:[#allocation2 + $0x1c] sm:$0xf] }
 0x22d   : > { %v4043_v27 = vcombine.low %v1366_v32, %v1376_v14  ;;  %v4060_v51 = vcombine.low %v1544_v9, %v1547_v20  ;;  %v1686_v32 = vshrl.u32 %v1661_v21, 16  ;;  %v1699_v14 = vshrl.u32 %v1662_v24, 16 }
 0x22e   : > { %v1399_v48 = vrot.slane %v1397_v39, 5  ;;  %v1691_v30 = vrot.slane %v1689_v26, 5  ;;  %v1707_v37 = vrot.slane %v1705_v11, 5  ;;  %v2172_v5 = vshrl.u32 %v2135_v40, 16 }
 0x22f   : > { %4503 = vmatpush3.bf16.msra.mxu0 %v4918_v62  ;;  %v1688_v28 = vrot.slane %v1686_v32, 4  ;;  %v1701_v35 = vrot.slane %v1699_v14, 4  ;;  %v2162_v62 = vshll.u32 %v2134_v61, 16  ;;  %v1710_v20 = vshrl.u32 %v1664_v0, 16 }
 0x230   : > { %3262 = vmatmul.mubr.bf16.gmra.mrb[20].mxu1 %v4903_v44  ;;  %v1389_v44 = vrot.slane %v1387_v16, 5  ;;  %v2159_v16 = vshrl.u32 %v2134_v61, 16  ;;  %v1715_v26 = vrot.slane %v1713_v23, 5  ;;  %v4931_v61 = vld [vmem:[#allocation9 + $0x210] sm:$0xff]  }
 0x231   : > { %3269 = vmatprep.mubr.bf16.mxu1 %v4043_v27  ;;  %v1692_v36 = vor.u32 %v1691_v30, %v1688_v28  ;;  %v1702_v39 = vor.u32 %v1701_v35, %v1697_v31  ;;  %v1712_v32 = vrot.slane %v1710_v20, 4  ;;  %v1923_v28 = vld [vmem:[#allocation2 + $0x24] sm:$0xe] }
 0x232   : > { %3359 = vmatmul.mubr.bf16.gmra.mrb[40].mxu0 %v4058_v7  ;;  %v1394_v6 = vor.u32 %v1393_v47, %v1389_v44  ;;  %v1390_v4 = vsel %vm5722_vm11, %v1385_v54, %v1389_v44  ;;  %v4923_v7 = vld [vmem:[#allocation9 + $0x1f0] sm:$0xff]   ;;  %v2161_v44 = vrot.slane %v2159_v16, 4  ;;  %v2164_v47 = vrot.slane %v2162_v62, 5 }
 0x233   : > { %3366 = vmatprep.mubr.bf16.mxu0 %v4913_v10  ;;  %4504 = vmatprep.subr.bf16.mxu0 %v4923_v7  ;;  %v1967_v10 = vrot.slane %v1918_v13, 5  ;;  %v2180_v54 = vrot.slane %v2178_v42, 5  ;;  %v1666_v7 = vld [vmem:[#allocation2 + $0x20] sm:$0x1]  ;;  %v4928_v13 = vld [vmem:[#allocation2 + $0x18] sm:$0xff]   ;;  %v4079_v62 = vrot.slane %v1923_v28, 9 }
 0x234   : > { %v1395_v59 = vrot.slane %v1394_v6, 4  ;;  %4505 = vmatpush3.bf16.msra.mxu0 %v4924_v3  ;;  %v1693_v6 = vrot.slane %v1692_v36, 4  ;;  %v2165_v33 = vor.u32 %v2164_v47, %v2161_v44  ;;  %v1729_v21 = vshll.u32 %v1666_v7, 16  ;;  %v1925_v16 = vld [vmem:[#allocation2 + $0x2c] sm:$0x1] }
 0x235   : > { %4506 = vmatprep.subr.bf16.mxu0 %v4925_v41  ;;  %v1969_v46 = vrot.slane %v1967_v10, 4  ;;  %v1976_v41 = vrot.slane %v1974_v1, 4  ;;  %v1667_v44 = vld [vmem:[#allocation2 + $0x24] sm:$0xf]  ;;  %v1984_v57 = vrot.slane %v1925_v16, 5 }
 0x236   : > { %v1400_v18 = vsel %vm5722_vm11, %v1395_v59, %v1399_v48  ;;  %v1703_v48 = vrot.slane %v1702_v39, 4  ;;  %v1922_v59 = vld [vmem:[#allocation2 + $0x20] sm:$0x1]  ;;  %v1698_v2 = vsel %vm5722_vm11, %v1693_v6, %v1697_v31  ;;  %v2166_v60 = vrot.slane %v2165_v33, 4  ;;  %v1669_v33 = vld [vmem:[#allocation2 + $0x2c] sm:$0x1] }
 0x237   : > { %v4044_v8 = vcombine.low %v1390_v4, %v1400_v18  ;;  %v1971_v27 = vsel %vm5726_vm14, %v1969_v46, %v1970_v17  ;;  %v1977_v15 = vrot.slane %v1922_v59, 5  ;;  %v1665_v18 = vld [vmem:[#allocation2 + $0x1c] sm:$0xf]  ;;  %v2139_v46 = vld [vmem:[#allocation2 + $0x2c] sm:$0x1]  ;;  %v1734_v59 = vshrl.u32 %v1667_v44, 16 }
 0x238   : > { %3270 = vmatmul.mubr.bf16.gmra.mrb[24].mxu1 %v4911_v22  ;;  %v1968_v22 = vsel %vm5726_vm14, %v4077_v45, %v1967_v10  ;;  %4507 = vmatpush3.bf16.msra.mxu0 %v4926_v19  ;;  %v1708_v4 = vsel %vm5722_vm11, %v1703_v48, %v1707_v37  ;;  %v1719_v45 = vshll.u32 %v1665_v18, 16  ;;  %v2137_v10 = vld [vmem:[#allocation2 + $0x24] sm:$0xf]  ;;  %v1723_v19 = vshrl.u32 %v1665_v18, 16  ;;  %v1668_v48 = vld [vmem:[#allocation2 + $0x28] sm:$0xf] }
 0x239   : > { %3277 = vmatprep.mubr.bf16.mxu1 %v4044_v8  ;;  %v4085_v38 = vcombine.low %v1968_v22, %v1971_v27  ;;  %v4929_v8 = vld [vmem:[#allocation9 + $0x208] sm:$0xff]   ;;  %v4069_v9 = vcombine.low %v1698_v2, %v1708_v4  ;;  %v1978_v17 = vsel %vm5726_vm14, %v1976_v41, %v1977_v15  ;;  %v2138_v22 = vld [vmem:[#allocation2 + $0x28] sm:$0xf]  ;;  %v1731_v27 = vrot.slane %v1729_v21, 5  ;;  %v2140_v4 = vld [vmem:[#allocation2 + $0x30] sm:$0xf] }
 0x23a   : > { %3367 = vmatmul.mubr.bf16.gmra.mrb[44].mxu0 %v4059_v58  ;;  %v2168_v58 = vshll.u32 %v2135_v40, 16  ;;  %v1721_v14 = vrot.slane %v1719_v45, 5  ;;  %v1725_v11 = vrot.slane %v1723_v19, 4  ;;  %v2183_v30 = vshrl.u32 %v2137_v10, 16  ;;  %v1924_v40 = vld [vmem:[#allocation2 + $0x28] sm:$0xf] }
 0x23b   : > { %3374 = vmatprep.mubr.bf16.mxu0 %v4921_v53  ;;  %v2174_v53 = vrot.slane %v2172_v5, 4  ;;  %v2186_v31 = vshll.u32 %v2137_v10, 16  ;;  %v2192_v35 = vshll.u32 %v2138_v22, 16  ;;  %v2196_v52 = vshrl.u32 %v2138_v22, 16 }
 0x23c   : > { %v2170_v49 = vrot.slane %v2168_v58, 5  ;;  %v1726_v37 = vor.u32 %v1725_v11, %v1721_v14  ;;  %v4933_v58 = vld [vmem:[#allocation9 + $0x218] sm:$0xff]   ;;  %v2185_v39 = vrot.slane %v2183_v30, 4  ;;  %v1981_v6 = vrot.slane %v1924_v40, 5 }
 0x23d   : > { %v2188_v5 = vrot.slane %v2186_v31, 5  ;;  %v2194_v42 = vrot.slane %v2192_v35, 5  ;;  %v1736_v18 = vrot.slane %v1734_v59, 4  ;;  %v1737_v7 = vshll.u32 %v1667_v44, 16  ;;  %v4939_v59 = vld [vmem:[#allocation9 + $0x230] sm:$0xff]  }
 0x23e   : > { %v2175_v55 = vor.u32 %v2174_v53, %v2170_v49  ;;  %v1727_v47 = vrot.slane %v1726_v37, 4  ;;  %v1982_v0 = vsel %vm5726_vm14, %v4079_v62, %v1981_v6  ;;  %v1983_v2 = vrot.slane %v1981_v6, 4  ;;  %v1670_v37 = vld [vmem:[#allocation2 + $0x30] sm:$0xf]  ;;  %v1672_v6 = vld [vmem:[#allocation2 + $0x38] sm:$0x1] }
 0x23f   : > { %v1747_v41 = vshrl.u32 %v1668_v48, 16  ;;  %v1739_v45 = vrot.slane %v1737_v7, 5  ;;  %v1753_v10 = vshll.u32 %v1669_v33, 16  ;;  %v2207_v22 = vshrl.u32 %v2140_v4, 16  ;;  %v2143_v33 = vld [vmem:[#allocation2 + $0x3c] sm:$0xf] }
 0x240   : > { %3278 = vmatmul.mubr.bf16.gmra.mrb[28].mxu1 %v4919_v63  ;;  %v4078_v63 = vrot.slane %v1920_v50, 9  ;;  %v2176_v12 = vrot.slane %v2175_v55, 4 }
 0x241   : > { %3415 = vmatprep.mubr.bf16.mxu1 %v4085_v38  ;;  %v1716_v38 = vor.u32 %v1715_v26, %v1712_v32  ;;  %v1749_v21 = vrot.slane %v1747_v41, 4  ;;  %v1755_v32 = vrot.slane %v1753_v10, 5  ;;  %v2210_v26 = vshll.u32 %v2140_v4, 16 }
 0x242   : > { %3375 = vmatmul.mubr.bf16.gmra.mrb[48].mxu0 %v4060_v51  ;;  %v1975_v3 = vsel %vm5726_vm14, %v4078_v63, %v1974_v1  ;;  %v2171_v51 = vsel %vm5722_vm11, %v2166_v60, %v2170_v49  ;;  %v2181_v24 = vsel %vm5722_vm11, %v2176_v12, %v2180_v54  ;;  %v2198_v49 = vrot.slane %v2196_v52, 4  ;;  %v2142_v12 = vld [vmem:[#allocation2 + $0x38] sm:$0x1] }
 0x243   : > { %v4086_v25 = vcombine.low %v1975_v3, %v1978_v17  ;;  %v4101_v56 = vcombine.low %v2171_v51, %v2181_v24  ;;  %v1717_v36 = vrot.slane %v1716_v38, 4  ;;  %v2189_v54 = vor.u32 %v2188_v5, %v2185_v39  ;;  %v4930_v17 = vld [vmem:[#allocation2 + $0x24] sm:$0xff]  }
 0x244   : > { %v1732_v63 = vsel %vm5722_vm11, %v1727_v47, %v1731_v27  ;;  %v2199_v1 = vor.u32 %v2198_v49, %v2194_v42  ;;  %v1985_v60 = vsel %vm5726_vm14, %v1983_v2, %v1984_v57  ;;  %v1743_v3 = vshll.u32 %v1668_v48, 16  ;;  %v4937_v38 = vld [vmem:[#allocation9 + $0x228] sm:$0xff]  }
 0x245   : > { %3512 = vmatprep.mubr.bf16.mxu0 %v4101_v56  ;;  %v1722_v53 = vsel %vm5722_vm11, %v1717_v36, %v1721_v14  ;;  %v2190_v15 = vrot.slane %v2189_v54, 4  ;;  %v4087_v23 = vcombine.low %v1982_v0, %v1985_v60  ;;  %v1927_v56 = vld [vmem:[#allocation2 + $0x34] sm:$0xf]  ;;  %v2209_v11 = vrot.slane %v2207_v22, 4 }
 0x246   : > { %v4070_v55 = vcombine.low %v1722_v53, %v1732_v63  ;;  %v1745_v19 = vrot.slane %v1743_v3, 5  ;;  %v2212_v31 = vrot.slane %v2210_v26, 5  ;;  %v2226_v35 = vshll.u32 %v2142_v12, 16  ;;  %v1671_v36 = vld [vmem:[#allocation2 + $0x34] sm:$0xf] }
 0x247   : > { %v2195_v20 = vsel %vm5722_vm11, %v2190_v15, %v2194_v42  ;;  %v1988_v62 = vrot.slane %v1927_v56, 5  ;;  %v1758_v54 = vshrl.u32 %v1670_v37, 16  ;;  %v1761_v57 = vshll.u32 %v1670_v37, 16  ;;  %v2145_v12 = vld [vmem:[#allocation2 + $0x44] sm:$0x1] }
 0x248   : > { %3416 = vmatmul.mubr.bf16.vlgmr.msra.gmra.mrb[32].mxu1 %v4069_v9  ;;  %v2200_v9 = vrot.slane %v2199_v1, 4  ;;  %v1750_v14 = vor.u32 %v1749_v21, %v1745_v19  ;;  %v2213_v39 = vor.u32 %v2212_v31, %v2209_v11  ;;  %v2228_v5 = vrot.slane %v2226_v35, 5  ;;  %v4932_v1 = vld [vmem:[#allocation2 + $0x30] sm:$0xff]  }
 0x249   : > { %4609 = vmatpush3.bf16.msra.mxu1 %v4927_v29  ;;  %3423 = vmatprep.mubr.bf16.mxu1 %v4086_v25  ;;  %v2202_v29 = vshll.u32 %v2139_v46, 16  ;;  %v1926_v46 = vld [vmem:[#allocation2 + $0x30] sm:$0xe]  ;;  %v1740_v25 = vor.u32 %v1739_v45, %v1736_v18  ;;  %v1767_v2 = vshll.u32 %v1671_v36, 16  ;;  %v1771_v4 = vshrl.u32 %v1671_v36, 16 }
 0x24a   : > { %4610 = vmatprep.subr.bf16.mxu1 %v4929_v8  ;;  %3513 = vmatmul.mubr.bf16.vlgmr.msra.gmra.mrb[52].mxu0 %v4928_v13  ;;  %v4935_v13 = vld [vmem:[#allocation9 + $0x220] sm:$0xff]   ;;  %v4080_v40 = vrot.slane %v1926_v46, 9  ;;  %v1751_v52 = vrot.slane %v1750_v14, 4  ;;  %v2214_v53 = vrot.slane %v2213_v39, 4  ;;  %v1760_v18 = vrot.slane %v1758_v54, 4 }
 0x24b   : > { %v2204_v50 = vrot.slane %v2202_v29, 5  ;;  %v1741_v30 = vrot.slane %v1740_v25, 4  ;;  %v1763_v7 = vrot.slane %v1761_v57, 5  ;;  %v1769_v60 = vrot.slane %v1767_v2, 5  ;;  %v1673_v14 = vld [vmem:[#allocation2 + $0x3c] sm:$0xf] }
 0x24c   : > { %v1756_v44 = vsel %vm5722_vm11, %v1751_v52, %v1755_v32  ;;  %v1989_v49 = vsel %vm5726_vm14, %v4080_v40, %v1988_v62  ;;  %v1773_v3 = vrot.slane %v1771_v4, 4  ;;  %v1777_v41 = vshll.u32 %v1672_v6, 16  ;;  %v1674_v40 = vld [vmem:[#allocation2 + $0x40] sm:$0xf]  ;;  %v2146_v36 = vld [vmem:[#allocation2 + $0x48] sm:$0xf] }
 0x24d   : > { %4611 = vmatpush3.bf16.msra.mxu1 %v4929_v8  ;;  %v2141_v8 = vld [vmem:[#allocation2 + $0x34] sm:$0xf]  ;;  %v2205_v51 = vsel %vm5722_vm11, %v2200_v9, %v2204_v50  ;;  %v1990_v50 = vrot.slane %v1988_v62, 4  ;;  %v2231_v45 = vshrl.u32 %v2143_v33, 16  ;;  %v2234_v10 = vshll.u32 %v2143_v33, 16 }
 0x24e   : > { %4612 = vmatprep.subr.bf16.mxu1 %v4931_v61  ;;  %v4102_v24 = vcombine.low %v2195_v20, %v2205_v51  ;;  %v2216_v27 = vshll.u32 %v2141_v8, 16  ;;  %v2220_v28 = vshrl.u32 %v2141_v8, 16  ;;  %v2144_v8 = vld [vmem:[#allocation2 + $0x40] sm:$0xf]  ;;  %v1929_v51 = vld [vmem:[#allocation2 + $0x3c] sm:$0xe] }
 0x24f   : > { %v1779_v21 = vrot.slane %v1777_v41, 5  ;;  %v2240_v22 = vshll.u32 %v2144_v8, 16  ;;  %v2244_v46 = vshrl.u32 %v2144_v8, 16  ;;  %v2233_v32 = vrot.slane %v2231_v45, 4 }
 0x250   : > { %3424 = vmatmul.mubr.bf16.gmra.mrb[36].mxu1 %v4070_v55  ;;  %3520 = vmatprep.mubr.bf16.mxu0 %v4102_v24  ;;  %v2218_v29 = vrot.slane %v2216_v27, 5  ;;  %v2222_v16 = vrot.slane %v2220_v28, 4  ;;  %v1931_v24 = vld [vmem:[#allocation2 + $0x44] sm:$0x1]  ;;  %v2236_v26 = vrot.slane %v2234_v10, 5  ;;  %v2250_v56 = vshll.u32 %v2145_v12, 16 }
 0x251   : > { %4613 = vmatpush3.bf16.msra.mxu1 %v4931_v61  ;;  %3431 = vmatprep.mubr.bf16.mxu1 %v4087_v23  ;;  %v1928_v61 = vld [vmem:[#allocation2 + $0x38] sm:$0x1]  ;;  %v1764_v23 = vor.u32 %v1763_v7, %v1760_v18  ;;  %v2242_v27 = vrot.slane %v2240_v22, 5  ;;  %v2246_v28 = vrot.slane %v2244_v46, 4  ;;  %v1782_v62 = vshrl.u32 %v1673_v14, 16 }
 0x252   : > { %4614 = vmatprep.subr.bf16.mxu1 %v4933_v58  ;;  %3521 = vmatmul.mubr.bf16.gmra.mrb[56].mxu0 %v4930_v17  ;;  %v1991_v42 = vrot.slane %v1928_v61, 5  ;;  %v2223_v47 = vor.u32 %v2222_v16, %v2218_v29  ;;  %v2219_v55 = vsel %vm5722_vm11, %v2214_v53, %v2218_v29  ;;  %v1930_v17 = vld [vmem:[#allocation2 + $0x40] sm:$0xf]  ;;  %v4081_v61 = vrot.slane %v1929_v51, 9  ;;  %v1675_v16 = vld [vmem:[#allocation2 + $0x44] sm:$0x1] }
 0x253   : > { %v1765_v25 = vrot.slane %v1764_v23, 4  ;;  %v2252_v31 = vrot.slane %v2250_v56, 5  ;;  %v1995_v35 = vrot.slane %v1930_v17, 5  ;;  %v2247_v52 = vor.u32 %v2246_v28, %v2242_v27 }
 0x254   : > { %v2224_v63 = vrot.slane %v2223_v47, 4  ;;  %v1992_v0 = vsel %vm5726_vm14, %v1990_v50, %v1991_v42  ;;  %v1998_v29 = vrot.slane %v1931_v24, 5  ;;  %v4934_v47 = vld [vmem:[#allocation2 + $0x3c] sm:$0xff]   ;;  %v1785_v50 = vshll.u32 %v1673_v14, 16  ;;  %v1677_v14 = vld [vmem:[#allocation2 + $0x4c] sm:$0xf] }
 0x255   : > { %4615 = vmatpush3.bf16.msra.mxu1 %v4933_v58  ;;  %v1746_v58 = vsel %vm5722_vm11, %v1741_v30, %v1745_v19  ;;  %v4088_v15 = vcombine.low %v1989_v49, %v1992_v0  ;;  %v1774_v19 = vor.u32 %v1773_v3, %v1769_v60  ;;  %v2237_v30 = vor.u32 %v2236_v26, %v2233_v32 }
 0x256   : > { %4616 = vmatprep.subr.bf16.mxu1 %v4935_v13  ;;  %v4071_v48 = vcombine.low %v1746_v58, %v1756_v44  ;;  %v2229_v9 = vsel %vm5722_vm11, %v2224_v63, %v2228_v5  ;;  %v1996_v5 = vsel %vm5726_vm14, %v4081_v61, %v1995_v35  ;;  %v1997_v42 = vrot.slane %v1995_v35, 4  ;;  %v1932_v63 = vld [vmem:[#allocation2 + $0x48] sm:$0xe] }
 0x257   : > { %v4103_v20 = vcombine.low %v2219_v55, %v2229_v9  ;;  %v1775_v11 = vrot.slane %v1774_v19, 4  ;;  %v2238_v39 = vrot.slane %v2237_v30, 4  ;;  %v2248_v44 = vrot.slane %v2247_v52, 4  ;;  %v1933_v55 = vld [vmem:[#allocation2 + $0x4c] sm:$0xf] }
 0x258   : > { %3432 = vmatmul.mubr.bf16.gmra.mrb[40].mxu1 %v4071_v48  ;;  %v1784_v49 = vrot.slane %v1782_v62, 4  ;;  %v1791_v6 = vshll.u32 %v1674_v40, 16  ;;  %v2147_v48 = vld [vmem:[#allocation2 + $0x4c] sm:$0xf]  ;;  %v1999_v54 = vsel %vm5726_vm14, %v1997_v42, %v1998_v29  ;;  %v1795_v57 = vshrl.u32 %v1674_v40, 16 }
 0x259   : > { %4617 = vmatpush3.bf16.msra.mxu1 %v4935_v13  ;;  %v4941_v13 = vld [vmem:[#allocation9 + $0x238] sm:$0xff]   ;;  %3439 = vmatprep.mubr.bf16.mxu1 %v4088_v15  ;;  %v1780_v37 = vsel %vm5722_vm11, %v1775_v11, %v1779_v21  ;;  %v2243_v53 = vsel %vm5722_vm11, %v2238_v39, %v2242_v27  ;;  %v1801_v33 = vshll.u32 %v1675_v16, 16  ;;  %v4089_v0 = vcombine.low %v1996_v5, %v1999_v54  ;;  %v4936_v42 = vld [vmem:[#allocation2 + $0x48] sm:$0xff]  }
 0x25a   : > { %4618 = vmatprep.subr.bf16.mxu1 %v4937_v38  ;;  %3528 = vmatprep.mubr.bf16.mxu0 %v4103_v20  ;;  %v1787_v2 = vrot.slane %v1785_v50, 5  ;;  %v1793_v4 = vrot.slane %v1791_v6, 5  ;;  %v1934_v15 = vld [vmem:[#allocation2 + $0x50] sm:$0x1]  ;;  %v1797_v7 = vrot.slane %v1795_v57, 4  ;;  %v2255_v9 = vshrl.u32 %v2146_v36, 16 }
 0x25b   : > { %3529 = vmatmul.mubr.bf16.gmra.mrb[60].mxu0 %v4932_v1  ;;  %v2253_v1 = vsel %vm5722_vm11, %v2248_v44, %v2252_v31  ;;  %v1803_v8 = vrot.slane %v1801_v33, 5  ;;  %v2258_v41 = vshll.u32 %v2146_v36, 16  ;;  %v2264_v12 = vshll.u32 %v2147_v48, 16  ;;  %v2149_v52 = vld [vmem:[#allocation2 + $0x54] sm:$0xf] }
 0x25c   : > { %v4104_v18 = vcombine.low %v2243_v53, %v2253_v1  ;;  %v1788_v3 = vor.u32 %v1787_v2, %v1784_v49  ;;  %v1798_v20 = vor.u32 %v1797_v7, %v1793_v4  ;;  %v2257_v23 = vrot.slane %v2255_v9, 4  ;;  %v2151_v49 = vld [vmem:[#allocation2 + $0x5c] sm:$0x1]  ;;  %v1935_v50 = vld [vmem:[#allocation2 + $0x54] sm:$0xe] }
 0x25d   : > { %4619 = vmatpush3.bf16.msra.mxu1 %v4937_v38  ;;  %v1770_v38 = vsel %vm5722_vm11, %v1765_v25, %v1769_v60  ;;  %v1676_v60 = vld [vmem:[#allocation2 + $0x48] sm:$0xf]  ;;  %v4082_v10 = vrot.slane %v1932_v63, 9  ;;  %v2260_v17 = vrot.slane %v2258_v41, 5  ;;  %v2266_v19 = vrot.slane %v2264_v12, 5 }
 0x25e   : > { %4620 = vmatprep.subr.bf16.mxu1 %v4939_v59  ;;  %v4072_v58 = vcombine.low %v1770_v38, %v1780_v37  ;;  %3536 = vmatprep.mubr.bf16.mxu0 %v4104_v18  ;;  %v1789_v51 = vrot.slane %v1788_v3, 4  ;;  %v1799_v22 = vrot.slane %v1798_v20, 4  ;;  %v2002_v24 = vrot.slane %v1933_v55, 5  ;;  %v1678_v38 = vld [vmem:[#allocation2 + $0x50] sm:$0x1] }
 0x25f   : > { %v2005_v25 = vrot.slane %v1934_v15, 5  ;;  %v2261_v26 = vor.u32 %v2260_v17, %v2257_v23  ;;  %v1806_v11 = vshrl.u32 %v1676_v60, 16  ;;  %v1809_v30 = vshll.u32 %v1676_v60, 16  ;;  %v1936_v57 = vld [vmem:[#allocation2 + $0x58] sm:$0xf] }
 0x260   : > { %3440 = vmatmul.mubr.bf16.gmra.mrb[44].mxu1 %v4072_v58  ;;  %v1794_v32 = vsel %vm5722_vm11, %v1789_v51, %v1793_v4  ;;  %v1804_v27 = vsel %vm5722_vm11, %v1799_v22, %v1803_v8  ;;  %v2003_v28 = vsel %vm5726_vm14, %v4082_v10, %v2002_v24  ;;  %v2004_v61 = vrot.slane %v2002_v24, 4  ;;  %v2150_v58 = vld [vmem:[#allocation2 + $0x58] sm:$0xf]  ;;  %v1937_v33 = vld [vmem:[#allocation2 + $0x5c] sm:$0x1] }
 0x261   : > { %4621 = vmatpush3.bf16.msra.mxu1 %v4939_v59  ;;  %v2148_v59 = vld [vmem:[#allocation2 + $0x50] sm:$0x1]  ;;  %3447 = vmatprep.mubr.bf16.mxu1 %v4089_v0  ;;  %v4073_v31 = vcombine.low %v1794_v32, %v1804_v27  ;;  %v2262_v35 = vrot.slane %v2261_v26, 4  ;;  %v1808_v37 = vrot.slane %v1806_v11, 4  ;;  %v1811_v16 = vrot.slane %v1809_v30, 5 }
 0x262   : > { %4622 = vmatprep.subr.bf16.mxu1 %v4941_v13  ;;  %v2274_v45 = vshll.u32 %v2148_v59, 16  ;;  %v2006_v29 = vsel %vm5726_vm14, %v2004_v61, %v2005_v25  ;;  %v1815_v62 = vshll.u32 %v1677_v14, 16  ;;  %v1819_v36 = vshrl.u32 %v1677_v14, 16  ;;  %v1679_v18 = vld [vmem:[#allocation2 + $0x54] sm:$0xf] }
 0x263   : > { %3537 = vmatmul.mubr.bf16.gmra.mrb[64].mxu0 %v4934_v47  ;;  %v2267_v39 = vsel %vm5722_vm11, %v2262_v35, %v2266_v19  ;;  %v4090_v44 = vcombine.low %v2003_v28, %v2006_v29  ;;  %v1825_v47 = vshll.u32 %v1678_v38, 16  ;;  %v2279_v63 = vshrl.u32 %v2149_v52, 16  ;;  %v1680_v3 = vld [vmem:[#allocation2 + $0x58] sm:$0xf]  ;;  %v2153_v14 = vld [vmem:[#allocation2 + $0x64] sm:$0xf] }
 0x264   : > { %v2276_v46 = vrot.slane %v2274_v45, 5  ;;  %v1817_v53 = vrot.slane %v1815_v62, 5  ;;  %v1821_v54 = vrot.slane %v1819_v36, 4  ;;  %v2282_v1 = vshll.u32 %v2149_v52, 16  ;;  %v2154_v38 = vld [vmem:[#allocation2 + $0x68] sm:$0x1] }
 0x265   : > { %4623 = vmatpush3.bf16.msra.mxu1 %v4941_v13  ;;  %v2268_v13 = vshrl.u32 %v2147_v48, 16  ;;  %v1812_v48 = vor.u32 %v1811_v16, %v1808_v37  ;;  %v1827_v59 = vrot.slane %v1825_v47, 5  ;;  %v2288_v0 = vshll.u32 %v2150_v58, 16  ;;  %v1938_v37 = vld [vmem:[#allocation2 + $0x60] sm:$0xe]  ;;  %v4938_v16 = vld [vmem:[#allocation2 + $0x54] sm:$0xff]  }
 0x266   : > { %v1822_v4 = vor.u32 %v1821_v54, %v1817_v53  ;;  %v2292_v55 = vshrl.u32 %v2150_v58, 16  ;;  %v2298_v15 = vshll.u32 %v2151_v49, 16  ;;  %v2281_v7 = vrot.slane %v2279_v63, 4  ;;  %v1939_v52 = vld [vmem:[#allocation2 + $0x64] sm:$0xf] }
 0x267   : > { %v2270_v21 = vrot.slane %v2268_v13, 4  ;;  %v1813_v2 = vrot.slane %v1812_v48, 4  ;;  %v2284_v8 = vrot.slane %v2282_v1, 5  ;;  %v2290_v9 = vrot.slane %v2288_v0, 5  ;;  %v1940_v47 = vld [vmem:[#allocation2 + $0x68] sm:$0x1] }
 0x268   : > { %3448 = vmatmul.mubr.bf16.gmra.mrb[48].mxu1 %v4073_v31  ;;  %v4083_v60 = vrot.slane %v1935_v50, 9  ;;  %v1823_v12 = vrot.slane %v1822_v4, 4  ;;  %v2294_v13 = vrot.slane %v2292_v55, 4  ;;  %v2300_v20 = vrot.slane %v2298_v15, 5  ;;  %v1683_v63 = vld [vmem:[#allocation2 + $0x64] sm:$0xf] }
 0x269   : > { %v2271_v56 = vor.u32 %v2270_v21, %v2266_v19  ;;  %3455 = vmatprep.mubr.bf16.mxu1 %v4090_v44  ;;  %v1818_v41 = vsel %vm5722_vm11, %v1813_v2, %v1817_v53  ;;  %v2285_v23 = vor.u32 %v2284_v8, %v2281_v7  ;;  %v2009_v45 = vrot.slane %v1936_v57, 5  ;;  %v1681_v21 = vld [vmem:[#allocation2 + $0x5c] sm:$0x1]  ;;  %v1682_v53 = vld [vmem:[#allocation2 + $0x60] sm:$0xf] }
 0x26a   : > { %v2012_v10 = vrot.slane %v1937_v33, 5  ;;  %v1830_v51 = vshrl.u32 %v1679_v18, 16  ;;  %v1828_v17 = vsel %vm5722_vm11, %v1823_v12, %v1827_v59  ;;  %v2295_v19 = vor.u32 %v2294_v13, %v2290_v9 }
 0x26b   : > { %v2272_v40 = vrot.slane %v2271_v56, 4  ;;  %v1833_v22 = vshll.u32 %v1679_v18, 16  ;;  %v4074_v24 = vcombine.low %v1818_v41, %v1828_v17  ;;  %v2286_v25 = vrot.slane %v2285_v23, 4  ;;  %v2152_v56 = vld [vmem:[#allocation2 + $0x60] sm:$0xf] }
 0x26c   : > { %v2010_v32 = vsel %vm5726_vm14, %v4083_v60, %v2009_v45  ;;  %v2011_v26 = vrot.slane %v2009_v45, 4  ;;  %v2296_v11 = vrot.slane %v2295_v19, 4  ;;  %v1832_v27 = vrot.slane %v1830_v51, 4  ;;  %v2155_v45 = vld [vmem:[#allocation2 + $0x6c] sm:$0xf] }
 0x26d   : > { %v2277_v5 = vsel %vm5722_vm11, %v2272_v40, %v2276_v46  ;;  %v1839_v46 = vshll.u32 %v1680_v3, 16  ;;  %v1835_v28 = vrot.slane %v1833_v22, 5  ;;  %v2291_v30 = vsel %vm5722_vm11, %v2286_v25, %v2290_v9 }
 0x26e   : > { %v4105_v6 = vcombine.low %v2267_v39, %v2277_v5  ;;  %v2013_v31 = vsel %vm5726_vm14, %v2011_v26, %v2012_v10  ;;  %v1843_v35 = vshrl.u32 %v1680_v3, 16  ;;  %v1849_v40 = vshll.u32 %v1681_v21, 16  ;;  %v1684_v3 = vld [vmem:[#allocation2 + $0x68] sm:$0x1]  ;;  %v2156_v21 = vld [vmem:[#allocation2 + $0x70] sm:$0xf] }
 0x26f   : > { %v1841_v61 = vrot.slane %v1839_v46, 5  ;;  %v2301_v29 = vsel %vm5722_vm11, %v2296_v11, %v2300_v20  ;;  %v4091_v62 = vcombine.low %v2010_v32, %v2013_v31  ;;  %v1836_v36 = vor.u32 %v1835_v28, %v1832_v27  ;;  %v4940_v26 = vld [vmem:[#allocation2 + $0x60] sm:$0xff]   ;;  %v2157_v11 = vld [vmem:[#allocation2 + $0x74] sm:$0x1]  ;;  %v2390_v31 = vld [vmem:[#allocation2 + $0x18] sm:$0xe] }
 0x270   : > { %3544 = vmatprep.mubr.bf16.mxu0 %v4105_v6  ;;  %3456 = vmatmul.mubr.bf16.gmra.mrb[52].mxu1 %v4074_v24  ;;  %v2303_v58 = vshrl.u32 %v2152_v56, 16  ;;  %v4106_v39 = vcombine.low %v2291_v30, %v2301_v29  ;;  %v1845_v5 = vrot.slane %v1843_v35, 4  ;;  %v2306_v44 = vshll.u32 %v2152_v56, 16  ;;  %v2391_v35 = vld [vmem:[#allocation2 + $0x1c] sm:$0xf] }
 0x271   : > { %3545 = vmatmul.mubr.bf16.gmra.mrb[68].mxu0 %v4936_v42  ;;  %v1851_v42 = vrot.slane %v1849_v40, 5  ;;  %3463 = vmatprep.mubr.bf16.mxu1 %v4091_v62  ;;  %v1837_v49 = vrot.slane %v1836_v36, 4  ;;  %v2312_v6 = vshll.u32 %v2153_v14, 16  ;;  %v2316_v48 = vshrl.u32 %v2153_v14, 16 }
 0x272   : > { %v2305_v50 = vrot.slane %v2303_v58, 4  ;;  %3552 = vmatprep.mubr.bf16.mxu0 %v4106_v39  ;;  %v1846_v54 = vor.u32 %v1845_v5, %v1841_v61  ;;  %v2308_v57 = vrot.slane %v2306_v44, 5  ;;  %v2322_v33 = vshll.u32 %v2154_v38, 16  ;;  %v2393_v5 = vld [vmem:[#allocation2 + $0x24] sm:$0xe] }
 0x273   : > { %v4084_v59 = vrot.slane %v1938_v37, 9  ;;  %v1842_v1 = vsel %vm5722_vm11, %v1837_v49, %v1841_v61  ;;  %v2314_v0 = vrot.slane %v2312_v6, 5  ;;  %v2318_v2 = vrot.slane %v2316_v48, 4 }
 0x274   : > { %v2016_v4 = vrot.slane %v1939_v52, 5  ;;  %v1847_v55 = vrot.slane %v1846_v54, 4  ;;  %v2309_v15 = vor.u32 %v2308_v57, %v2305_v50  ;;  %v2324_v18 = vrot.slane %v2322_v33, 5  ;;  %v2394_v50 = vld [vmem:[#allocation2 + $0x28] sm:$0xf] }
 0x275   : > { %v2019_v7 = vrot.slane %v1940_v47, 5  ;;  %v2319_v8 = vor.u32 %v2318_v2, %v2314_v0  ;;  %v1854_v41 = vshrl.u32 %v1682_v53, 16  ;;  %v1857_v20 = vshll.u32 %v1682_v53, 16  ;;  %v2395_v57 = vld [vmem:[#allocation2 + $0x2c] sm:$0x1] }
 0x276   : > { %v2017_v9 = vsel %vm5726_vm14, %v4084_v59, %v2016_v4  ;;  %v2018_v60 = vrot.slane %v2016_v4, 4  ;;  %v1852_v12 = vsel %vm5722_vm11, %v1847_v55, %v1851_v42  ;;  %v2310_v13 = vrot.slane %v2309_v15, 4  ;;  %v2397_v2 = vld [vmem:[#allocation2 + $0x34] sm:$0xf] }
 0x277   : > { %v1863_v23 = vshll.u32 %v1683_v63, 16  ;;  %v4075_v10 = vcombine.low %v1842_v1, %v1852_v12  ;;  %v2320_v51 = vrot.slane %v2319_v8, 4  ;;  %v1856_v19 = vrot.slane %v1854_v41, 4 }
 0x278   : > { %v2020_v17 = vsel %vm5726_vm14, %v2018_v60, %v2019_v7  ;;  %v2315_v22 = vsel %vm5722_vm11, %v2310_v13, %v2314_v0  ;;  %v1859_v24 = vrot.slane %v1857_v20, 5  ;;  %v1867_v56 = vshrl.u32 %v1683_v63, 16  ;;  %v2396_v0 = vld [vmem:[#allocation2 + $0x30] sm:$0xe]  ;;  %v2400_v20 = vld [vmem:[#allocation2 + $0x40] sm:$0xf] }
 0x279   : > { %3553 = vmatmul.mubr.bf16.gmra.mrb[72].mxu0 %v4938_v16  ;;  %v4092_v46 = vcombine.low %v2017_v9, %v2020_v17  ;;  %v1865_v25 = vrot.slane %v1863_v23, 5  ;;  %3464 = vmatmul.mubr.bf16.gmra.mrb[56].mxu1 %v4075_v10  ;;  %v2325_v32 = vsel %vm5722_vm11, %v2320_v51, %v2324_v18  ;;  %v1873_v14 = vshll.u32 %v1684_v3, 16  ;;  %v2392_v16 = vld [vmem:[#allocation2 + $0x20] sm:$0x1]  ;;  %v2398_v18 = vld [vmem:[#allocation2 + $0x38] sm:$0x1] }
 0x27a   : > { %v2327_v27 = vshrl.u32 %v2155_v45, 16  ;;  %v4107_v28 = vcombine.low %v2315_v22, %v2325_v32  ;;  %v1860_v61 = vor.u32 %v1859_v24, %v1856_v19  ;;  %v2330_v38 = vshll.u32 %v2155_v45, 16  ;;  %v4942_v45 = vld [vmem:[#allocation2 + $0x6c] sm:$0xff]   ;;  %v2399_v32 = vld [vmem:[#allocation2 + $0x3c] sm:$0xe] }
 0x27b   : > { %3471 = vmatprep.mubr.bf16.mxu1 %v4092_v46  ;;  %v2336_v30 = vshll.u32 %v2156_v21, 16  ;;  %v1869_v40 = vrot.slane %v1867_v56, 4  ;;  %v1875_v37 = vrot.slane %v1873_v14, 5  ;;  %v2340_v29 = vshrl.u32 %v2156_v21, 16  ;;  %v2403_v19 = vld [vmem:[#allocation2 + $0x4c] sm:$0xf] }
 0x27c   : > { %v2329_v52 = vrot.slane %v2327_v27, 4  ;;  %3560 = vmatprep.mubr.bf16.mxu0 %v4107_v28  ;;  %v1861_v62 = vrot.slane %v1860_v61, 4  ;;  %v2332_v36 = vrot.slane %v2330_v38, 5  ;;  %v2346_v39 = vshll.u32 %v2157_v11, 16  ;;  %v2402_v11 = vld [vmem:[#allocation2 + $0x48] sm:$0xe] }
 0x27d   : > { %v2338_v58 = vrot.slane %v2336_v30, 5  ;;  %v1870_v42 = vor.u32 %v1869_v40, %v1865_v25  ;;  %v2342_v44 = vrot.slane %v2340_v29, 4  ;;  %v4109_v47 = vrot.slane %v2390_v31, 9  ;;  %v2404_v27 = vld [vmem:[#allocation2 + $0x50] sm:$0x1] }
 0x27e   : > { %v2440_v49 = vrot.slane %v2391_v35, 5  ;;  %v1866_v6 = vsel %vm5722_vm11, %v1861_v62, %v1865_v25  ;;  %v2333_v48 = vor.u32 %v2332_v36, %v2329_v52  ;;  %v2348_v53 = vrot.slane %v2346_v39, 5  ;;  %v2406_v52 = vld [vmem:[#allocation2 + $0x58] sm:$0xf]  ;;  %v2409_v29 = vld [vmem:[#allocation2 + $0x64] sm:$0xf] }
 0x27f   : > { %v2443_v54 = vrot.slane %v2392_v16, 5  ;;  %v1871_v33 = vrot.slane %v1870_v42, 4  ;;  %v2343_v59 = vor.u32 %v2342_v44, %v2338_v58  ;;  %v4110_v55 = vrot.slane %v2393_v5, 9  ;;  %v2405_v5 = vld [vmem:[#allocation2 + $0x54] sm:$0xe] }
 0x280   : > { %v2441_v63 = vsel %vm5726_vm14, %v4109_v47, %v2440_v49  ;;  %v2442_v1 = vrot.slane %v2440_v49, 4  ;;  %v2334_v4 = vrot.slane %v2333_v48, 4  ;;  %v2447_v15 = vrot.slane %v2394_v50, 5  ;;  %v2407_v42 = vld [vmem:[#allocation2 + $0x5c] sm:$0x1] }
 0x281   : > { %3561 = vmatmul.mubr.bf16.gmra.mrb[76].mxu0 %v4940_v26  ;;  %v1876_v7 = vsel %vm5722_vm11, %v1871_v33, %v1875_v37  ;;  %v2344_v8 = vrot.slane %v2343_v59, 4  ;;  %v2450_v60 = vrot.slane %v2395_v57, 5  ;;  %v4111_v13 = vrot.slane %v2396_v0, 9  ;;  %v2401_v26 = vld [vmem:[#allocation2 + $0x44] sm:$0x1] }
 0x282   : > { %v2444_v9 = vsel %vm5726_vm14, %v2442_v1, %v2443_v54  ;;  %v4076_v3 = vcombine.low %v1866_v6, %v1876_v7  ;;  %v2339_v41 = vsel %vm5722_vm11, %v2334_v4, %v2338_v58  ;;  %v2449_v10 = vrot.slane %v2447_v15, 4  ;;  %v2408_v47 = vld [vmem:[#allocation2 + $0x60] sm:$0xe]  ;;  %v2410_v49 = vld [vmem:[#allocation2 + $0x68] sm:$0x1] }
 0x283   : > { %v4117_v12 = vcombine.low %v2441_v63, %v2444_v9  ;;  %v2349_v23 = vsel %vm5722_vm11, %v2344_v8, %v2348_v53  ;;  %v2454_v51 = vrot.slane %v2397_v2, 5  ;;  %v2457_v17 = vrot.slane %v2398_v18, 5  ;;  %v2412_v63 = vld [vmem:[#allocation2 + $0x70] sm:$0xf]  ;;  %v2413_v18 = vld [vmem:[#allocation2 + $0x74] sm:$0x1] }
 0x284   : > { %3472 = vmatmul.mubr.bf16.gmra.mrb[60].mxu1 %v4076_v3  ;;  %v4108_v21 = vcombine.low %v2339_v41, %v2349_v23  ;;  %v2448_v22 = vsel %vm5726_vm14, %v4110_v55, %v2447_v15  ;;  %v2451_v46 = vsel %vm5726_vm14, %v2449_v10, %v2450_v60  ;;  %v2461_v25 = vrot.slane %v2400_v20, 5  ;;  %v2411_v15 = vld [vmem:[#allocation2 + $0x6c] sm:$0xe]  ;;  %v5925_v23 = vld [vmem:[%s6193_s4] ss:$0 sm:$0xff] }
 0x285   : > { %4624 = vmatprep.mubr.bf16.mxu1 %v4117_v12  ;;  %v2456_v24 = vrot.slane %v2454_v51, 4  ;;  %v2455_v43 = vsel %vm5726_vm14, %v4111_v13, %v2454_v51  ;;  %v2468_v56 = vrot.slane %v2403_v19, 5  ;;  %v4118_v28 = vcombine.low %v2448_v22, %v2451_v46 }
 0x286   : > { %3568 = vmatprep.mubr.bf16.mxu0 %v4108_v21  ;;  %v4112_v38 = vrot.slane %v2399_v32, 9  ;;  %v2463_v30 = vrot.slane %v2461_v25, 4  ;;  %v2464_v31 = vrot.slane %v2401_v26, 5  ;;  %v4113_v35 = vrot.slane %v2402_v11, 9 }
 0x287   : > { %v2458_v14 = vsel %vm5726_vm14, %v2456_v24, %v2457_v17  ;;  %v2470_v40 = vrot.slane %v2468_v56, 4  ;;  %v2471_v37 = vrot.slane %v2404_v27, 5  ;;  %v2475_v36 = vrot.slane %v2406_v52, 5 }
 0x288   : > { %v4119_v61 = vcombine.low %v2455_v43, %v2458_v14  ;;  %v2462_v16 = vsel %vm5726_vm14, %v4112_v38, %v2461_v25  ;;  %v2465_v62 = vsel %vm5726_vm14, %v2463_v30, %v2464_v31  ;;  %v2469_v58 = vsel %vm5726_vm14, %v4113_v35, %v2468_v56 }
 0x289   : > { %3569 = vmatmul.mubr.bf16.gmra.mrb[80].mxu0 %v4942_v45  ;;  %v2472_v39 = vsel %vm5726_vm14, %v2470_v40, %v2471_v37  ;;  %v2482_v44 = vrot.slane %v2409_v29, 5  ;;  %v4120_v50 = vcombine.low %v2462_v16, %v2465_v62  ;;  %v4114_v48 = vrot.slane %v2405_v5, 9 }
 0x28a   : > { %v4121_v6 = vcombine.low %v2469_v58, %v2472_v39  ;;  %v2477_v53 = vrot.slane %v2475_v36, 4  ;;  %v2478_v54 = vrot.slane %v2407_v42, 5  ;;  %v4115_v57 = vrot.slane %v2408_v47, 9 }
 0x28b   : > { %v2484_v33 = vrot.slane %v2482_v44, 4  ;;  %v2485_v59 = vrot.slane %v2410_v49, 5  ;;  %v2476_v1 = vsel %vm5726_vm14, %v4114_v48, %v2475_v36  ;;  %v2489_v2 = vrot.slane %v2412_v63, 5 }
 0x28c   : > { %4625 = vmatmul.mubr.bf16.vlgmr.msra.gmra.mrb[64].mxu1 %v4118_v28  ;;  %v2479_v0 = vsel %vm5726_vm14, %v2477_v53, %v2478_v54  ;;  %v2483_v4 = vsel %vm5726_vm14, %v4115_v57, %v2482_v44  ;;  %v4116_v9 = vrot.slane %v2411_v15, 9  ;;  %v2492_v3 = vrot.slane %v2413_v18, 5 }
 0x28d   : > { %4628 = vmatprep.mubr.bf16.mxu1 %v4119_v61  ;;  %v2486_v55 = vsel %vm5726_vm14, %v2484_v33, %v2485_v59  ;;  %v4122_v7 = vcombine.low %v2476_v1, %v2479_v0  ;;  %v2491_v60 = vrot.slane %v2489_v2, 4 }
 0x28e   : > { %v4123_v8 = vcombine.low %v2483_v4, %v2486_v55  ;;  %v2490_v41 = vsel %vm5726_vm14, %v4116_v9, %v2489_v2 }
 0x28f   : > { %v2493_v12 = vsel %vm5726_vm14, %v2491_v60, %v2492_v3 }
 0x290   : > { %v4124_v13 = vcombine.low %v2490_v41, %v2493_v12 }
 0x294   : > { %4629 = vmatmul.mubr.bf16.gmra.mrb[68].mxu1 %v4120_v50 }
 0x295   : > { %4632 = vmatprep.mubr.bf16.mxu1 %v4121_v6 }
 0x29c   : > { %4633 = vmatmul.mubr.bf16.gmra.mrb[72].mxu1 %v4122_v7 }
 0x29d   : > { %4636 = vmatprep.mubr.bf16.mxu1 %v4123_v8 }
 0x2a4   : > { %4637 = vmatmul.mubr.bf16.gmra.mrb[76].mxu1 %v4124_v13 }
 0x2db   : > { %v4316_v20 = vpop.f32.mrb[0].mxu1 }
 0x2dc   : > { %v4317_v45 = vpop.f32.mrb[1].mxu1 }
 0x2dd   : > { %v4318_v10 = vadd.f32 %v4317_v45, %v4316_v20  ;;  %v4319_v51 = vpop.f32.mrb[2].mxu1  ;;  %v4380_v17 = vpop.f32.mrb[20].mxu0 }
 0x2de   : > { %v4320_v19 = vpop.f32.mrb[3].mxu1  ;;  %v4381_v21 = vpop.f32.mrb[21].mxu0 }
 0x2df   : > { %v3224_v22 = vadd.f32 %v4318_v10, %v5925_v23  ;;  %v4321_v46 = vadd.f32 %v4320_v19, %v4319_v51  ;;  %v4382_v24 = vadd.f32 %v4381_v21, %v4380_v17  ;;  %v4383_v34 = vpop.f32.mrb[22].mxu0 }
 0x2e0   : > { %v4384_v25 = vpop.f32.mrb[23].mxu0 }
 0x2e1   : > { %v3227_v43 = vadd.f32 %v4321_v46, %v5925_v23  ;;  %v5929_v32 = vadd.f32 %v4382_v24, %v3224_v22  ;;  %v4385_v26 = vadd.f32 %v4384_v25, %v4383_v34 }
 0x2e3   : > { %v5931_v56 = vadd.f32 %v4385_v26, %v3227_v43  ;;  %v4322_v14 = vpop.f32.mrb[4].mxu1 }
 0x2e4   : > { %v4323_v27 = vpop.f32.mrb[5].mxu1 }
 0x2e5   : > { %v4386_v11 = vpop.f32.mrb[24].mxu0  ;;  %v4324_v61 = vadd.f32 %v4323_v27, %v4322_v14  ;;  %v4325_v38 = vpop.f32.mrb[6].mxu1 }
 0x2e6   : > { %v4387_v28 = vpop.f32.mrb[25].mxu0  ;;  %v4326_v35 = vpop.f32.mrb[7].mxu1 }
 0x2e7   : > { %v4388_v30 = vadd.f32 %v4387_v28, %v4386_v11  ;;  %v4389_v31 = vpop.f32.mrb[26].mxu0  ;;  %v3232_v37 = vadd.f32 %v4324_v61, %v5925_v23  ;;  %v4327_v52 = vadd.f32 %v4326_v35, %v4325_v38 }
 0x2e8   : > { %v4390_v40 = vpop.f32.mrb[27].mxu0 }
 0x2e9   : > { %v4391_v29 = vadd.f32 %v4390_v40, %v4389_v31  ;;  %v3235_v16 = vadd.f32 %v4327_v52, %v5925_v23  ;;  %v5935_v62 = vadd.f32 %v4388_v30, %v3232_v37 }
 0x2eb   : > { %v5937_v36 = vadd.f32 %v4391_v29, %v3235_v16  ;;  %v4328_v58 = vpop.f32.mrb[8].mxu1 }
 0x2ec   : > { %v4329_v5 = vpop.f32.mrb[9].mxu1 }
 0x2ed   : > { %v4392_v39 = vpop.f32.mrb[28].mxu0  ;;  %v4330_v44 = vadd.f32 %v4329_v5, %v4328_v58  ;;  %v4331_v47 = vpop.f32.mrb[10].mxu1 }
 0x2ee   : > { %v4393_v42 = vpop.f32.mrb[29].mxu0  ;;  %v4332_v6 = vpop.f32.mrb[11].mxu1 }
 0x2ef   : > { %v4394_v49 = vadd.f32 %v4393_v42, %v4392_v39  ;;  %v4395_v50 = vpop.f32.mrb[30].mxu0  ;;  %v3240_v53 = vadd.f32 %v4330_v44, %v5925_v23  ;;  %v4333_v54 = vadd.f32 %v4332_v6, %v4331_v47 }
 0x2f0   : > { %v4396_v48 = vpop.f32.mrb[31].mxu0 }
 0x2f1   : > { %v4397_v57 = vadd.f32 %v4396_v48, %v4395_v50  ;;  %v3243_v33 = vadd.f32 %v4333_v54, %v5925_v23  ;;  %v5941_v59 = vadd.f32 %v4394_v49, %v3240_v53 }
 0x2f3   : > { %v5943_v63 = vadd.f32 %v4397_v57, %v3243_v33  ;;  %v4334_v1 = vpop.f32.mrb[12].mxu1 }
 0x2f4   : > { %v4335_v2 = vpop.f32.mrb[13].mxu1 }
 0x2f5   : > { %v4398_v0 = vpop.f32.mrb[32].mxu0  ;;  %v4336_v55 = vadd.f32 %v4335_v2, %v4334_v1  ;;  %v4337_v15 = vpop.f32.mrb[14].mxu1 }
 0x2f6   : > { %v4399_v4 = vpop.f32.mrb[33].mxu0  ;;  %v4338_v8 = vpop.f32.mrb[15].mxu1 }
 0x2f7   : > { %v4400_v18 = vadd.f32 %v4399_v4, %v4398_v0  ;;  %v4401_v7 = vpop.f32.mrb[34].mxu0  ;;  %v3248_v60 = vadd.f32 %v4336_v55, %v5925_v23  ;;  %v4339_v3 = vadd.f32 %v4338_v8, %v4337_v15 }
 0x2f8   : > { %v4402_v9 = vpop.f32.mrb[35].mxu0 }
 0x2f9   : > { %v4403_v41 = vadd.f32 %v4402_v9, %v4401_v7  ;;  %v3251_v12 = vadd.f32 %v4339_v3, %v5925_v23  ;;  %v5947_v13 = vadd.f32 %v4400_v18, %v3248_v60 }
 0x2fb   : > { %v5949_v20 = vadd.f32 %v4403_v41, %v3251_v12  ;;  %v4340_v45 = vpop.f32.mrb[16].mxu1 }
 0x2fc   : > { %v4341_v10 = vpop.f32.mrb[17].mxu1 }
 0x2fd   : > { %v4404_v51 = vpop.f32.mrb[36].mxu0  ;;  %v4342_v17 = vadd.f32 %v4341_v10, %v4340_v45  ;;  %v4343_v19 = vpop.f32.mrb[18].mxu1 }
 0x2fe   : > { %v4405_v21 = vpop.f32.mrb[37].mxu0  ;;  %v4344_v22 = vpop.f32.mrb[19].mxu1 }
 0x2ff   : > { %v4406_v46 = vadd.f32 %v4405_v21, %v4404_v51  ;;  %v4407_v24 = vpop.f32.mrb[38].mxu0  ;;  %v3256_v34 = vadd.f32 %v4342_v17, %v5925_v23  ;;  %v4345_v25 = vadd.f32 %v4344_v22, %v4343_v19 }
 0x300   : > { %v4408_v43 = vpop.f32.mrb[39].mxu0 }
 0x301   : > { %v4409_v26 = vadd.f32 %v4408_v43, %v4407_v24  ;;  %v3259_v14 = vadd.f32 %v4345_v25, %v5925_v23  ;;  %v5953_v11 = vadd.f32 %v4406_v46, %v3256_v34 }
 0x303   : > { %v5955_v27 = vadd.f32 %v4409_v26, %v3259_v14  ;;  %v4346_v28 = vpop.f32.mrb[20].mxu1 }
 0x304   : > { %v4347_v61 = vpop.f32.mrb[21].mxu1 }
 0x305   : > { %v4410_v38 = vpop.f32.mrb[40].mxu0  ;;  %v4348_v30 = vadd.f32 %v4347_v61, %v4346_v28  ;;  %v4349_v31 = vpop.f32.mrb[22].mxu1 }
 0x306   : > { %v4411_v35 = vpop.f32.mrb[41].mxu0  ;;  %v4350_v40 = vpop.f32.mrb[23].mxu1 }
 0x307   : > { %v4412_v37 = vadd.f32 %v4411_v35, %v4410_v38  ;;  %v4413_v52 = vpop.f32.mrb[42].mxu0  ;;  %v3264_v29 = vadd.f32 %v4348_v30, %v5925_v23  ;;  %v4351_v16 = vadd.f32 %v4350_v40, %v4349_v31 }
 0x308   : > { %v4414_v58 = vpop.f32.mrb[43].mxu0 }
 0x309   : > { %v4415_v39 = vadd.f32 %v4414_v58, %v4413_v52  ;;  %v3267_v5 = vadd.f32 %v4351_v16, %v5925_v23  ;;  %v5959_v42 = vadd.f32 %v4412_v37, %v3264_v29 }
 0x30b   : > { %v5961_v44 = vadd.f32 %v4415_v39, %v3267_v5  ;;  %v4352_v47 = vpop.f32.mrb[24].mxu1 }
 0x30c   : > { %v4353_v49 = vpop.f32.mrb[25].mxu1 }
 0x30d   : > { %v4354_v50 = vadd.f32 %v4353_v49, %v4352_v47  ;;  %v4355_v6 = vpop.f32.mrb[26].mxu1  ;;  %v4416_v48 = vpop.f32.mrb[44].mxu0 }
 0x30e   : > { %v4356_v53 = vpop.f32.mrb[27].mxu1  ;;  %v4417_v54 = vpop.f32.mrb[45].mxu0 }
 0x30f   : > { %v3272_v57 = vadd.f32 %v4354_v50, %v5925_v23  ;;  %v4357_v33 = vadd.f32 %v4356_v53, %v4355_v6  ;;  %v4418_v1 = vadd.f32 %v4417_v54, %v4416_v48  ;;  %v4419_v0 = vpop.f32.mrb[46].mxu0 }
 0x310   : > { %v4420_v2 = vpop.f32.mrb[47].mxu0 }
 0x311   : > { %v3275_v4 = vadd.f32 %v4357_v33, %v5925_v23  ;;  %v5965_v55 = vadd.f32 %v4418_v1, %v3272_v57  ;;  %v4421_v15 = vadd.f32 %v4420_v2, %v4419_v0 }
 0x313   : > { %v5967_v18 = vadd.f32 %v4421_v15, %v3275_v4  ;;  %v4358_v7 = vpop.f32.mrb[28].mxu1 }
 0x314   : > { %v4359_v8 = vpop.f32.mrb[29].mxu1 }
 0x315   : > { %v4360_v9 = vadd.f32 %v4359_v8, %v4358_v7  ;;  %v4361_v60 = vpop.f32.mrb[30].mxu1  ;;  %v4422_v3 = vpop.f32.mrb[48].mxu0 }
 0x316   : > { %v4362_v41 = vpop.f32.mrb[31].mxu1  ;;  %v4423_v12 = vpop.f32.mrb[49].mxu0 }
 0x317   : > { %v3280_v45 = vadd.f32 %v4360_v9, %v5925_v23  ;;  %v4363_v10 = vadd.f32 %v4362_v41, %v4361_v60  ;;  %v4424_v51 = vadd.f32 %v4423_v12, %v4422_v3  ;;  %v4425_v17 = vpop.f32.mrb[50].mxu0 }
 0x318   : > { %v4426_v19 = vpop.f32.mrb[51].mxu0 }
 0x319   : > { %v3283_v21 = vadd.f32 %v4363_v10, %v5925_v23  ;;  %v5971_v22 = vadd.f32 %v4424_v51, %v3280_v45  ;;  %v4427_v46 = vadd.f32 %v4426_v19, %v4425_v17 }
 0x31b   : > { %v5973_v24 = vadd.f32 %v4427_v46, %v3283_v21  ;;  %v4444_v34 = vpop.f32.mrb[32].mxu1 }
 0x31c   : > { %v4445_v25 = vpop.f32.mrb[33].mxu1 }
 0x31d   : > { %v4446_v43 = vadd.f32 %v4445_v25, %v4444_v34  ;;  %v4447_v26 = vpop.f32.mrb[34].mxu1  ;;  %v4508_v38 = vpop.f32.mrb[52].mxu0 }
 0x31e   : > { %v4448_v14 = vpop.f32.mrb[35].mxu1  ;;  %v4509_v31 = vpop.f32.mrb[53].mxu0 }
 0x31f   : > { %v3418_v28 = vadd.f32 %v4446_v43, %v5929_v32  ;;  %v4449_v61 = vadd.f32 %v4448_v14, %v4447_v26  ;;  %v4510_v35 = vadd.f32 %v4509_v31, %v4508_v38  ;;  %v4511_v40 = vpop.f32.mrb[54].mxu0 }
 0x320   : > { %v4512_v23 = vpop.f32.mrb[55].mxu0 }
 0x321   : > { %v3421_v30 = vadd.f32 %v4449_v61, %v5931_v56  ;;  %v4513_v37 = vadd.f32 %v4512_v23, %v4511_v40  ;;  %v5977_v52 = vadd.f32 %v4510_v35, %v3418_v28 }
 0x323   : > { %v4450_v29 = vpop.f32.mrb[36].mxu1  ;;  %v5979_v16 = vadd.f32 %v4513_v37, %v3421_v30 }
 0x324   : > { %v4451_v58 = vpop.f32.mrb[37].mxu1 }
 0x325   : > { %v4452_v39 = vadd.f32 %v4451_v58, %v4450_v29  ;;  %v4453_v5 = vpop.f32.mrb[38].mxu1  ;;  %v4514_v50 = vpop.f32.mrb[56].mxu0 }
 0x326   : > { %v4454_v47 = vpop.f32.mrb[39].mxu1  ;;  %v4515_v6 = vpop.f32.mrb[57].mxu0 }
 0x327   : > { %v3426_v32 = vadd.f32 %v4452_v39, %v5935_v62  ;;  %v4455_v49 = vadd.f32 %v4454_v47, %v4453_v5  ;;  %v4516_v48 = vadd.f32 %v4515_v6, %v4514_v50  ;;  %v4517_v53 = vpop.f32.mrb[58].mxu0 }
 0x328   : > { %v4518_v54 = vpop.f32.mrb[59].mxu0 }
 0x329   : > { %v3429_v56 = vadd.f32 %v4455_v49, %v5937_v36  ;;  %v4519_v57 = vadd.f32 %v4518_v54, %v4517_v53  ;;  %v5983_v33 = vadd.f32 %v4516_v48, %v3426_v32 }
 0x32b   : > { %v4456_v1 = vpop.f32.mrb[40].mxu1  ;;  %v5985_v2 = vadd.f32 %v4519_v57, %v3429_v56 }
 0x32c   : > { %v4457_v0 = vpop.f32.mrb[41].mxu1 }
 0x32d   : > { %v4458_v4 = vadd.f32 %v4457_v0, %v4456_v1  ;;  %v4459_v15 = vpop.f32.mrb[42].mxu1 }
 0x32e   : > { %v4460_v7 = vpop.f32.mrb[43].mxu1  ;;  %v4520_v9 = vpop.f32.mrb[60].mxu0 }
 0x32f   : > { %v3434_v62 = vadd.f32 %v4458_v4, %v5941_v59  ;;  %v4461_v8 = vadd.f32 %v4460_v7, %v4459_v15  ;;  %v4521_v60 = vpop.f32.mrb[61].mxu0 }
 0x330   : > { %v4522_v3 = vadd.f32 %v4521_v60, %v4520_v9  ;;  %v4523_v41 = vpop.f32.mrb[62].mxu0 }
 0x331   : > { %v3437_v36 = vadd.f32 %v4461_v8, %v5943_v63  ;;  %v4524_v12 = vpop.f32.mrb[63].mxu0 }
 0x332   : > { %v4525_v45 = vadd.f32 %v4524_v12, %v4523_v41  ;;  %v5989_v10 = vadd.f32 %v4522_v3, %v3434_v62 }
 0x333   : > { %v4462_v51 = vpop.f32.mrb[44].mxu1 }
 0x334   : > { %v4463_v17 = vpop.f32.mrb[45].mxu1  ;;  %v5991_v19 = vadd.f32 %v4525_v45, %v3437_v36 }
 0x335   : > { %v4464_v21 = vadd.f32 %v4463_v17, %v4462_v51  ;;  %v4465_v46 = vpop.f32.mrb[46].mxu1 }
 0x336   : > { %v4466_v34 = vpop.f32.mrb[47].mxu1  ;;  %v4526_v43 = vpop.f32.mrb[64].mxu0 }
 0x337   : > { %v3442_v59 = vadd.f32 %v4464_v21, %v5947_v13  ;;  %v4467_v25 = vadd.f32 %v4466_v34, %v4465_v46  ;;  %v4527_v26 = vpop.f32.mrb[65].mxu0 }
 0x338   : > { %v4528_v14 = vadd.f32 %v4527_v26, %v4526_v43  ;;  %v4529_v28 = vpop.f32.mrb[66].mxu0 }
 0x339   : > { %v3445_v63 = vadd.f32 %v4467_v25, %v5949_v20  ;;  %v4530_v61 = vpop.f32.mrb[67].mxu0 }
 0x33a   : > { %v4531_v38 = vadd.f32 %v4530_v61, %v4529_v28  ;;  %v5995_v30 = vadd.f32 %v4528_v14, %v3442_v59 }
 0x33b   : > { %v4468_v31 = vpop.f32.mrb[48].mxu1 }
 0x33c   : > { %v5997_v35 = vadd.f32 %v4531_v38, %v3445_v63  ;;  %v4469_v40 = vpop.f32.mrb[49].mxu1 }
 0x33d   : > { %v4470_v23 = vadd.f32 %v4469_v40, %v4468_v31  ;;  %v4471_v37 = vpop.f32.mrb[50].mxu1 }
 0x33e   : > { %v4472_v29 = vpop.f32.mrb[51].mxu1 }
 0x33f   : > { %v3450_v13 = vadd.f32 %v4470_v23, %v5953_v11  ;;  %v4473_v39 = vadd.f32 %v4472_v29, %v4471_v37 }
 0x341   : > { %v3453_v20 = vadd.f32 %v4473_v39, %v5955_v27 }
 0x343   : > { %v4474_v6 = vpop.f32.mrb[52].mxu1 }
 0x344   : > { %v4532_v58 = vpop.f32.mrb[68].mxu0  ;;  %v4475_v53 = vpop.f32.mrb[53].mxu1 }
 0x345   : > { %v4533_v5 = vpop.f32.mrb[69].mxu0  ;;  %v4476_v54 = vadd.f32 %v4475_v53, %v4474_v6  ;;  %v4477_v57 = vpop.f32.mrb[54].mxu1 }
 0x346   : > { %v4534_v47 = vadd.f32 %v4533_v5, %v4532_v58  ;;  %v4535_v32 = vpop.f32.mrb[70].mxu0  ;;  %v4478_v1 = vpop.f32.mrb[55].mxu1 }
 0x347   : > { %v4536_v49 = vpop.f32.mrb[71].mxu0  ;;  %v3458_v11 = vadd.f32 %v4476_v54, %v5959_v42  ;;  %v4479_v0 = vadd.f32 %v4478_v1, %v4477_v57 }
 0x348   : > { %v4537_v50 = vadd.f32 %v4536_v49, %v4535_v32  ;;  %v6001_v56 = vadd.f32 %v4534_v47, %v3450_v13 }
 0x349   : > { %v3461_v15 = vadd.f32 %v4479_v0, %v5961_v44 }
 0x34a   : > { %v6003_v48 = vadd.f32 %v4537_v50, %v3453_v20 }
 0x34c   : > { %v4538_v4 = vpop.f32.mrb[72].mxu0  ;;  %v4480_v60 = vpop.f32.mrb[56].mxu1 }
 0x34d   : > { %v4539_v27 = vpop.f32.mrb[73].mxu0  ;;  %v4481_v41 = vpop.f32.mrb[57].mxu1 }
 0x34e   : > { %v4540_v7 = vadd.f32 %v4539_v27, %v4538_v4  ;;  %v4541_v62 = vpop.f32.mrb[74].mxu0  ;;  %v4482_v12 = vadd.f32 %v4481_v41, %v4480_v60  ;;  %v4483_v45 = vpop.f32.mrb[58].mxu1 }
 0x34f   : > { %v4542_v8 = vpop.f32.mrb[75].mxu0  ;;  %v4484_v51 = vpop.f32.mrb[59].mxu1 }
 0x350   : > { %v4543_v9 = vadd.f32 %v4542_v8, %v4541_v62  ;;  %v6007_v36 = vadd.f32 %v4540_v7, %v3458_v11  ;;  %v3466_v42 = vadd.f32 %v4482_v12, %v5965_v55  ;;  %v4485_v21 = vadd.f32 %v4484_v51, %v4483_v45 }
 0x352   : > { %v6009_v3 = vadd.f32 %v4543_v9, %v3461_v15  ;;  %v3469_v44 = vadd.f32 %v4485_v21, %v5967_v18 }
 0x354   : > { %v4544_v17 = vpop.f32.mrb[76].mxu0 }
 0x355   : > { %v4545_v46 = vpop.f32.mrb[77].mxu0 }
 0x356   : > { %v4546_v34 = vadd.f32 %v4545_v46, %v4544_v17  ;;  %v4547_v59 = vpop.f32.mrb[78].mxu0 }
 0x357   : > { %v4548_v25 = vpop.f32.mrb[79].mxu0  ;;  %v4486_v14 = vpop.f32.mrb[60].mxu1 }
 0x358   : > { %v4549_v43 = vadd.f32 %v4548_v25, %v4547_v59  ;;  %v6013_v63 = vadd.f32 %v4546_v34, %v3466_v42  ;;  %v4487_v28 = vpop.f32.mrb[61].mxu1 }
 0x359   : > { %v4488_v61 = vadd.f32 %v4487_v28, %v4486_v14  ;;  %v4489_v38 = vpop.f32.mrb[62].mxu1 }
 0x35a   : > { %v6015_v26 = vadd.f32 %v4549_v43, %v3469_v44  ;;  %v4490_v40 = vpop.f32.mrb[63].mxu1 }
 0x35b   : > { %v3474_v55 = vadd.f32 %v4488_v61, %v5971_v22  ;;  %v4491_v23 = vadd.f32 %v4490_v40, %v4489_v38 }
 0x35c   : > { %v4550_v31 = vpop.f32.mrb[80].mxu0 }
 0x35d   : > { %v4551_v37 = vpop.f32.mrb[81].mxu0  ;;  %v3477_v13 = vadd.f32 %v4491_v23, %v5973_v24 }
 0x35e   : > { %v4552_v29 = vadd.f32 %v4551_v37, %v4550_v31  ;;  %v4553_v18 = vpop.f32.mrb[82].mxu0 }
 0x35f   : > { %v4554_v58 = vpop.f32.mrb[83].mxu0  ;;  %v4626_v20 = vpop.f32.mrb[64].mxu1 }
 0x360   : > { %v4555_v39 = vadd.f32 %v4554_v58, %v4553_v18  ;;  %v6019_v5 = vadd.f32 %v4552_v29, %v3474_v55  ;;  %v6022_v47 = vadd.f32 %v4626_v20, %v5983_v33  ;;  %v3611_v32 = vpop.f32.mrb[65].mxu1 }
 0x361   : > { %v6027_v50 = vadd.f32 %v3611_v32, %v5977_v52  ;;  %v4627_v22 = vpop.f32.mrb[66].mxu1 }
 0x362   : > { %v6024_v49 = vadd.f32 %v4555_v39, %v3477_v13  ;;  %v3676_v6 = vsub.f32 0.0, %v6022_v47  ;;  %v6031_v53 = vadd.f32 %v4627_v22, %v5985_v2  ;;  %v3614_v24 = vpop.f32.mrb[67].mxu1 }
 0x363   : > { %v3674_v54 = vsub.f32 0.0, %v6027_v50  ;;  %v6035_v57 = vadd.f32 %v3614_v24, %v5979_v16 }
 0x364   : > { %v3694_v33 = vmul.f32 1.442695, %v3676_v6  ;;  %v3677_v1 = vsub.f32 0.0, %v6031_v53 }
 0x365   : > { %v3690_v11 = vmul.f32 1.442695, %v3674_v54  ;;  %v3675_v0 = vsub.f32 0.0, %v6035_v57 }
 0x366   : > { %4943 = vpow2.f32 %v3694_v33  ;;  %v3696_v52 = vmul.f32 1.442695, %v3677_v1  ;;  %v4274_v1 = vld [vmem:[%s5451_s23 + $0x8] sm:$0xff]  }
 0x367   : > { %4945 = vpow2.f32 %v3690_v11  ;;  %v3692_v4 = vmul.f32 1.442695, %v3675_v0  ;;  %v4630_v15 = vpop.f32.mrb[68].mxu1 }
 0x368   : > { %4947 = vpow2.f32 %v3696_v52  ;;  %v6040_v2 = vadd.f32 %v4630_v15, %v5995_v30  ;;  %v3627_v27 = vpop.f32.mrb[69].mxu1 }
 0x369   : > { %4949 = vpow2.f32 %v3692_v4  ;;  %v6043_v16 = vadd.f32 %v3627_v27, %v5989_v10  ;;  %v4631_v7 = vpop.f32.mrb[70].mxu1 }
 0x36a   : > { %v3680_v62 = vsub.f32 0.0, %v6040_v2  ;;  %v6047_v8 = vadd.f32 %v4631_v7, %v5997_v35  ;;  %v3630_v9 = vpop.f32.mrb[71].mxu1 }
 0x36b   : > { %v3678_v60 = vsub.f32 0.0, %v6043_v16  ;;  %v6051_v41 = vadd.f32 %v3630_v9, %v5991_v19 }
 0x36c   : > { %v3702_v12 = vmul.f32 1.442695, %v3680_v62  ;;  %v3681_v30 = vsub.f32 0.0, %v6047_v8 }
 0x36d   : > { %v3698_v45 = vmul.f32 1.442695, %v3678_v60  ;;  %v3679_v51 = vsub.f32 0.0, %v6051_v41 }
 0x36e   : > { %4951 = vpow2.f32 %v3702_v12  ;;  %v3704_v10 = vmul.f32 1.442695, %v3681_v30  ;;  %v4244_v12 = vunpack.c.l.bf16 %v4274_v1 }
 0x36f   : > { %4953 = vpow2.f32 %v3698_v45  ;;  %v3700_v42 = vmul.f32 1.442695, %v3679_v51  ;;  %v4634_v17 = vpop.f32.mrb[72].mxu1 }
 0x370   : > { %v4944_v21 = vpop.eup %4943  ;;  %4955 = vpow2.f32 %v3704_v10  ;;  %v6056_v35 = vadd.f32 %v4634_v17, %v6007_v36  ;;  %v3643_v46 = vpop.f32.mrb[73].mxu1 }
 0x371   : > { %v4946_v44 = vpop.eup %4945  ;;  %v3724_v19 = vadd.f32 1.0, %v4944_v21  ;;  %4957 = vpow2.f32 %v3700_v42  ;;  %v6059_v34 = vadd.f32 %v3643_v46, %v6001_v56  ;;  %v4635_v59 = vpop.f32.mrb[74].mxu1  ;;  %v4245_v21 = vunpack.c.h.bf16 %v4274_v1 }
 0x372   : > { %v4948_v25 = vpop.eup %4947  ;;  %v3722_v43 = vadd.f32 1.0, %v4946_v44  ;;  %v3684_v14 = vsub.f32 0.0, %v6056_v35  ;;  %v6063_v28 = vadd.f32 %v4635_v59, %v6009_v3  ;;  %v3646_v61 = vpop.f32.mrb[75].mxu1  ;;  %v4275_v3 = vld [vmem:[%s5451_s23 + $0x10] sm:$0xff]  }
 0x373   : > { %v4950_v38 = vpop.eup %4949  ;;  %4959 = vrcp.f32 %v3724_v19  ;;  %v3725_v36 = vadd.f32 1.0, %v4948_v25  ;;  %v3682_v31 = vsub.f32 0.0, %v6059_v34  ;;  %v6067_v40 = vadd.f32 %v3646_v61, %v6003_v48 }
 0x374   : > { %4961 = vrcp.f32 %v3722_v43  ;;  %v3723_v56 = vadd.f32 1.0, %v4950_v38  ;;  %v3710_v55 = vmul.f32 1.442695, %v3684_v14  ;;  %v3685_v23 = vsub.f32 0.0, %v6063_v28  ;;  %v4277_v14 = vld [vmem:[%s5451_s23 + $0x20] sm:$0xff]   ;;  %v4276_v38 = vld [vmem:[%s5451_s23 + $0x18] sm:$0xff]  }
 0x375   : > { %4963 = vrcp.f32 %v3725_v36  ;;  %v3706_v37 = vmul.f32 1.442695, %v3682_v31  ;;  %v3683_v29 = vsub.f32 0.0, %v6067_v40  ;;  %v4248_v22 = vunpack.c.l.bf16 %v4275_v3 }
 0x376   : > { %4965 = vrcp.f32 %v3723_v56  ;;  %v3712_v18 = vmul.f32 1.442695, %v3685_v23  ;;  %v4249_v10 = vunpack.c.h.bf16 %v4275_v3  ;;  %v4256_v23 = vunpack.c.l.bf16 %v4277_v14 }
 0x377   : > { %4967 = vpow2.f32 %v3710_v55  ;;  %v3708_v13 = vmul.f32 1.442695, %v3683_v29  ;;  %v4638_v58 = vpop.f32.mrb[76].mxu1 }
 0x378   : > { %v4952_v39 = vpop.eup %4951  ;;  %4969 = vpow2.f32 %v3706_v37  ;;  %v6073_v48 = vadd.f32 %v4638_v58, %v6019_v5  ;;  %v3659_v20 = vpop.f32.mrb[77].mxu1  ;;  %v4257_v58 = vunpack.c.h.bf16 %v4277_v14 }
 0x379   : > { %v4954_v32 = vpop.eup %4953  ;;  %v3728_v6 = vadd.f32 1.0, %v4952_v39  ;;  %4971 = vpow2.f32 %v3712_v18  ;;  %v6076_v24 = vadd.f32 %v3659_v20, %v6013_v63  ;;  %v4639_v54 = vpop.f32.mrb[78].mxu1 }
 0x37a   : > { %v4956_v33 = vpop.eup %4955  ;;  %v3726_v11 = vadd.f32 1.0, %v4954_v32  ;;  %4973 = vpow2.f32 %v3708_v13  ;;  %v3688_v0 = vsub.f32 0.0, %v6073_v48  ;;  %v6081_v52 = vadd.f32 %v4639_v54, %v6024_v49  ;;  %v3662_v5 = vpop.f32.mrb[79].mxu1 }
 0x37b   : > { %v4958_v4 = vpop.eup %4957  ;;  %4975 = vrcp.f32 %v3728_v6  ;;  %v3729_v15 = vadd.f32 1.0, %v4956_v33  ;;  %v3686_v27 = vsub.f32 0.0, %v6076_v24  ;;  %v6085_v7 = vadd.f32 %v3662_v5, %v6015_v26  ;;  %v4279_v5 = vld [vmem:[%s5451_s23 + $0x30] sm:$0xff]  }
 0x37c   : > { %4977 = vrcp.f32 %v3726_v11  ;;  %v3727_v63 = vadd.f32 1.0, %v4958_v4  ;;  %v3718_v62 = vmul.f32 1.442695, %v3688_v0  ;;  %v3689_v9 = vsub.f32 0.0, %v6081_v52 }
 0x37d   : > { %v4960_v60 = vpop.eup %4959  ;;  %4979 = vrcp.f32 %v3729_v15  ;;  %v3714_v30 = vmul.f32 1.442695, %v3686_v27  ;;  %v3687_v49 = vsub.f32 0.0, %v6085_v7  ;;  %v4253_v32 = vunpack.c.h.bf16 %v4276_v38  ;;  %v4278_v27 = vld [vmem:[%s5451_s23 + $0x28] sm:$0xff]  }
 0x37e   : > { %v4962_v45 = vpop.eup %4961  ;;  %v3772_v51 = vmul.f32 %v4960_v60, %v6022_v47  ;;  %4981 = vrcp.f32 %v3727_v63  ;;  %v3720_v42 = vmul.f32 1.442695, %v3689_v9 }
 0x37f   : > { %v4964_v26 = vpop.eup %4963  ;;  %v3770_v17 = vmul.f32 %v4962_v45, %v6027_v50  ;;  %4983 = vpow2.f32 %v3718_v62  ;;  %v3716_v46 = vmul.f32 1.442695, %v3687_v49  ;;  %v4265_v45 = vunpack.c.h.bf16 %v4279_v5 }
 0x380   : > { %v4966_v44 = vpop.eup %4965  ;;  %v3821_v19 = vadd.f32 %v4248_v22, %v3772_v51  ;;  %v3773_v59 = vmul.f32 %v4964_v26, %v6031_v53  ;;  %4985 = vpow2.f32 %v3714_v30 }
 0x381   : > { %v4968_v25 = vpop.eup %4967  ;;  %v3819_v47 = vadd.f32 %v4244_v12, %v3770_v17  ;;  %v3771_v43 = vmul.f32 %v4966_v44, %v6035_v57  ;;  %4987 = vpow2.f32 %v3720_v42  ;;  %v4252_v57 = vunpack.c.l.bf16 %v4276_v38 }
 0x382   : > { %v4970_v61 = vpop.eup %4969  ;;  %3837 = vst [vmem:[%s5718_s13 + $0x10] sm:$0xff] %v3821_v19  ;;  %v3822_v50 = vadd.f32 %v4249_v10, %v3773_v59  ;;  %v3732_v36 = vadd.f32 1.0, %v4968_v25  ;;  %4989 = vpow2.f32 %v3716_v46  ;;  %v4260_v12 = vunpack.c.l.bf16 %v4278_v27  ;;  %v4281_v19 = vld [vmem:[%s5451_s23 + $0x40] sm:$0xff]   ;;  %v4280_v59 = vld [vmem:[%s5451_s23 + $0x38] sm:$0xff]  }
 0x383   : > { %v4972_v31 = vpop.eup %4971  ;;  %3835 = vst [vmem:[%s5718_s13] sm:$0xff] %v3819_v47  ;;  %v3820_v56 = vadd.f32 %v4245_v21, %v3771_v43  ;;  %v3730_v55 = vadd.f32 1.0, %v4970_v61  ;;  %v4261_v42 = vunpack.c.h.bf16 %v4278_v27  ;;  %v4268_v43 = vunpack.c.l.bf16 %v4280_v59 }
 0x384   : > { %v4974_v53 = vpop.eup %4973  ;;  %3838 = vst [vmem:[%s5718_s13 + $0x18] sm:$0xff] %v3822_v50  ;;  %4991 = vrcp.f32 %v3732_v36  ;;  %v3733_v37 = vadd.f32 1.0, %v4972_v31  ;;  %v4269_v38 = vunpack.c.h.bf16 %v4280_v59 }
 0x385   : > { %v4976_v29 = vpop.eup %4975  ;;  %3836 = vst [vmem:[%s5718_s13 + $0x8] sm:$0xff] %v3820_v56  ;;  %4993 = vrcp.f32 %v3730_v55  ;;  %v3731_v3 = vadd.f32 1.0, %v4974_v53 }
 0x386   : > { %v4978_v18 = vpop.eup %4977  ;;  %v3776_v13 = vmul.f32 %v4976_v29, %v6040_v2  ;;  %4995 = vrcp.f32 %v3733_v37 }
 0x387   : > { %v4980_v39 = vpop.eup %4979  ;;  %v3774_v20 = vmul.f32 %v4978_v18, %v6043_v16  ;;  %4997 = vrcp.f32 %v3731_v3 }
 0x388   : > { %v4982_v22 = vpop.eup %4981  ;;  %v3825_v6 = vadd.f32 %v4256_v23, %v3776_v13  ;;  %v3777_v54 = vmul.f32 %v4980_v39, %v6047_v8  ;;  %v4264_v8 = vunpack.c.l.bf16 %v4279_v5 }
 0x389   : > { %v4984_v33 = vpop.eup %4983  ;;  %v3823_v1 = vadd.f32 %v4252_v57, %v3774_v20  ;;  %v3775_v2 = vmul.f32 %v4982_v22, %v6051_v41 }
 0x38a   : > { %v4986_v11 = vpop.eup %4985  ;;  %3841 = vst [vmem:[%s5718_s13 + $0x30] sm:$0xff] %v3825_v6  ;;  %v3826_v0 = vadd.f32 %v4257_v58, %v3777_v54  ;;  %v3736_v4 = vadd.f32 1.0, %v4984_v33 }
 0x38b   : > { %v4988_v15 = vpop.eup %4987  ;;  %3839 = vst [vmem:[%s5718_s13 + $0x20] sm:$0xff] %v3823_v1  ;;  %v3824_v16 = vadd.f32 %v4253_v32, %v3775_v2  ;;  %v3734_v63 = vadd.f32 1.0, %v4986_v11 }
 0x38c   : > { %v4990_v62 = vpop.eup %4989  ;;  %3842 = vst [vmem:[%s5718_s13 + $0x38] sm:$0xff] %v3826_v0  ;;  %4999 = vrcp.f32 %v3736_v4  ;;  %v3737_v9 = vadd.f32 1.0, %v4988_v15 }
 0x38d   : > { %3840 = vst [vmem:[%s5718_s13 + $0x28] sm:$0xff] %v3824_v16  ;;  %5001 = vrcp.f32 %v3734_v63  ;;  %v3735_v60 = vadd.f32 1.0, %v4990_v62 }
 0x38e   : > { %v4992_v41 = vpop.eup %4991  ;;  %5003 = vrcp.f32 %v3737_v9 }
 0x38f   : > { %v4994_v30 = vpop.eup %4993  ;;  %v3780_v49 = vmul.f32 %v4992_v41, %v6056_v35  ;;  %5005 = vrcp.f32 %v3735_v60 }
 0x390   : > { %v4996_v51 = vpop.eup %4995  ;;  %v3778_v10 = vmul.f32 %v4994_v30, %v6059_v34  ;;  %v4272_v34 = vunpack.c.l.bf16 %v4281_v19 }
 0x391   : > { %v4998_v26 = vpop.eup %4997  ;;  %v3829_v17 = vadd.f32 %v4264_v8, %v3780_v49  ;;  %v3781_v21 = vmul.f32 %v4996_v51, %v6063_v28 }
 0x392   : > { %v3827_v46 = vadd.f32 %v4260_v12, %v3778_v10  ;;  %v3779_v44 = vmul.f32 %v4998_v26, %v6067_v40  ;;  %v4273_v40 = vunpack.c.h.bf16 %v4281_v19 }
 0x393   : > { %3845 = vst [vmem:[%s5718_s13 + $0x50] sm:$0xff] %v3829_v17  ;;  %v3830_v35 = vadd.f32 %v4265_v45, %v3781_v21 }
 0x394   : > { %3843 = vst [vmem:[%s5718_s13 + $0x40] sm:$0xff] %v3827_v46  ;;  %v3828_v25 = vadd.f32 %v4261_v42, %v3779_v44 }
 0x395   : > { %3846 = vst [vmem:[%s5718_s13 + $0x58] sm:$0xff] %v3830_v35 }
 0x396   : > { %v5000_v47 = vpop.eup %4999  ;;  %3844 = vst [vmem:[%s5718_s13 + $0x48] sm:$0xff] %v3828_v25 }
 0x397   : > { %v5002_v28 = vpop.eup %5001  ;;  %v3784_v14 = vmul.f32 %v5000_v47, %v6073_v48 }
 0x398   : > { %v5004_v61 = vpop.eup %5003  ;;  %v3782_v50 = vmul.f32 %v5002_v28, %v6076_v24 }
 0x399   : > { %v5006_v36 = vpop.eup %5005  ;;  %v3833_v31 = vadd.f32 %v4272_v34, %v3784_v14  ;;  %v3785_v56 = vmul.f32 %v5004_v61, %v6081_v52 }
 0x39a   : > { %v3831_v55 = vadd.f32 %v4268_v43, %v3782_v50  ;;  %v3783_v53 = vmul.f32 %v5006_v36, %v6085_v7 }
 0x39b   : > { %3849 = vst [vmem:[%s5718_s13 + $0x70] sm:$0xff] %v3833_v31  ;;  %v3834_v48 = vadd.f32 %v4273_v40, %v3785_v56 }
 0x39c   : > { %3847 = vst [vmem:[%s5718_s13 + $0x60] sm:$0xff] %v3831_v55  ;;  %v3832_v24 = vadd.f32 %v4269_v38, %v3783_v53 }
 0x39d   : > { %3850 = vst [vmem:[%s5718_s13 + $0x78] sm:$0xff] %v3834_v48 }
 0x39e   : > { %3848 = vst [vmem:[%s5718_s13 + $0x68] sm:$0xff] %v3832_v24 }
 0x39f   : > { %5106 = shalt.err (!%p5103_p1)
}
 0x3a0   : > { %s5107_s23 = scalar_lea.hbm %s6130_s8, 2048  ;;  %s5111_s30 = scalar_lea.hbm %s6194_s5, 8192 }
 0x3a1   : > { %p5108_p2 = scmp.ne.s32.totalorder %s6130_s8, %s5107_s23  ;;  %p5112_p0 = scmp.lt.u32.totalorder %s6130_s8, %s6194_s5 }
 0x3a2   : > { %p5113_p4 = scmp.lt.u32.totalorder %s5111_s30, %s5107_s23  ;;  %p5115_p6 = scmp.lt.u32.totalorder %s5107_s23, %s6130_s8 }
 0x3a3   : > { %p5109_p5 = pnand %p5108_p2, %p5385_p8 }
 0x3a4   : > { %p5114_p10 = por %p5113_p4, %p5112_p0 }
 0x3a5   : > { %p5110_p9 = pneg %p5109_p5 }
 0x3a6   : > { %p5116_p11 = por %p5115_p6, %p5114_p10 }
 0x3a8   : > { %p5117_p13 = pnand %p5116_p11, %p5110_p9 }
 0x3aa   : > { %5120 = shalt.err (!%p5117_p13)
}
 0x3ab   : > { %s5205_s16 = smov 128   ;;  %s5206_s11 = smov 8  }
 0x3ac   : > { %4654 = dma.vmem_to_hbm [thread:$0]  (%p5385_p8), %s6132_s22, 2048, %s6130_s8, %s3852_s9, %s5205_s16, %s5205_s16, %s5206_s11  }
 0x3ad PF: > { %s6242_s10 = sld [smem:[#allocation14_spill]]  ;;  %s6243_s14 = sld [smem:[#allocation16_spill]] }
 0x3ae   : > { %p4676_p3 = scmp.ge.s32.totalorder %s5195_s25, 2 }
 0x3b3   : > { %s3883_s21 = sand.u32 1, %s6242_s10   ;;  %p6244_p7 = scmp.ne.s32.totalorder %s6243_s14, 0 }
 0x3b4   : > { %s3884_s26 = scalar_lea.sflag [#allocation6], %s3883_s21 }
 0x3b5   : > { %p4668_p12 = pnand %p4676_p3, %p6244_p7 }
 0x3b7   : > { %5162 = dma.done.wait (!%p4668_p12), %s3884_s26, 2048  }
 0x3b8   : > { %5164 = vsyncadd (!%p4668_p12), %s3884_s26, 4294965248  ;;  %s22_s25 = sadd.s32 1, %s5195_s25   ;;  %s6245_s21 = sld [smem:[#allocation15_spill]] }
 0x3b9   : > { %p19_p1 = scmp.ge.s32.totalorder %s22_s25, 6   ;;  %s6246_s23 = sld [smem:[#allocation17_spill]] }
 0x3ba   : > { %s6247_s12 = sld [smem:[#allocation18_spill]]  ;;  %s6248_s18 = smov %s5171_s19 }
 0x3bb   : > { %s6249_s19 = smov %s5175_s20  ;;  %s6250_s20 = smov %s5404_s1 }
 0x3bc   : > { %s6251_s22 = smov %s5191_s24  ;;  %21 = sbr.rel (!%p19_p1) target bundleno = 11 (0xb), region = 105 }
 0x3c0   : > { %s6252_s24 = smov %s6247_s12 }
 0x3c3   :  { %3889 = vsyncpa [#allocation5], 1 }
 0x3c4   :  { %3891 = vsyncpa [#allocation5 + $0x1], 1 }
 0x3c5   :  { %3892 = vsyncpa [#allocation8], 1 }
 0x3c6   :  { %3893 = vsyncpa [#allocation6], 1 }
 0x3c7   :  { %3895 = vsyncpa [#allocation6 + $0x1], 1 }

</bundles_post_ra>
